<compile_context>
chip_gen: v7x
topology: tpu7x:2x2x1
jax: 0.10.0
libtpu: 0.0.40
codegen_flags: <defaults>
</compile_context>

<pallas_src>
import functools

import jax
import jax.numpy as jnp
from jax.experimental import pallas as pl
from jax.experimental.pallas import tpu as pltpu
import numpy as np


def _round_up(x, m):
    return (x + m - 1) // m * m


def gru_chunk_kernel(x_ref, h0_ref, wih_ref, whh_ref, bgi_ref, bhn_ref,
                     out_ref, h_scratch):
    """One grid step = one (batch block, time chunk).

    x_ref  : (bb, t_chunk, Ip)  raw input chunk, batch-major, zero-padded
    h0_ref : (bb, Hp)           initial hidden state for this batch block (f32)
    wih_ref: (Ip, 3*Hp)         W_ih^T, gate blocks along lanes (VMEM-resident)
    whh_ref: (Hp, 3*Hp)         W_hh^T (VMEM-resident, f32 or bf16)
    bgi_ref: (1, 3*Hp)          b_ih + folded b_hr/b_hz (f32, exact add)
    bhn_ref: (1, Hp)            n-gate hidden bias (stays inside r*(...))
    out_ref: (bb, t_chunk, Hp)  per-step hidden states, batch-major
    h_scratch: (bb, Hp) f32     hidden state carried across time chunks
    """
    t = pl.program_id(1)
    bb, hp = h_scratch.shape
    t_chunk = out_ref.shape[1]
    mxu_dtype = whh_ref.dtype

    # (Re-)initialize the carried hidden state at the first time chunk of each
    # batch block (time axis is the innermost grid axis).
    @pl.when(t == 0)
    def _():
        h_scratch[...] = h0_ref[...]

    # Hoist the small bias broadcasts out of the unrolled loop (JAX does not CSE
    # broadcast_in_dim, so leaving them inside would emit t_chunk copies).
    bgi = jnp.broadcast_to(bgi_ref[...], (bb, 3 * hp))
    bhn = jnp.broadcast_to(bhn_ref[...], (bb, hp))

    h = h_scratch[...]                                     # f32 carry
    # Static unroll: every Ref index below is a Python int, so all loads/stores
    # are static, lane-aligned slices.  t_chunk is small (8-32).
    for s in range(t_chunk):
        # Fused input projection (resident W_ih^T); weight loads kept at the dot
        # site so Mosaic can stream them instead of pinning a huge live value.
        x_s = x_ref[:, s, :].astype(mxu_dtype)                               # (bb, Ip)
        gi = jnp.dot(x_s, wih_ref[...],
                     preferred_element_type=jnp.float32) + bgi               # (bb, 3Hp)
        gh = jnp.dot(h.astype(mxu_dtype), whh_ref[...],
                     preferred_element_type=jnp.float32)                     # (bb, 3Hp)
        # Hp is a multiple of 128 -> gate slices are lane-tile aligned (free views).
        # TODO(synk): at very large H, split the gate matmuls per-gate to bound
        # live vregs (gi+gh together can exceed the 64-vreg file and spill).
        r = jax.nn.sigmoid(gi[:, 0:hp] + gh[:, 0:hp])
        z = jax.nn.sigmoid(gi[:, hp:2 * hp] + gh[:, hp:2 * hp])
        n = jnp.tanh(gi[:, 2 * hp:3 * hp] + r * (gh[:, 2 * hp:3 * hp] + bhn))
        h = n + z * (h - n)                                # == (1-z)*n + z*h
        out_ref[:, s, :] = h.astype(out_ref.dtype)         # lane-dense store
    h_scratch[...] = h


def encoder_rnn2_forward(x_bsi, h0_1bh, w_ih, w_hh, b_ih, b_hh, *,
                         t_chunk=16, mxu_dtype=jnp.float32):
    """x_bsi: (B, S, I) batch_first input; h0_1bh: (1, B, H).
    w_ih: (3H, I), w_hh: (3H, H), b_ih/b_hh: (3H,) -- PyTorch GRU parameter shapes.
    mxu_dtype: dtype of the resident weight matrices fed to the MXU
               (jnp.bfloat16 recommended in production; gate math stays f32).
    Returns (output (B, S, H), hidden (1, B, H))."""
    B, S, I = x_bsi.shape
    H = h0_1bh.shape[-1]
    f32 = jnp.float32

    # ---- hardware-friendly padded sizes ------------------------------------
    Hp = _round_up(H, 128)                    # lane-dense hidden dim
    G = 3 * Hp
    Ip = _round_up(I, 128)                    # aligned contraction dim (zero-padded)
    Bp = _round_up(B, 8)
    if Bp > 128:
        bb = 128
    elif Bp >= 16:
        # >= 2 batch blocks so the "parallel" axis can use both v7x TensorCores.
        bb = _round_up(Bp // 2, 8)
    else:
        bb = Bp
    Bp = _round_up(Bp, bb)
    t_chunk = max(8, min(_round_up(t_chunk, 8), _round_up(S, 8)))
    Sp = _round_up(S, t_chunk)
    n_bb = Bp // bb
    n_tc = Sp // t_chunk

    # ---- gate-major, transposed, padded weights -----------------------------
    # PyTorch packs gates as rows [r; z; n] of (3H, *).  Each gate's output block
    # goes on the lane axis, padded to Hp, so in-kernel gate slices land on
    # 128-lane tile boundaries.
    w_ih_g = jnp.transpose(w_ih.astype(f32).reshape(3, H, I), (0, 2, 1))     # (3, I, H)
    w_ih_g = jnp.pad(w_ih_g, ((0, 0), (0, 0), (0, Hp - H)))
    wih_t = jnp.transpose(w_ih_g, (1, 0, 2)).reshape(I, G)                   # (I, 3Hp)
    wih_t = jnp.pad(wih_t, ((0, Ip - I), (0, 0))).astype(mxu_dtype)          # (Ip, 3Hp)

    w_hh_g = jnp.transpose(w_hh.astype(f32).reshape(3, H, H), (0, 2, 1))     # (3, H, H)
    w_hh_g = jnp.pad(w_hh_g, ((0, 0), (0, Hp - H), (0, Hp - H)))
    whh_t = jnp.transpose(w_hh_g, (1, 0, 2)).reshape(Hp, G).astype(mxu_dtype)

    b_ih_g = jnp.pad(b_ih.astype(f32).reshape(3, H), ((0, 0), (0, Hp - H)))  # (3, Hp)
    b_hh_g = jnp.pad(b_hh.astype(f32).reshape(3, H), ((0, 0), (0, Hp - H)))  # (3, Hp)
    # Fold r/z hidden biases into the input-projection bias (added in exact f32
    # after the matmul); the n-gate hidden bias stays separate (multiplied by r).
    rz_mask = jnp.array([1.0, 1.0, 0.0], f32)[:, None]
    bgi = (b_ih_g + b_hh_g * rz_mask).reshape(1, G)                          # (1, 3Hp)
    bhn = b_hh_g[2].reshape(1, Hp)                                           # (1, Hp)

    # ---- batch-major padded input / initial hidden ---------------------------
    x_p = jnp.pad(x_bsi, ((0, Bp - B), (0, Sp - S), (0, Ip - I)))            # (Bp,Sp,Ip)
    h0_p = jnp.pad(h0_1bh[0].astype(f32), ((0, Bp - B), (0, Hp - H)))        # (Bp, Hp)
    out_dtype = x_bsi.dtype

    # ---- explicit VMEM budget (resident weights + double-buffered chunks) ----
    wsz = jnp.dtype(mxu_dtype).itemsize
    xsz = jnp.dtype(x_p.dtype).itemsize
    osz = jnp.dtype(out_dtype).itemsize
    need = (2 * (Ip * G + Hp * G) * wsz          # resident weights (2 buffers each)
            + 2 * bb * t_chunk * Ip * xsz        # x chunk double buffer
            + 2 * bb * t_chunk * Hp * osz        # out chunk double buffer
            + 2 * bb * Hp * 4                    # h0 block double buffer
            + 2 * 8 * (G + Hp) * 4               # biases (sublane-padded)
            + bb * Hp * 4)                       # carried-h scratch
    vmem_limit = int(min(max(need * 3 // 2 + (2 << 20), 32 << 20), 127 << 20))

    out_p = pl.pallas_call(
        gru_chunk_kernel,
        out_shape=jax.ShapeDtypeStruct((Bp, Sp, Hp), out_dtype),
        grid_spec=pltpu.PrefetchScalarGridSpec(
            num_scalar_prefetch=0,
            grid=(n_bb, n_tc),                        # (batch blocks, time chunks)
            in_specs=[
                pl.BlockSpec((bb, t_chunk, Ip), lambda b, t: (b, t, 0)),  # x chunk
                pl.BlockSpec((bb, Hp), lambda b, t: (b, 0)),              # h0 block
                pl.BlockSpec((Ip, G), lambda b, t: (0, 0)),               # W_ih^T (resident)
                pl.BlockSpec((Hp, G), lambda b, t: (0, 0)),               # W_hh^T (resident)
                pl.BlockSpec((1, G), lambda b, t: (0, 0)),                # b_gi
                pl.BlockSpec((1, Hp), lambda b, t: (0, 0)),               # b_hn
            ],
            out_specs=pl.BlockSpec((bb, t_chunk, Hp), lambda b, t: (b, t, 0)),
            scratch_shapes=[pltpu.VMEM((bb, Hp), jnp.float32)],           # carried h
        ),
        compiler_params=pltpu.CompilerParams(
            # Batch blocks are independent (megacore-parallel on v7x); the time
            # recurrence must stay sequential.
            dimension_semantics=("parallel", "arbitrary"),
            vmem_limit_bytes=vmem_limit,
        ),
    )(x_p, h0_p, wih_t, whh_t, bgi, bhn)

    # Batch-major output straight from the kernel: no wrapper transpose pass.
    # Final hidden state == output at the last real timestep (note: if the input
    # dtype is bf16 this reads the downcast output, not the internal f32 carry).
    output = out_p[:B, :S, :H]                           # (B, S, H)
    hidden = out_p[:B, S - 1, :H][None]                  # (1, B, H)
    return output, hidden


def gru_reference(x_bsi, h0_1bh, w_ih, w_hh, b_ih, b_hh):
    """Pure-JAX reference matching torch.nn.GRU (batch_first, 1 layer)."""
    H = h0_1bh.shape[-1]

    def step(h, x_t):
        gi = x_t @ w_ih.T + b_ih
        gh = h @ w_hh.T + b_hh
        i_r, i_z, i_n = gi[:, :H], gi[:, H:2 * H], gi[:, 2 * H:]
        h_r, h_z, h_n = gh[:, :H], gh[:, H:2 * H], gh[:, 2 * H:]
        r = jax.nn.sigmoid(i_r + h_r)
        z = jax.nn.sigmoid(i_z + h_z)
        n = jnp.tanh(i_n + r * h_n)
        h_new = (1.0 - z) * n + z * h
        return h_new, h_new

    x_sbi = jnp.transpose(x_bsi, (1, 0, 2))
    h_final, out_sbh = jax.lax.scan(step, h0_1bh[0], x_sbi)
    return jnp.transpose(out_sbh, (1, 0, 2)), h_final[None]


if __name__ == "__main__":
    # Small shapes consistent with the module's forward.
    batch, seq, input_size, hidden_size = 2, 8, 16, 32

    key = jax.random.PRNGKey(0)
    k_x, k_wih, k_whh, k_bih, k_bhh = jax.random.split(key, 5)

    # Deterministic parameter init mimicking PyTorch GRU reset_parameters:
    # uniform(-1/sqrt(hidden), 1/sqrt(hidden)).
    bound = 1.0 / np.sqrt(hidden_size)
    w_ih = jax.random.uniform(k_wih, (3 * hidden_size, input_size),
                              jnp.float32, -bound, bound)
    w_hh = jax.random.uniform(k_whh, (3 * hidden_size, hidden_size),
                              jnp.float32, -bound, bound)
    b_ih = jax.random.uniform(k_bih, (3 * hidden_size,), jnp.float32, -bound, bound)
    b_hh = jax.random.uniform(k_bhh, (3 * hidden_size,), jnp.float32, -bound, bound)

    x = jax.random.normal(k_x, (batch, seq, input_size), jnp.float32)
    h0 = jnp.zeros((1, batch, hidden_size), jnp.float32)   # EncoderRNN2.initHidden()

    out_ref, hid_ref = gru_reference(x, h0, w_ih, w_hh, b_ih, b_hh)

    # f32 MXU path: matches the pure-JAX reference at tight tolerance.
    fwd_f32 = jax.jit(functools.partial(encoder_rnn2_forward, mxu_dtype=jnp.float32))
    out, hid = fwd_f32(x, h0, w_ih, w_hh, b_ih, b_hh)
    out, hid = jax.block_until_ready(out), jax.block_until_ready(hid)
    np.testing.assert_allclose(np.asarray(out), np.asarray(out_ref), rtol=1e-5, atol=1e-5)
    np.testing.assert_allclose(np.asarray(hid), np.asarray(hid_ref), rtol=1e-5, atol=1e-5)
    assert out.shape == (batch, seq, hidden_size)
    assert hid.shape == (1, batch, hidden_size)

    # bf16-weight production path: halves resident weight VMEM and hits the bf16
    # MXU peak; gate math and the carried h stay f32 (looser tolerance expected).
    fwd_bf16 = jax.jit(functools.partial(encoder_rnn2_forward, mxu_dtype=jnp.bfloat16))
    out_b, hid_b = fwd_bf16(x, h0, w_ih, w_hh, b_ih, b_hh)
    out_b, hid_b = jax.block_until_ready(out_b), jax.block_until_ready(hid_b)
    np.testing.assert_allclose(np.asarray(out_b), np.asarray(out_ref), rtol=5e-2, atol=5e-2)
    np.testing.assert_allclose(np.asarray(hid_b), np.asarray(hid_ref), rtol=5e-2, atol=5e-2)

    print("KERNEL_OK")
</pallas_src>

<mosaic_0001>
module attributes {stable_mosaic.version = 11 : i64} {
  func.func @gru_chunk_kernel(%arg0: i32, %arg1: i32, %arg2: memref<8x8x128xf32, #tpu.memory_space<vmem>>, %arg3: memref<8x128xf32, #tpu.memory_space<vmem>>, %arg4: memref<128x384xf32, #tpu.memory_space<vmem>>, %arg5: memref<128x384xf32, #tpu.memory_space<vmem>>, %arg6: memref<1x384xf32, #tpu.memory_space<vmem>>, %arg7: memref<1x128xf32, #tpu.memory_space<vmem>>, %arg8: memref<8x8x128xf32, #tpu.memory_space<vmem>>, %arg9: memref<8x128xf32, #tpu.memory_space<vmem>>) attributes {dimension_semantics = [#tpu.dimension_semantics<parallel>, #tpu.dimension_semantics<arbitrary>], iteration_bounds = array<i64: 1, 1>, scalar_prefetch = 0 : i64, scratch_operands = 1 : i64, tpu.core_type = #tpu.core_type<tc>, window_params = [{transform_indices = @transform_0, window_bounds = array<i64: 8, 8, 128>}, {transform_indices = @transform_1, window_bounds = array<i64: 8, 128>}, {pipeline_mode = #tpu.pipeline_mode<synchronous>, transform_indices = @transform_2, window_bounds = array<i64: 128, 384>}, {pipeline_mode = #tpu.pipeline_mode<synchronous>, transform_indices = @transform_3, window_bounds = array<i64: 128, 384>}, {pipeline_mode = #tpu.pipeline_mode<synchronous>, transform_indices = @transform_4, window_bounds = array<i64: 1, 384>}, {pipeline_mode = #tpu.pipeline_mode<synchronous>, transform_indices = @transform_5, window_bounds = array<i64: 1, 128>}, {transform_indices = @transform_6, window_bounds = array<i64: 8, 8, 128>}]} {
    %c0_i32 = arith.constant 0 : i32
    %0 = arith.cmpi eq, %arg1, %c0_i32 : i32
    %1 = arith.extui %0 : i1 to i32
    %c0_i32_0 = arith.constant 0 : i32
    %2 = arith.cmpi ne, %1, %c0_i32_0 : i32
    scf.if %2 {
      %c0_112 = arith.constant 0 : index
      %c0_113 = arith.constant 0 : index
      %291 = vector.load %arg3[%c0_112, %c0_113] : memref<8x128xf32, #tpu.memory_space<vmem>>, vector<8x128xf32>
      %c0_114 = arith.constant 0 : index
      %c0_115 = arith.constant 0 : index
      %292 = vector.load %arg9[%c0_114, %c0_115] : memref<8x128xf32, #tpu.memory_space<vmem>>, vector<8x128xf32>
      tpu.vector_store %arg9[%c0_114, %c0_115], %291 {strides = array<i32>} : memref<8x128xf32, #tpu.memory_space<vmem>>, vector<8x128xf32>,
    } else {
    }
    %c0 = arith.constant 0 : index
    %c0_1 = arith.constant 0 : index
    %3 = vector.load %arg6[%c0, %c0_1] : memref<1x384xf32, #tpu.memory_space<vmem>>, vector<1x384xf32>
    %4 = vector.shape_cast %3 : vector<1x384xf32> to vector<1x384xf32>
    %5 = vector.broadcast %4 : vector<1x384xf32> to vector<8x384xf32>
    %c0_2 = arith.constant 0 : index
    %c0_3 = arith.constant 0 : index
    %6 = vector.load %arg7[%c0_2, %c0_3] : memref<1x128xf32, #tpu.memory_space<vmem>>, vector<1x128xf32>
    %7 = vector.shape_cast %6 : vector<1x128xf32> to vector<1x128xf32>
    %8 = vector.broadcast %7 : vector<1x128xf32> to vector<8x128xf32>
    %c0_4 = arith.constant 0 : index
    %c0_5 = arith.constant 0 : index
    %9 = vector.load %arg9[%c0_4, %c0_5] : memref<8x128xf32, #tpu.memory_space<vmem>>, vector<8x128xf32>
    %c0_6 = arith.constant 0 : index
    %c0_7 = arith.constant 0 : index
    %c0_8 = arith.constant 0 : index
    %10 = vector.load %arg2[%c0_6, %c0_7, %c0_8] : memref<8x8x128xf32, #tpu.memory_space<vmem>>, vector<8x1x128xf32>
    %11 = vector.shape_cast %10 : vector<8x1x128xf32> to vector<8x128xf32>
    %c0_9 = arith.constant 0 : index
    %c0_10 = arith.constant 0 : index
    %12 = vector.load %arg4[%c0_9, %c0_10] : memref<128x384xf32, #tpu.memory_space<vmem>>, vector<128x384xf32>
    %cst = arith.constant dense<0.000000e+00> : vector<8x384xf32>
    %13 = tpu.matmul %11, %12, %cst {dimension_numbers = #tpu.dot_dimension_numbers<[1], [0], [0], [1], [0, 0, 1, 1], [], []>} : vector<8x128xf32>, vector<128x384xf32>, vector<8x384xf32> -> vector<8x384xf32>
    %14 = arith.addf %13, %5 : vector<8x384xf32>
    %c0_11 = arith.constant 0 : index
    %c0_12 = arith.constant 0 : index
    %15 = vector.load %arg5[%c0_11, %c0_12] : memref<128x384xf32, #tpu.memory_space<vmem>>, vector<128x384xf32>
    %cst_13 = arith.constant dense<0.000000e+00> : vector<8x384xf32>
    %16 = tpu.matmul %9, %15, %cst_13 {dimension_numbers = #tpu.dot_dimension_numbers<[1], [0], [0], [1], [0, 0, 1, 1], [], []>} : vector<8x128xf32>, vector<128x384xf32>, vector<8x384xf32> -> vector<8x384xf32>
    %17 = vector.extract_strided_slice %14 {offsets = [0, 0], sizes = [8, 128], strides = [1, 1]} : vector<8x384xf32> to vector<8x128xf32>
    %18 = vector.extract_strided_slice %16 {offsets = [0, 0], sizes = [8, 128], strides = [1, 1]} : vector<8x384xf32> to vector<8x128xf32>
    %19 = arith.addf %17, %18 : vector<8x128xf32>
    %20 = arith.negf %19 : vector<8x128xf32>
    %21 = math.exp %20 : vector<8x128xf32>
    %cst_14 = arith.constant 1.000000e+00 : f32
    %22 = vector.broadcast %cst_14 : f32 to vector<8x128xf32>
    %23 = arith.addf %22, %21 : vector<8x128xf32>
    %24 = arith.divf %22, %23 : vector<8x128xf32>
    %25 = vector.extract_strided_slice %14 {offsets = [0, 128], sizes = [8, 128], strides = [1, 1]} : vector<8x384xf32> to vector<8x128xf32>
    %26 = vector.extract_strided_slice %16 {offsets = [0, 128], sizes = [8, 128], strides = [1, 1]} : vector<8x384xf32> to vector<8x128xf32>
    %27 = arith.addf %25, %26 : vector<8x128xf32>
    %28 = arith.negf %27 : vector<8x128xf32>
    %29 = math.exp %28 : vector<8x128xf32>
    %cst_15 = arith.constant 1.000000e+00 : f32
    %30 = vector.broadcast %cst_15 : f32 to vector<8x128xf32>
    %31 = arith.addf %30, %29 : vector<8x128xf32>
    %32 = arith.divf %30, %31 : vector<8x128xf32>
    %33 = vector.extract_strided_slice %14 {offsets = [0, 256], sizes = [8, 128], strides = [1, 1]} : vector<8x384xf32> to vector<8x128xf32>
    %34 = vector.extract_strided_slice %16 {offsets = [0, 256], sizes = [8, 128], strides = [1, 1]} : vector<8x384xf32> to vector<8x128xf32>
    %35 = arith.addf %34, %8 : vector<8x128xf32>
    %36 = arith.mulf %24, %35 : vector<8x128xf32>
    %37 = arith.addf %33, %36 : vector<8x128xf32>
    %38 = math.tanh %37 : vector<8x128xf32>
    %39 = arith.subf %9, %38 : vector<8x128xf32>
    %40 = arith.mulf %32, %39 : vector<8x128xf32>
    %41 = arith.addf %38, %40 : vector<8x128xf32>
    %c0_16 = arith.constant 0 : index
    %c0_17 = arith.constant 0 : index
    %c0_18 = arith.constant 0 : index
    %42 = vector.load %arg8[%c0_16, %c0_17, %c0_18] : memref<8x8x128xf32, #tpu.memory_space<vmem>>, vector<8x1x128xf32>
    %43 = vector.shape_cast %42 : vector<8x1x128xf32> to vector<8x128xf32>
    %44 = vector.shape_cast %41 : vector<8x128xf32> to vector<8x1x128xf32>
    tpu.vector_store %arg8[%c0_16, %c0_17, %c0_18], %44 {strides = array<i32>} : memref<8x8x128xf32, #tpu.memory_space<vmem>>, vector<8x1x128xf32>,
    %c0_19 = arith.constant 0 : index
    %c1 = arith.constant 1 : index
    %c0_20 = arith.constant 0 : index
    %45 = vector.load %arg2[%c0_19, %c1, %c0_20] : memref<8x8x128xf32, #tpu.memory_space<vmem>>, vector<8x1x128xf32>
    %46 = vector.shape_cast %45 : vector<8x1x128xf32> to vector<8x128xf32>
    %c0_21 = arith.constant 0 : index
    %c0_22 = arith.constant 0 : index
    %47 = vector.load %arg4[%c0_21, %c0_22] : memref<128x384xf32, #tpu.memory_space<vmem>>, vector<128x384xf32>
    %cst_23 = arith.constant dense<0.000000e+00> : vector<8x384xf32>
    %48 = tpu.matmul %46, %47, %cst_23 {dimension_numbers = #tpu.dot_dimension_numbers<[1], [0], [0], [1], [0, 0, 1, 1], [], []>} : vector<8x128xf32>, vector<128x384xf32>, vector<8x384xf32> -> vector<8x384xf32>
    %49 = arith.addf %48, %5 : vector<8x384xf32>
    %c0_24 = arith.constant 0 : index
    %c0_25 = arith.constant 0 : index
    %50 = vector.load %arg5[%c0_24, %c0_25] : memref<128x384xf32, #tpu.memory_space<vmem>>, vector<128x384xf32>
    %cst_26 = arith.constant dense<0.000000e+00> : vector<8x384xf32>
    %51 = tpu.matmul %41, %50, %cst_26 {dimension_numbers = #tpu.dot_dimension_numbers<[1], [0], [0], [1], [0, 0, 1, 1], [], []>} : vector<8x128xf32>, vector<128x384xf32>, vector<8x384xf32> -> vector<8x384xf32>
    %52 = vector.extract_strided_slice %49 {offsets = [0, 0], sizes = [8, 128], strides = [1, 1]} : vector<8x384xf32> to vector<8x128xf32>
    %53 = vector.extract_strided_slice %51 {offsets = [0, 0], sizes = [8, 128], strides = [1, 1]} : vector<8x384xf32> to vector<8x128xf32>
    %54 = arith.addf %52, %53 : vector<8x128xf32>
    %55 = arith.negf %54 : vector<8x128xf32>
    %56 = math.exp %55 : vector<8x128xf32>
    %cst_27 = arith.constant 1.000000e+00 : f32
    %57 = vector.broadcast %cst_27 : f32 to vector<8x128xf32>
    %58 = arith.addf %57, %56 : vector<8x128xf32>
    %59 = arith.divf %57, %58 : vector<8x128xf32>
    %60 = vector.extract_strided_slice %49 {offsets = [0, 128], sizes = [8, 128], strides = [1, 1]} : vector<8x384xf32> to vector<8x128xf32>
    %61 = vector.extract_strided_slice %51 {offsets = [0, 128], sizes = [8, 128], strides = [1, 1]} : vector<8x384xf32> to vector<8x128xf32>
    %62 = arith.addf %60, %61 : vector<8x128xf32>
    %63 = arith.negf %62 : vector<8x128xf32>
    %64 = math.exp %63 : vector<8x128xf32>
    %cst_28 = arith.constant 1.000000e+00 : f32
    %65 = vector.broadcast %cst_28 : f32 to vector<8x128xf32>
    %66 = arith.addf %65, %64 : vector<8x128xf32>
    %67 = arith.divf %65, %66 : vector<8x128xf32>
    %68 = vector.extract_strided_slice %49 {offsets = [0, 256], sizes = [8, 128], strides = [1, 1]} : vector<8x384xf32> to vector<8x128xf32>
    %69 = vector.extract_strided_slice %51 {offsets = [0, 256], sizes = [8, 128], strides = [1, 1]} : vector<8x384xf32> to vector<8x128xf32>
    %70 = arith.addf %69, %8 : vector<8x128xf32>
    %71 = arith.mulf %59, %70 : vector<8x128xf32>
    %72 = arith.addf %68, %71 : vector<8x128xf32>
    %73 = math.tanh %72 : vector<8x128xf32>
    %74 = arith.subf %41, %73 : vector<8x128xf32>
    %75 = arith.mulf %67, %74 : vector<8x128xf32>
    %76 = arith.addf %73, %75 : vector<8x128xf32>
    %c0_29 = arith.constant 0 : index
    %c1_30 = arith.constant 1 : index
    %c0_31 = arith.constant 0 : index
    %77 = vector.load %arg8[%c0_29, %c1_30, %c0_31] : memref<8x8x128xf32, #tpu.memory_space<vmem>>, vector<8x1x128xf32>
    %78 = vector.shape_cast %77 : vector<8x1x128xf32> to vector<8x128xf32>
    %79 = vector.shape_cast %76 : vector<8x128xf32> to vector<8x1x128xf32>
    tpu.vector_store %arg8[%c0_29, %c1_30, %c0_31], %79 {strides = array<i32>} : memref<8x8x128xf32, #tpu.memory_space<vmem>>, vector<8x1x128xf32>,
    %c0_32 = arith.constant 0 : index
    %c2 = arith.constant 2 : index
    %c0_33 = arith.constant 0 : index
    %80 = vector.load %arg2[%c0_32, %c2, %c0_33] : memref<8x8x128xf32, #tpu.memory_space<vmem>>, vector<8x1x128xf32>
    %81 = vector.shape_cast %80 : vector<8x1x128xf32> to vector<8x128xf32>
    %c0_34 = arith.constant 0 : index
    %c0_35 = arith.constant 0 : index
    %82 = vector.load %arg4[%c0_34, %c0_35] : memref<128x384xf32, #tpu.memory_space<vmem>>, vector<128x384xf32>
    %cst_36 = arith.constant dense<0.000000e+00> : vector<8x384xf32>
    %83 = tpu.matmul %81, %82, %cst_36 {dimension_numbers = #tpu.dot_dimension_numbers<[1], [0], [0], [1], [0, 0, 1, 1], [], []>} : vector<8x128xf32>, vector<128x384xf32>, vector<8x384xf32> -> vector<8x384xf32>
    %84 = arith.addf %83, %5 : vector<8x384xf32>
    %c0_37 = arith.constant 0 : index
    %c0_38 = arith.constant 0 : index
    %85 = vector.load %arg5[%c0_37, %c0_38] : memref<128x384xf32, #tpu.memory_space<vmem>>, vector<128x384xf32>
    %cst_39 = arith.constant dense<0.000000e+00> : vector<8x384xf32>
    %86 = tpu.matmul %76, %85, %cst_39 {dimension_numbers = #tpu.dot_dimension_numbers<[1], [0], [0], [1], [0, 0, 1, 1], [], []>} : vector<8x128xf32>, vector<128x384xf32>, vector<8x384xf32> -> vector<8x384xf32>
    %87 = vector.extract_strided_slice %84 {offsets = [0, 0], sizes = [8, 128], strides = [1, 1]} : vector<8x384xf32> to vector<8x128xf32>
    %88 = vector.extract_strided_slice %86 {offsets = [0, 0], sizes = [8, 128], strides = [1, 1]} : vector<8x384xf32> to vector<8x128xf32>
    %89 = arith.addf %87, %88 : vector<8x128xf32>
    %90 = arith.negf %89 : vector<8x128xf32>
    %91 = math.exp %90 : vector<8x128xf32>
    %cst_40 = arith.constant 1.000000e+00 : f32
    %92 = vector.broadcast %cst_40 : f32 to vector<8x128xf32>
    %93 = arith.addf %92, %91 : vector<8x128xf32>
    %94 = arith.divf %92, %93 : vector<8x128xf32>
    %95 = vector.extract_strided_slice %84 {offsets = [0, 128], sizes = [8, 128], strides = [1, 1]} : vector<8x384xf32> to vector<8x128xf32>
    %96 = vector.extract_strided_slice %86 {offsets = [0, 128], sizes = [8, 128], strides = [1, 1]} : vector<8x384xf32> to vector<8x128xf32>
    %97 = arith.addf %95, %96 : vector<8x128xf32>
    %98 = arith.negf %97 : vector<8x128xf32>
    %99 = math.exp %98 : vector<8x128xf32>
    %cst_41 = arith.constant 1.000000e+00 : f32
    %100 = vector.broadcast %cst_41 : f32 to vector<8x128xf32>
    %101 = arith.addf %100, %99 : vector<8x128xf32>
    %102 = arith.divf %100, %101 : vector<8x128xf32>
    %103 = vector.extract_strided_slice %84 {offsets = [0, 256], sizes = [8, 128], strides = [1, 1]} : vector<8x384xf32> to vector<8x128xf32>
    %104 = vector.extract_strided_slice %86 {offsets = [0, 256], sizes = [8, 128], strides = [1, 1]} : vector<8x384xf32> to vector<8x128xf32>
    %105 = arith.addf %104, %8 : vector<8x128xf32>
    %106 = arith.mulf %94, %105 : vector<8x128xf32>
    %107 = arith.addf %103, %106 : vector<8x128xf32>
    %108 = math.tanh %107 : vector<8x128xf32>
    %109 = arith.subf %76, %108 : vector<8x128xf32>
    %110 = arith.mulf %102, %109 : vector<8x128xf32>
    %111 = arith.addf %108, %110 : vector<8x128xf32>
    %c0_42 = arith.constant 0 : index
    %c2_43 = arith.constant 2 : index
    %c0_44 = arith.constant 0 : index
    %112 = vector.load %arg8[%c0_42, %c2_43, %c0_44] : memref<8x8x128xf32, #tpu.memory_space<vmem>>, vector<8x1x128xf32>
    %113 = vector.shape_cast %112 : vector<8x1x128xf32> to vector<8x128xf32>
    %114 = vector.shape_cast %111 : vector<8x128xf32> to vector<8x1x128xf32>
    tpu.vector_store %arg8[%c0_42, %c2_43, %c0_44], %114 {strides = array<i32>} : memref<8x8x128xf32, #tpu.memory_space<vmem>>, vector<8x1x128xf32>,
    %c0_45 = arith.constant 0 : index
    %c3 = arith.constant 3 : index
    %c0_46 = arith.constant 0 : index
    %115 = vector.load %arg2[%c0_45, %c3, %c0_46] : memref<8x8x128xf32, #tpu.memory_space<vmem>>, vector<8x1x128xf32>
    %116 = vector.shape_cast %115 : vector<8x1x128xf32> to vector<8x128xf32>
    %c0_47 = arith.constant 0 : index
    %c0_48 = arith.constant 0 : index
    %117 = vector.load %arg4[%c0_47, %c0_48] : memref<128x384xf32, #tpu.memory_space<vmem>>, vector<128x384xf32>
    %cst_49 = arith.constant dense<0.000000e+00> : vector<8x384xf32>
    %118 = tpu.matmul %116, %117, %cst_49 {dimension_numbers = #tpu.dot_dimension_numbers<[1], [0], [0], [1], [0, 0, 1, 1], [], []>} : vector<8x128xf32>, vector<128x384xf32>, vector<8x384xf32> -> vector<8x384xf32>
    %119 = arith.addf %118, %5 : vector<8x384xf32>
    %c0_50 = arith.constant 0 : index
    %c0_51 = arith.constant 0 : index
    %120 = vector.load %arg5[%c0_50, %c0_51] : memref<128x384xf32, #tpu.memory_space<vmem>>, vector<128x384xf32>
    %cst_52 = arith.constant dense<0.000000e+00> : vector<8x384xf32>
    %121 = tpu.matmul %111, %120, %cst_52 {dimension_numbers = #tpu.dot_dimension_numbers<[1], [0], [0], [1], [0, 0, 1, 1], [], []>} : vector<8x128xf32>, vector<128x384xf32>, vector<8x384xf32> -> vector<8x384xf32>
    %122 = vector.extract_strided_slice %119 {offsets = [0, 0], sizes = [8, 128], strides = [1, 1]} : vector<8x384xf32> to vector<8x128xf32>
    %123 = vector.extract_strided_slice %121 {offsets = [0, 0], sizes = [8, 128], strides = [1, 1]} : vector<8x384xf32> to vector<8x128xf32>
    %124 = arith.addf %122, %123 : vector<8x128xf32>
    %125 = arith.negf %124 : vector<8x128xf32>
    %126 = math.exp %125 : vector<8x128xf32>
    %cst_53 = arith.constant 1.000000e+00 : f32
    %127 = vector.broadcast %cst_53 : f32 to vector<8x128xf32>
    %128 = arith.addf %127, %126 : vector<8x128xf32>
    %129 = arith.divf %127, %128 : vector<8x128xf32>
    %130 = vector.extract_strided_slice %119 {offsets = [0, 128], sizes = [8, 128], strides = [1, 1]} : vector<8x384xf32> to vector<8x128xf32>
    %131 = vector.extract_strided_slice %121 {offsets = [0, 128], sizes = [8, 128], strides = [1, 1]} : vector<8x384xf32> to vector<8x128xf32>
    %132 = arith.addf %130, %131 : vector<8x128xf32>
    %133 = arith.negf %132 : vector<8x128xf32>
    %134 = math.exp %133 : vector<8x128xf32>
    %cst_54 = arith.constant 1.000000e+00 : f32
    %135 = vector.broadcast %cst_54 : f32 to vector<8x128xf32>
    %136 = arith.addf %135, %134 : vector<8x128xf32>
    %137 = arith.divf %135, %136 : vector<8x128xf32>
    %138 = vector.extract_strided_slice %119 {offsets = [0, 256], sizes = [8, 128], strides = [1, 1]} : vector<8x384xf32> to vector<8x128xf32>
    %139 = vector.extract_strided_slice %121 {offsets = [0, 256], sizes = [8, 128], strides = [1, 1]} : vector<8x384xf32> to vector<8x128xf32>
    %140 = arith.addf %139, %8 : vector<8x128xf32>
    %141 = arith.mulf %129, %140 : vector<8x128xf32>
    %142 = arith.addf %138, %141 : vector<8x128xf32>
    %143 = math.tanh %142 : vector<8x128xf32>
    %144 = arith.subf %111, %143 : vector<8x128xf32>
    %145 = arith.mulf %137, %144 : vector<8x128xf32>
    %146 = arith.addf %143, %145 : vector<8x128xf32>
    %c0_55 = arith.constant 0 : index
    %c3_56 = arith.constant 3 : index
    %c0_57 = arith.constant 0 : index
    %147 = vector.load %arg8[%c0_55, %c3_56, %c0_57] : memref<8x8x128xf32, #tpu.memory_space<vmem>>, vector<8x1x128xf32>
    %148 = vector.shape_cast %147 : vector<8x1x128xf32> to vector<8x128xf32>
    %149 = vector.shape_cast %146 : vector<8x128xf32> to vector<8x1x128xf32>
    tpu.vector_store %arg8[%c0_55, %c3_56, %c0_57], %149 {strides = array<i32>} : memref<8x8x128xf32, #tpu.memory_space<vmem>>, vector<8x1x128xf32>,
    %c0_58 = arith.constant 0 : index
    %c4 = arith.constant 4 : index
    %c0_59 = arith.constant 0 : index
    %150 = vector.load %arg2[%c0_58, %c4, %c0_59] : memref<8x8x128xf32, #tpu.memory_space<vmem>>, vector<8x1x128xf32>
    %151 = vector.shape_cast %150 : vector<8x1x128xf32> to vector<8x128xf32>
    %c0_60 = arith.constant 0 : index
    %c0_61 = arith.constant 0 : index
    %152 = vector.load %arg4[%c0_60, %c0_61] : memref<128x384xf32, #tpu.memory_space<vmem>>, vector<128x384xf32>
    %cst_62 = arith.constant dense<0.000000e+00> : vector<8x384xf32>
    %153 = tpu.matmul %151, %152, %cst_62 {dimension_numbers = #tpu.dot_dimension_numbers<[1], [0], [0], [1], [0, 0, 1, 1], [], []>} : vector<8x128xf32>, vector<128x384xf32>, vector<8x384xf32> -> vector<8x384xf32>
    %154 = arith.addf %153, %5 : vector<8x384xf32>
    %c0_63 = arith.constant 0 : index
    %c0_64 = arith.constant 0 : index
    %155 = vector.load %arg5[%c0_63, %c0_64] : memref<128x384xf32, #tpu.memory_space<vmem>>, vector<128x384xf32>
    %cst_65 = arith.constant dense<0.000000e+00> : vector<8x384xf32>
    %156 = tpu.matmul %146, %155, %cst_65 {dimension_numbers = #tpu.dot_dimension_numbers<[1], [0], [0], [1], [0, 0, 1, 1], [], []>} : vector<8x128xf32>, vector<128x384xf32>, vector<8x384xf32> -> vector<8x384xf32>
    %157 = vector.extract_strided_slice %154 {offsets = [0, 0], sizes = [8, 128], strides = [1, 1]} : vector<8x384xf32> to vector<8x128xf32>
    %158 = vector.extract_strided_slice %156 {offsets = [0, 0], sizes = [8, 128], strides = [1, 1]} : vector<8x384xf32> to vector<8x128xf32>
    %159 = arith.addf %157, %158 : vector<8x128xf32>
    %160 = arith.negf %159 : vector<8x128xf32>
    %161 = math.exp %160 : vector<8x128xf32>
    %cst_66 = arith.constant 1.000000e+00 : f32
    %162 = vector.broadcast %cst_66 : f32 to vector<8x128xf32>
    %163 = arith.addf %162, %161 : vector<8x128xf32>
    %164 = arith.divf %162, %163 : vector<8x128xf32>
    %165 = vector.extract_strided_slice %154 {offsets = [0, 128], sizes = [8, 128], strides = [1, 1]} : vector<8x384xf32> to vector<8x128xf32>
    %166 = vector.extract_strided_slice %156 {offsets = [0, 128], sizes = [8, 128], strides = [1, 1]} : vector<8x384xf32> to vector<8x128xf32>
    %167 = arith.addf %165, %166 : vector<8x128xf32>
    %168 = arith.negf %167 : vector<8x128xf32>
    %169 = math.exp %168 : vector<8x128xf32>
    %cst_67 = arith.constant 1.000000e+00 : f32
    %170 = vector.broadcast %cst_67 : f32 to vector<8x128xf32>
    %171 = arith.addf %170, %169 : vector<8x128xf32>
    %172 = arith.divf %170, %171 : vector<8x128xf32>
    %173 = vector.extract_strided_slice %154 {offsets = [0, 256], sizes = [8, 128], strides = [1, 1]} : vector<8x384xf32> to vector<8x128xf32>
    %174 = vector.extract_strided_slice %156 {offsets = [0, 256], sizes = [8, 128], strides = [1, 1]} : vector<8x384xf32> to vector<8x128xf32>
    %175 = arith.addf %174, %8 : vector<8x128xf32>
    %176 = arith.mulf %164, %175 : vector<8x128xf32>
    %177 = arith.addf %173, %176 : vector<8x128xf32>
    %178 = math.tanh %177 : vector<8x128xf32>
    %179 = arith.subf %146, %178 : vector<8x128xf32>
    %180 = arith.mulf %172, %179 : vector<8x128xf32>
    %181 = arith.addf %178, %180 : vector<8x128xf32>
    %c0_68 = arith.constant 0 : index
    %c4_69 = arith.constant 4 : index
    %c0_70 = arith.constant 0 : index
    %182 = vector.load %arg8[%c0_68, %c4_69, %c0_70] : memref<8x8x128xf32, #tpu.memory_space<vmem>>, vector<8x1x128xf32>
    %183 = vector.shape_cast %182 : vector<8x1x128xf32> to vector<8x128xf32>
    %184 = vector.shape_cast %181 : vector<8x128xf32> to vector<8x1x128xf32>
    tpu.vector_store %arg8[%c0_68, %c4_69, %c0_70], %184 {strides = array<i32>} : memref<8x8x128xf32, #tpu.memory_space<vmem>>, vector<8x1x128xf32>,
    %c0_71 = arith.constant 0 : index
    %c5 = arith.constant 5 : index
    %c0_72 = arith.constant 0 : index
    %185 = vector.load %arg2[%c0_71, %c5, %c0_72] : memref<8x8x128xf32, #tpu.memory_space<vmem>>, vector<8x1x128xf32>
    %186 = vector.shape_cast %185 : vector<8x1x128xf32> to vector<8x128xf32>
    %c0_73 = arith.constant 0 : index
    %c0_74 = arith.constant 0 : index
    %187 = vector.load %arg4[%c0_73, %c0_74] : memref<128x384xf32, #tpu.memory_space<vmem>>, vector<128x384xf32>
    %cst_75 = arith.constant dense<0.000000e+00> : vector<8x384xf32>
    %188 = tpu.matmul %186, %187, %cst_75 {dimension_numbers = #tpu.dot_dimension_numbers<[1], [0], [0], [1], [0, 0, 1, 1], [], []>} : vector<8x128xf32>, vector<128x384xf32>, vector<8x384xf32> -> vector<8x384xf32>
    %189 = arith.addf %188, %5 : vector<8x384xf32>
    %c0_76 = arith.constant 0 : index
    %c0_77 = arith.constant 0 : index
    %190 = vector.load %arg5[%c0_76, %c0_77] : memref<128x384xf32, #tpu.memory_space<vmem>>, vector<128x384xf32>
    %cst_78 = arith.constant dense<0.000000e+00> : vector<8x384xf32>
    %191 = tpu.matmul %181, %190, %cst_78 {dimension_numbers = #tpu.dot_dimension_numbers<[1], [0], [0], [1], [0, 0, 1, 1], [], []>} : vector<8x128xf32>, vector<128x384xf32>, vector<8x384xf32> -> vector<8x384xf32>
    %192 = vector.extract_strided_slice %189 {offsets = [0, 0], sizes = [8, 128], strides = [1, 1]} : vector<8x384xf32> to vector<8x128xf32>
    %193 = vector.extract_strided_slice %191 {offsets = [0, 0], sizes = [8, 128], strides = [1, 1]} : vector<8x384xf32> to vector<8x128xf32>
    %194 = arith.addf %192, %193 : vector<8x128xf32>
    %195 = arith.negf %194 : vector<8x128xf32>
    %196 = math.exp %195 : vector<8x128xf32>
    %cst_79 = arith.constant 1.000000e+00 : f32
    %197 = vector.broadcast %cst_79 : f32 to vector<8x128xf32>
    %198 = arith.addf %197, %196 : vector<8x128xf32>
    %199 = arith.divf %197, %198 : vector<8x128xf32>
    %200 = vector.extract_strided_slice %189 {offsets = [0, 128], sizes = [8, 128], strides = [1, 1]} : vector<8x384xf32> to vector<8x128xf32>
    %201 = vector.extract_strided_slice %191 {offsets = [0, 128], sizes = [8, 128], strides = [1, 1]} : vector<8x384xf32> to vector<8x128xf32>
    %202 = arith.addf %200, %201 : vector<8x128xf32>
    %203 = arith.negf %202 : vector<8x128xf32>
    %204 = math.exp %203 : vector<8x128xf32>
    %cst_80 = arith.constant 1.000000e+00 : f32
    %205 = vector.broadcast %cst_80 : f32 to vector<8x128xf32>
    %206 = arith.addf %205, %204 : vector<8x128xf32>
    %207 = arith.divf %205, %206 : vector<8x128xf32>
    %208 = vector.extract_strided_slice %189 {offsets = [0, 256], sizes = [8, 128], strides = [1, 1]} : vector<8x384xf32> to vector<8x128xf32>
    %209 = vector.extract_strided_slice %191 {offsets = [0, 256], sizes = [8, 128], strides = [1, 1]} : vector<8x384xf32> to vector<8x128xf32>
    %210 = arith.addf %209, %8 : vector<8x128xf32>
    %211 = arith.mulf %199, %210 : vector<8x128xf32>
    %212 = arith.addf %208, %211 : vector<8x128xf32>
    %213 = math.tanh %212 : vector<8x128xf32>
    %214 = arith.subf %181, %213 : vector<8x128xf32>
    %215 = arith.mulf %207, %214 : vector<8x128xf32>
    %216 = arith.addf %213, %215 : vector<8x128xf32>
    %c0_81 = arith.constant 0 : index
    %c5_82 = arith.constant 5 : index
    %c0_83 = arith.constant 0 : index
    %217 = vector.load %arg8[%c0_81, %c5_82, %c0_83] : memref<8x8x128xf32, #tpu.memory_space<vmem>>, vector<8x1x128xf32>
    %218 = vector.shape_cast %217 : vector<8x1x128xf32> to vector<8x128xf32>
    %219 = vector.shape_cast %216 : vector<8x128xf32> to vector<8x1x128xf32>
    tpu.vector_store %arg8[%c0_81, %c5_82, %c0_83], %219 {strides = array<i32>} : memref<8x8x128xf32, #tpu.memory_space<vmem>>, vector<8x1x128xf32>,
    %c0_84 = arith.constant 0 : index
    %c6 = arith.constant 6 : index
    %c0_85 = arith.constant 0 : index
    %220 = vector.load %arg2[%c0_84, %c6, %c0_85] : memref<8x8x128xf32, #tpu.memory_space<vmem>>, vector<8x1x128xf32>
    %221 = vector.shape_cast %220 : vector<8x1x128xf32> to vector<8x128xf32>
    %c0_86 = arith.constant 0 : index
    %c0_87 = arith.constant 0 : index
    %222 = vector.load %arg4[%c0_86, %c0_87] : memref<128x384xf32, #tpu.memory_space<vmem>>, vector<128x384xf32>
    %cst_88 = arith.constant dense<0.000000e+00> : vector<8x384xf32>
    %223 = tpu.matmul %221, %222, %cst_88 {dimension_numbers = #tpu.dot_dimension_numbers<[1], [0], [0], [1], [0, 0, 1, 1], [], []>} : vector<8x128xf32>, vector<128x384xf32>, vector<8x384xf32> -> vector<8x384xf32>
    %224 = arith.addf %223, %5 : vector<8x384xf32>
    %c0_89 = arith.constant 0 : index
    %c0_90 = arith.constant 0 : index
    %225 = vector.load %arg5[%c0_89, %c0_90] : memref<128x384xf32, #tpu.memory_space<vmem>>, vector<128x384xf32>
    %cst_91 = arith.constant dense<0.000000e+00> : vector<8x384xf32>
    %226 = tpu.matmul %216, %225, %cst_91 {dimension_numbers = #tpu.dot_dimension_numbers<[1], [0], [0], [1], [0, 0, 1, 1], [], []>} : vector<8x128xf32>, vector<128x384xf32>, vector<8x384xf32> -> vector<8x384xf32>
    %227 = vector.extract_strided_slice %224 {offsets = [0, 0], sizes = [8, 128], strides = [1, 1]} : vector<8x384xf32> to vector<8x128xf32>
    %228 = vector.extract_strided_slice %226 {offsets = [0, 0], sizes = [8, 128], strides = [1, 1]} : vector<8x384xf32> to vector<8x128xf32>
    %229 = arith.addf %227, %228 : vector<8x128xf32>
    %230 = arith.negf %229 : vector<8x128xf32>
    %231 = math.exp %230 : vector<8x128xf32>
    %cst_92 = arith.constant 1.000000e+00 : f32
    %232 = vector.broadcast %cst_92 : f32 to vector<8x128xf32>
    %233 = arith.addf %232, %231 : vector<8x128xf32>
    %234 = arith.divf %232, %233 : vector<8x128xf32>
    %235 = vector.extract_strided_slice %224 {offsets = [0, 128], sizes = [8, 128], strides = [1, 1]} : vector<8x384xf32> to vector<8x128xf32>
    %236 = vector.extract_strided_slice %226 {offsets = [0, 128], sizes = [8, 128], strides = [1, 1]} : vector<8x384xf32> to vector<8x128xf32>
    %237 = arith.addf %235, %236 : vector<8x128xf32>
    %238 = arith.negf %237 : vector<8x128xf32>
    %239 = math.exp %238 : vector<8x128xf32>
    %cst_93 = arith.constant 1.000000e+00 : f32
    %240 = vector.broadcast %cst_93 : f32 to vector<8x128xf32>
    %241 = arith.addf %240, %239 : vector<8x128xf32>
    %242 = arith.divf %240, %241 : vector<8x128xf32>
    %243 = vector.extract_strided_slice %224 {offsets = [0, 256], sizes = [8, 128], strides = [1, 1]} : vector<8x384xf32> to vector<8x128xf32>
    %244 = vector.extract_strided_slice %226 {offsets = [0, 256], sizes = [8, 128], strides = [1, 1]} : vector<8x384xf32> to vector<8x128xf32>
    %245 = arith.addf %244, %8 : vector<8x128xf32>
    %246 = arith.mulf %234, %245 : vector<8x128xf32>
    %247 = arith.addf %243, %246 : vector<8x128xf32>
    %248 = math.tanh %247 : vector<8x128xf32>
    %249 = arith.subf %216, %248 : vector<8x128xf32>
    %250 = arith.mulf %242, %249 : vector<8x128xf32>
    %251 = arith.addf %248, %250 : vector<8x128xf32>
    %c0_94 = arith.constant 0 : index
    %c6_95 = arith.constant 6 : index
    %c0_96 = arith.constant 0 : index
    %252 = vector.load %arg8[%c0_94, %c6_95, %c0_96] : memref<8x8x128xf32, #tpu.memory_space<vmem>>, vector<8x1x128xf32>
    %253 = vector.shape_cast %252 : vector<8x1x128xf32> to vector<8x128xf32>
    %254 = vector.shape_cast %251 : vector<8x128xf32> to vector<8x1x128xf32>
    tpu.vector_store %arg8[%c0_94, %c6_95, %c0_96], %254 {strides = array<i32>} : memref<8x8x128xf32, #tpu.memory_space<vmem>>, vector<8x1x128xf32>,
    %c0_97 = arith.constant 0 : index
    %c7 = arith.constant 7 : index
    %c0_98 = arith.constant 0 : index
    %255 = vector.load %arg2[%c0_97, %c7, %c0_98] : memref<8x8x128xf32, #tpu.memory_space<vmem>>, vector<8x1x128xf32>
    %256 = vector.shape_cast %255 : vector<8x1x128xf32> to vector<8x128xf32>
    %c0_99 = arith.constant 0 : index
    %c0_100 = arith.constant 0 : index
    %257 = vector.load %arg4[%c0_99, %c0_100] : memref<128x384xf32, #tpu.memory_space<vmem>>, vector<128x384xf32>
    %cst_101 = arith.constant dense<0.000000e+00> : vector<8x384xf32>
    %258 = tpu.matmul %256, %257, %cst_101 {dimension_numbers = #tpu.dot_dimension_numbers<[1], [0], [0], [1], [0, 0, 1, 1], [], []>} : vector<8x128xf32>, vector<128x384xf32>, vector<8x384xf32> -> vector<8x384xf32>
    %259 = arith.addf %258, %5 : vector<8x384xf32>
    %c0_102 = arith.constant 0 : index
    %c0_103 = arith.constant 0 : index
    %260 = vector.load %arg5[%c0_102, %c0_103] : memref<128x384xf32, #tpu.memory_space<vmem>>, vector<128x384xf32>
    %cst_104 = arith.constant dense<0.000000e+00> : vector<8x384xf32>
    %261 = tpu.matmul %251, %260, %cst_104 {dimension_numbers = #tpu.dot_dimension_numbers<[1], [0], [0], [1], [0, 0, 1, 1], [], []>} : vector<8x128xf32>, vector<128x384xf32>, vector<8x384xf32> -> vector<8x384xf32>
    %262 = vector.extract_strided_slice %259 {offsets = [0, 0], sizes = [8, 128], strides = [1, 1]} : vector<8x384xf32> to vector<8x128xf32>
    %263 = vector.extract_strided_slice %261 {offsets = [0, 0], sizes = [8, 128], strides = [1, 1]} : vector<8x384xf32> to vector<8x128xf32>
    %264 = arith.addf %262, %263 : vector<8x128xf32>
    %265 = arith.negf %264 : vector<8x128xf32>
    %266 = math.exp %265 : vector<8x128xf32>
    %cst_105 = arith.constant 1.000000e+00 : f32
    %267 = vector.broadcast %cst_105 : f32 to vector<8x128xf32>
    %268 = arith.addf %267, %266 : vector<8x128xf32>
    %269 = arith.divf %267, %268 : vector<8x128xf32>
    %270 = vector.extract_strided_slice %259 {offsets = [0, 128], sizes = [8, 128], strides = [1, 1]} : vector<8x384xf32> to vector<8x128xf32>
    %271 = vector.extract_strided_slice %261 {offsets = [0, 128], sizes = [8, 128], strides = [1, 1]} : vector<8x384xf32> to vector<8x128xf32>
    %272 = arith.addf %270, %271 : vector<8x128xf32>
    %273 = arith.negf %272 : vector<8x128xf32>
    %274 = math.exp %273 : vector<8x128xf32>
    %cst_106 = arith.constant 1.000000e+00 : f32
    %275 = vector.broadcast %cst_106 : f32 to vector<8x128xf32>
    %276 = arith.addf %275, %274 : vector<8x128xf32>
    %277 = arith.divf %275, %276 : vector<8x128xf32>
    %278 = vector.extract_strided_slice %259 {offsets = [0, 256], sizes = [8, 128], strides = [1, 1]} : vector<8x384xf32> to vector<8x128xf32>
    %279 = vector.extract_strided_slice %261 {offsets = [0, 256], sizes = [8, 128], strides = [1, 1]} : vector<8x384xf32> to vector<8x128xf32>
    %280 = arith.addf %279, %8 : vector<8x128xf32>
    %281 = arith.mulf %269, %280 : vector<8x128xf32>
    %282 = arith.addf %278, %281 : vector<8x128xf32>
    %283 = math.tanh %282 : vector<8x128xf32>
    %284 = arith.subf %251, %283 : vector<8x128xf32>
    %285 = arith.mulf %277, %284 : vector<8x128xf32>
    %286 = arith.addf %283, %285 : vector<8x128xf32>
    %c0_107 = arith.constant 0 : index
    %c7_108 = arith.constant 7 : index
    %c0_109 = arith.constant 0 : index
    %287 = vector.load %arg8[%c0_107, %c7_108, %c0_109] : memref<8x8x128xf32, #tpu.memory_space<vmem>>, vector<8x1x128xf32>
    %288 = vector.shape_cast %287 : vector<8x1x128xf32> to vector<8x128xf32>
    %289 = vector.shape_cast %286 : vector<8x128xf32> to vector<8x1x128xf32>
    tpu.vector_store %arg8[%c0_107, %c7_108, %c0_109], %289 {strides = array<i32>} : memref<8x8x128xf32, #tpu.memory_space<vmem>>, vector<8x1x128xf32>,
    %c0_110 = arith.constant 0 : index
    %c0_111 = arith.constant 0 : index
    %290 = vector.load %arg9[%c0_110, %c0_111] : memref<8x128xf32, #tpu.memory_space<vmem>>, vector<8x128xf32>
    tpu.vector_store %arg9[%c0_110, %c0_111], %286 {strides = array<i32>} : memref<8x128xf32, #tpu.memory_space<vmem>>, vector<8x128xf32>,
    return
  }
  func.func @transform_0(%arg0: i32, %arg1: i32) -> (i32, i32, i32) {
    %c0_i32 = arith.constant 0 : i32
    %c0_i32_0 = arith.constant 0 : i32
    return %arg0, %arg1, %c0_i32 : i32, i32, i32
  }
  func.func @transform_1(%arg0: i32, %arg1: i32) -> (i32, i32) {
    %c0_i32 = arith.constant 0 : i32
    %c0_i32_0 = arith.constant 0 : i32
    return %arg0, %c0_i32 : i32, i32
  }
  func.func @transform_2(%arg0: i32, %arg1: i32) -> (i32, i32) {
    %c0_i32 = arith.constant 0 : i32
    %c0_i32_0 = arith.constant 0 : i32
    %c0_i32_1 = arith.constant 0 : i32
    return %c0_i32, %c0_i32_0 : i32, i32
  }
  func.func @transform_3(%arg0: i32, %arg1: i32) -> (i32, i32) {
    %c0_i32 = arith.constant 0 : i32
    %c0_i32_0 = arith.constant 0 : i32
    %c0_i32_1 = arith.constant 0 : i32
    return %c0_i32, %c0_i32_0 : i32, i32
  }
  func.func @transform_4(%arg0: i32, %arg1: i32) -> (i32, i32) {
    %c0_i32 = arith.constant 0 : i32
    %c0_i32_0 = arith.constant 0 : i32
    %c0_i32_1 = arith.constant 0 : i32
    return %c0_i32, %c0_i32_0 : i32, i32
  }
  func.func @transform_5(%arg0: i32, %arg1: i32) -> (i32, i32) {
    %c0_i32 = arith.constant 0 : i32
    %c0_i32_0 = arith.constant 0 : i32
    %c0_i32_1 = arith.constant 0 : i32
    return %c0_i32, %c0_i32_0 : i32, i32
  }
  func.func @transform_6(%arg0: i32, %arg1: i32) -> (i32, i32, i32) {
    %c0_i32 = arith.constant 0 : i32
    %c0_i32_0 = arith.constant 0 : i32
    return %arg0, %arg1, %c0_i32 : i32, i32, i32
  }
}

</mosaic_0001>

<bundles_post_ra>
// kernel: encoder_rnn2_forward.1
= control target key start
LH: loop header
LB: loop body
LE: loop exit
PB: predicated region body
PF: predicated region fallthrough
CT: control target
= control target key end

     0   :  { %v5929_v3 = vmov 0.0|0.0   ;;  %v5930_v4 = vmov 0.0   ;;  %vm5931_vm0 = vmmov 0   ;;  %vm119_vm1 = vcmask 1041409   ;;  %s8656_s2 = inlined_call_operand.vmem [shape: f32[128,384], index: 2, kind: input, shape index: {}]   ;;  %s8657_s0 = inlined_call_operand.vmem [shape: f32[8,8,128], index: 0, kind: input, shape index: {}]   ;;  %s8658_s3 = inlined_call_operand.vmem [shape: f32[128,384], index: 3, kind: input, shape index: {}]   ;;  %s8659_s1 = inlined_call_operand.vmem [shape: f32[8,128], index: 1, kind: input, shape index: {}]   ;;  %s8660_s4 = inlined_call_operand.vmem [shape: f32[1,384], index: 4, kind: input, shape index: {}]   ;;  %s8661_s5 = inlined_call_operand.vmem [shape: f32[1,128], index: 5, kind: input, shape index: {}]   ;;  %s8662_s6 = inlined_call_operand.vmem [shape: f32[8,8,128], index: 6, kind: output, shape index: {}]  }
   0x1   :  { %v63_v0 = vld [vmem:[%s8656_s2 + $0x8] sm:$0xff]  ;;  %v66_v1 = vld [vmem:[%s8656_s2 + $0x20] sm:$0xff]  ;;  %4947 = vmatprep.subr.bf16.mxu1 %v5929_v3  ;;  %204 = vmatprep.mubr.f32.mxu0 %v5930_v4  ;;  %v65_v6 = vld [vmem:[%s8656_s2 + $0x18] sm:$0xff]  ;;  %vm122_vm2 = vcmask 1042434   ;;  %vm125_vm3 = vcmask 1043459   ;;  %vm128_vm4 = vcmask 1044484  }
   0x2   :  { %v62_v2 = vld [vmem:[%s8656_s2] sm:$0xff]  ;;  %v5979_v5 = vpack.c.bf16 %v66_v1, %v63_v0  ;;  %v69_v7 = vld [vmem:[%s8656_s2 + $0x38] sm:$0xff]  ;;  %v72_v8 = vld [vmem:[%s8656_s2 + $0x50] sm:$0xff]  ;;  %4387 = vmatprep.mubr.msk.f32.mxu1 %vm5931_vm0, %v5930_v4  ;;  %vm131_vm5 = vcmask 1045509   ;;  %vm134_vm6 = vcmask 1046534   ;;  %vm137_vm7 = vcmask 1047559  }
   0x3   :  { %v5990_v9 = vpack.c.bf16 %v65_v6, %v62_v2  ;;  %v5992_v10 = vpack.c.bf16 %v72_v8, %v69_v7  ;;  %v68_v11 = vld [vmem:[%s8656_s2 + $0x30] sm:$0xff]  ;;  %v71_v12 = vld [vmem:[%s8656_s2 + $0x48] sm:$0xff]  ;;  %v78_v14 = vld [vmem:[%s8656_s2 + $0x80] sm:$0xff] }
   0x4   :  { %v75_v13 = vld [vmem:[%s8656_s2 + $0x68] sm:$0xff]  ;;  %4916 = vmatprep.subr.bf16.mxu0 %v5979_v5  ;;  %v6010_v15 = vpack.c.bf16 %v71_v12, %v68_v11  ;;  %v74_v17 = vld [vmem:[%s8656_s2 + $0x60] sm:$0xff]  ;;  %v77_v18 = vld [vmem:[%s8656_s2 + $0x78] sm:$0xff] }
   0x5   :  { %4918 = vmatpush1.bf16.msra.mxu0 %v5990_v9  ;;  %v6013_v16 = vpack.c.bf16 %v78_v14, %v75_v13  ;;  %v81_v19 = vld [vmem:[%s8656_s2 + $0x98] sm:$0xff]  ;;  %v84_v20 = vld [vmem:[%s8656_s2 + $0xb0] sm:$0xff]  ;;  %v6028_v21 = vpack.c.bf16 %v77_v18, %v74_v17  ;;  %v83_v24 = vld [vmem:[%s8656_s2 + $0xa8] sm:$0xff] }
   0x6   :  { %4920 = vmatprep.subr.bf16.mxu0 %v5992_v10  ;;  %v80_v22 = vld [vmem:[%s8656_s2 + $0x90] sm:$0xff]  ;;  %v6034_v23 = vpack.c.bf16 %v84_v20, %v81_v19  ;;  %v67_v26 = vld [vmem:[%s8656_s2 + $0x28] sm:$0xff]  ;;  %v90_v28 = vld [vmem:[%s8656_s2 + $0xe0] sm:$0xff] }
   0x7   :  { %v64_v25 = vld [vmem:[%s8656_s2 + $0x10] sm:$0xff]  ;;  %v87_v27 = vld [vmem:[%s8656_s2 + $0xc8] sm:$0xff]  ;;  %v70_v30 = vld [vmem:[%s8656_s2 + $0x40] sm:$0xff]  ;;  %v6060_v32 = vpack.c.bf16 %v83_v24, %v80_v22 }
   0x8   :  { %v6051_v29 = vpack.c.bf16 %v67_v26, %v64_v25  ;;  %v73_v31 = vld [vmem:[%s8656_s2 + $0x58] sm:$0xff]  ;;  %v86_v33 = vld [vmem:[%s8656_s2 + $0xc0] sm:$0xff]  ;;  %v6072_v36 = vpack.c.bf16 %v90_v28, %v87_v27  ;;  %v55_v37 = vld [vmem:[%s8657_s0 + $0x8] sm:$0x1] }
   0x9   :  { %4922 = vmatpush1.bf16.msra.mxu0 %v6010_v15  ;;  %v89_v34 = vld [vmem:[%s8656_s2 + $0xd8] sm:$0xff]  ;;  %v6069_v35 = vpack.c.bf16 %v73_v31, %v70_v30  ;;  %v56_v38 = vld [vmem:[%s8657_s0 + $0x10] sm:$0x1]  ;;  %v54_v42 = vld [vmem:[%s8657_s0] sm:$0x1]  ;;  %v118_v43 = vrot.slane %v55_v37, 7 }
   0xa   :  { %4924 = vmatprep.subr.bf16.mxu0 %v6013_v16  ;;  %4949 = vmatpush3.bf16.msra.mxu1 %v6051_v29  ;;  %v57_v39 = vld [vmem:[%s8657_s0 + $0x18] sm:$0x1]  ;;  %v96_v41 = vld [vmem:[%s8656_s2 + $0x110] sm:$0xff]  ;;  %v121_v44 = vrot.slane %v56_v38, 6  ;;  %v6094_v45 = vpack.c.bf16 %v89_v34, %v86_v33  ;;  %v58_v46 = vld [vmem:[%s8657_s0 + $0x20] sm:$0x1] }
   0xb   :  { %4950 = vmatprep.subr.bf16.mxu1 %v5929_v3  ;;  %v93_v40 = vld [vmem:[%s8656_s2 + $0xf8] sm:$0xff]  ;;  %v124_v47 = vrot.slane %v57_v39, 5  ;;  %v76_v48 = vld [vmem:[%s8656_s2 + $0x70] sm:$0xff]  ;;  %v95_v51 = vld [vmem:[%s8656_s2 + $0x108] sm:$0xff]  ;;  %v120_v52 = vsel %vm119_vm1, %v118_v43, %v54_v42  ;;  %v127_v60 = vrot.slane %v58_v46, 4 }
   0xc   :  { %v6104_v49 = vpack.c.bf16 %v96_v41, %v93_v40  ;;  %v92_v50 = vld [vmem:[%s8656_s2 + $0xf0] sm:$0xff]  ;;  %v79_v53 = vld [vmem:[%s8656_s2 + $0x88] sm:$0xff]  ;;  %v102_v55 = vld [vmem:[%s8656_s2 + $0x140] sm:$0xff]  ;;  %v123_v56 = vsel %vm122_vm2, %v121_v44, %v120_v52 }
   0xd   :  { %4926 = vmatpush1.bf16.msra.mxu0 %v6028_v21  ;;  %v99_v54 = vld [vmem:[%s8656_s2 + $0x128] sm:$0xff]  ;;  %v6124_v57 = vpack.c.bf16 %v79_v53, %v76_v48  ;;  %v82_v58 = vld [vmem:[%s8656_s2 + $0xa0] sm:$0xff]  ;;  %v85_v61 = vld [vmem:[%s8656_s2 + $0xb8] sm:$0xff]  ;;  %v6136_v62 = vpack.c.bf16 %v95_v51, %v92_v50  ;;  %v126_v0 = vsel %vm125_vm3, %v124_v47, %v123_v56 }
   0xe   :  { %4928 = vmatprep.subr.bf16.mxu0 %v6034_v23  ;;  %4952 = vmatpush3.bf16.msra.mxu1 %v6069_v35  ;;  %v59_v59 = vld [vmem:[%s8657_s0 + $0x28] sm:$0x1]  ;;  %v98_v63 = vld [vmem:[%s8656_s2 + $0x120] sm:$0xff]  ;;  %v6143_v1 = vpack.c.bf16 %v85_v61, %v82_v58  ;;  %v6146_v2 = vpack.c.bf16 %v102_v55, %v99_v54  ;;  %v101_v6 = vld [vmem:[%s8656_s2 + $0x138] sm:$0xff]  ;;  %v129_v17 = vsel %vm128_vm4, %v127_v60, %v126_v0 }
   0xf   :  { %4953 = vmatprep.subr.bf16.mxu1 %v5929_v3  ;;  %v88_v7 = vld [vmem:[%s8656_s2 + $0xd0] sm:$0xff]  ;;  %v91_v8 = vld [vmem:[%s8656_s2 + $0xe8] sm:$0xff]  ;;  %v105_v11 = vld [vmem:[%s8656_s2 + $0x158] sm:$0xff]  ;;  %v130_v14 = vrot.slane %v59_v59, 3  ;;  %v6169_v18 = vpack.c.bf16 %v101_v6, %v98_v63 }
  0x10   :  { %v108_v12 = vld [vmem:[%s8656_s2 + $0x170] sm:$0xff]  ;;  %v107_v20 = vld [vmem:[%s8656_s2 + $0x168] sm:$0xff]  ;;  %v6178_v22 = vpack.c.bf16 %v91_v8, %v88_v7  ;;  %v61_v25 = vld [vmem:[%s8657_s0 + $0x38] sm:$0x1] }
  0x11   :  { %4930 = vmatpush1.bf16.msra.mxu0 %v6060_v32  ;;  %v60_v13 = vld [vmem:[%s8657_s0 + $0x30] sm:$0x1]  ;;  %v6181_v24 = vpack.c.bf16 %v108_v12, %v105_v11  ;;  %v94_v27 = vld [vmem:[%s8656_s2 + $0x100] sm:$0xff]  ;;  %v97_v28 = vld [vmem:[%s8656_s2 + $0x118] sm:$0xff]  ;;  %v132_v33 = vsel %vm131_vm5, %v130_v14, %v129_v17  ;;  %v136_v37 = vrot.slane %v61_v25, 1 }
  0x12   :  { %4932 = vmatprep.subr.bf16.mxu0 %v6072_v36  ;;  %4955 = vmatpush3.bf16.msra.mxu1 %v6124_v57  ;;  %v104_v19 = vld [vmem:[%s8656_s2 + $0x150] sm:$0xff]  ;;  %v133_v26 = vrot.slane %v60_v13, 2  ;;  %v282_v30 = vld [vmem:[%s8658_s3 + $0x8] sm:$0xff]  ;;  %v285_v31 = vld [vmem:[%s8658_s3 + $0x20] sm:$0xff]  ;;  %v6207_v39 = vpack.c.bf16 %v97_v28, %v94_v27 }
  0x13   :  { %4956 = vmatprep.subr.bf16.mxu1 %v5929_v3  ;;  %v6201_v34 = vpack.c.bf16 %v107_v20, %v104_v19  ;;  %v281_v38 = vld [vmem:[%s8658_s3] sm:$0xff]  ;;  %v6210_v40 = vpack.c.bf16 %v285_v31, %v282_v30  ;;  %v284_v42 = vld [vmem:[%s8658_s3 + $0x18] sm:$0xff]  ;;  %v100_v43 = vld [vmem:[%s8656_s2 + $0x130] sm:$0xff] }
  0x14   :  { %v135_v41 = vsel %vm134_vm6, %v133_v26, %v132_v33  ;;  %v103_v44 = vld [vmem:[%s8656_s2 + $0x148] sm:$0xff]  ;;  %v288_v46 = vld [vmem:[%s8658_s3 + $0x38] sm:$0xff]  ;;  %v291_v47 = vld [vmem:[%s8658_s3 + $0x50] sm:$0xff]  ;;  %v6231_v50 = vpack.c.bf16 %v284_v42, %v281_v38 }
  0x15   :  { %4934 = vmatpush1.bf16.msra.mxu0 %v6094_v45  ;;  %v138_v48 = vsel %vm137_vm7, %v136_v37, %v135_v41  ;;  %v287_v51 = vld [vmem:[%s8658_s3 + $0x30] sm:$0xff]  ;;  %v6237_v52 = vpack.c.bf16 %v103_v44, %v100_v43  ;;  %v6240_v53 = vpack.c.bf16 %v291_v47, %v288_v46  ;;  %v290_v54 = vld [vmem:[%s8658_s3 + $0x48] sm:$0xff]  ;;  %v106_v55 = vld [vmem:[%s8656_s2 + $0x160] sm:$0xff] }
  0x16   :  { %4936 = vmatprep.subr.bf16.mxu0 %v6104_v49  ;;  %4958 = vmatpush3.bf16.msra.mxu1 %v6143_v1  ;;  %v109_v56 = vld [vmem:[%s8656_s2 + $0x178] sm:$0xff]  ;;  %v294_v58 = vld [vmem:[%s8658_s3 + $0x68] sm:$0xff]  ;;  %v297_v59 = vld [vmem:[%s8658_s3 + $0x80] sm:$0xff]  ;;  %v6259_v60 = vpack.c.bf16 %v290_v54, %v287_v51 }
  0x17   :  { %4959 = vmatprep.subr.bf16.mxu1 %v5929_v3  ;;  %v293_v61 = vld [vmem:[%s8658_s3 + $0x60] sm:$0xff]  ;;  %v6265_v63 = vpack.c.bf16 %v109_v56, %v106_v55  ;;  %v6268_v0 = vpack.c.bf16 %v297_v59, %v294_v58  ;;  %v296_v6 = vld [vmem:[%s8658_s3 + $0x78] sm:$0xff]  ;;  %v283_v7 = vld [vmem:[%s8658_s3 + $0x10] sm:$0xff] }
  0x18   :  { %v286_v8 = vld [vmem:[%s8658_s3 + $0x28] sm:$0xff]  ;;  %v300_v11 = vld [vmem:[%s8658_s3 + $0x98] sm:$0xff]  ;;  %v303_v12 = vld [vmem:[%s8658_s3 + $0xb0] sm:$0xff]  ;;  %v6288_v13 = vpack.c.bf16 %v296_v6, %v293_v61 }
  0x19   :  { %4938 = vmatpush1.bf16.msra.mxu0 %v6136_v62  ;;  %v299_v14 = vld [vmem:[%s8658_s3 + $0x90] sm:$0xff]  ;;  %v6294_v17 = vpack.c.bf16 %v286_v8, %v283_v7  ;;  %v6297_v19 = vpack.c.bf16 %v303_v12, %v300_v11  ;;  %v302_v20 = vld [vmem:[%s8658_s3 + $0xa8] sm:$0xff]  ;;  %v289_v25 = vld [vmem:[%s8658_s3 + $0x40] sm:$0xff] }
  0x1a   :  { %4940 = vmatprep.subr.bf16.mxu0 %v6146_v2  ;;  %4961 = vmatpush3.bf16.msra.mxu1 %v6178_v22  ;;  %v292_v26 = vld [vmem:[%s8658_s3 + $0x58] sm:$0xff]  ;;  %v306_v27 = vld [vmem:[%s8658_s3 + $0xc8] sm:$0xff]  ;;  %v309_v28 = vld [vmem:[%s8658_s3 + $0xe0] sm:$0xff]  ;;  %v6316_v30 = vpack.c.bf16 %v302_v20, %v299_v14 }
  0x1b   :  { %4962 = vmatprep.subr.bf16.mxu1 %v5929_v3  ;;  %v305_v31 = vld [vmem:[%s8658_s3 + $0xc0] sm:$0xff]  ;;  %v6322_v33 = vpack.c.bf16 %v292_v26, %v289_v25  ;;  %v6325_v37 = vpack.c.bf16 %v309_v28, %v306_v27  ;;  %v308_v38 = vld [vmem:[%s8658_s3 + $0xd8] sm:$0xff]  ;;  %v295_v41 = vld [vmem:[%s8658_s3 + $0x70] sm:$0xff] }
  0x1c   :  { %v298_v42 = vld [vmem:[%s8658_s3 + $0x88] sm:$0xff]  ;;  %v312_v43 = vld [vmem:[%s8658_s3 + $0xf8] sm:$0xff]  ;;  %v315_v44 = vld [vmem:[%s8658_s3 + $0x110] sm:$0xff]  ;;  %v6346_v46 = vpack.c.bf16 %v308_v38, %v305_v31 }
  0x1d   :  { %4942 = vmatpush1.bf16.msra.mxu0 %v6169_v18  ;;  %v311_v47 = vld [vmem:[%s8658_s3 + $0xf0] sm:$0xff]  ;;  %v6355_v51 = vpack.c.bf16 %v315_v44, %v312_v43  ;;  %v314_v54 = vld [vmem:[%s8658_s3 + $0x108] sm:$0xff]  ;;  %v301_v55 = vld [vmem:[%s8658_s3 + $0xa0] sm:$0xff] }
  0x1e   :  { %4944 = vmatprep.subr.bf16.mxu0 %v6181_v24  ;;  %4964 = vmatpush3.bf16.msra.mxu1 %v6207_v39  ;;  %v304_v56 = vld [vmem:[%s8658_s3 + $0xb8] sm:$0xff]  ;;  %v318_v58 = vld [vmem:[%s8658_s3 + $0x128] sm:$0xff]  ;;  %v321_v59 = vld [vmem:[%s8658_s3 + $0x140] sm:$0xff]  ;;  %v6374_v61 = vpack.c.bf16 %v314_v54, %v311_v47 }
  0x1f   :  { %4965 = vmatprep.subr.bf16.mxu1 %v5929_v3  ;;  %v317_v6 = vld [vmem:[%s8658_s3 + $0x120] sm:$0xff]  ;;  %v6380_v7 = vpack.c.bf16 %v304_v56, %v301_v55  ;;  %v6383_v8 = vpack.c.bf16 %v321_v59, %v318_v58  ;;  %v320_v11 = vld [vmem:[%s8658_s3 + $0x138] sm:$0xff]  ;;  %v307_v12 = vld [vmem:[%s8658_s3 + $0xd0] sm:$0xff] }
  0x20   :  { %v310_v14 = vld [vmem:[%s8658_s3 + $0xe8] sm:$0xff]  ;;  %v324_v20 = vld [vmem:[%s8658_s3 + $0x158] sm:$0xff]  ;;  %v327_v25 = vld [vmem:[%s8658_s3 + $0x170] sm:$0xff]  ;;  %v6402_v26 = vpack.c.bf16 %v320_v11, %v317_v6 }
  0x21   :  { %4946 = vmatpush1.bf16.msra.mxu0 %v6201_v34  ;;  %v323_v27 = vld [vmem:[%s8658_s3 + $0x150] sm:$0xff]  ;;  %v6408_v28 = vpack.c.bf16 %v310_v14, %v307_v12  ;;  %v6411_v31 = vpack.c.bf16 %v327_v25, %v324_v20  ;;  %v326_v38 = vld [vmem:[%s8658_s3 + $0x168] sm:$0xff]  ;;  %v6441_v55 = vld [vmem:[%s8659_s1] sm:$0xff] }
  0x22   :  { %4972 = vmatprep.subr.bf16.mxu0 %v6210_v40  ;;  %4967 = vmatpush3.bf16.msra.mxu1 %v6237_v52  ;;  %v6424_v43 = vpack.c.bf16 %v326_v38, %v323_v27  ;;  %v319_v47 = vld [vmem:[%s8658_s3 + $0x130] sm:$0xff]  ;;  %v322_v54 = vld [vmem:[%s8658_s3 + $0x148] sm:$0xff]  ;;  %v325_v58 = vld [vmem:[%s8658_s3 + $0x160] sm:$0xff] }
  0x23   :  { %4968 = vmatprep.subr.bf16.mxu1 %v5929_v3  ;;  %v6444_v56 = vpack.c.bf16 %v322_v54, %v319_v47  ;;  %v328_v59 = vld [vmem:[%s8658_s3 + $0x178] sm:$0xff] }
  0x24   :  { %205 = vmatmul.mubr.f32.vlgmr.msra.gmra.mrb[0].mxu0 %v138_v48  ;;  %v6456_v6 = vpack.c.bf16 %v328_v59, %v325_v58 }
  0x25   :  { %4974 = vmatpush1.bf16.msra.mxu0 %v6231_v50  ;;  %393 = vmatprep.mubr.f32.mxu0 %v5930_v4 }
  0x26   :  { %4976 = vmatprep.subr.bf16.mxu0 %v6240_v53  ;;  %4970 = vmatpush3.bf16.msra.mxu1 %v6265_v63 }
  0x27   :  { %5003 = vmatprep.subr.bf16.mxu1 %v5929_v3 }
  0x29   :  { %4978 = vmatpush1.bf16.msra.mxu0 %v6259_v60  ;;  %4388 = vmatmul.mubr.f32.vlgmr.msra.gmra.mrb[0].mxu1 %v138_v48  ;;  %v6352_v48 = vpack.c.bf16 %v298_v42, %v295_v41  ;;  %v313_v41 = vld [vmem:[%s8658_s3 + $0x100] sm:$0xff]  ;;  %v316_v42 = vld [vmem:[%s8658_s3 + $0x118] sm:$0xff] }
  0x2a   :  { %4980 = vmatprep.subr.bf16.mxu0 %v6268_v0  ;;  %5005 = vmatpush3.bf16.msra.mxu1 %v6294_v17  ;;  %v6427_v44 = vpack.c.bf16 %v316_v42, %v313_v41 }
  0x2b   :  { %5006 = vmatprep.subr.bf16.mxu1 %v5929_v3  ;;  %4422 = vmatprep.mubr.msk.f32.mxu1 %vm5931_vm0, %v5930_v4 }
  0x2d   :  { %4982 = vmatpush1.bf16.msra.mxu0 %v6288_v13 }
  0x2e   :  { %4984 = vmatprep.subr.bf16.mxu0 %v6297_v19  ;;  %5008 = vmatpush3.bf16.msra.mxu1 %v6322_v33 }
  0x2f   :  { %5009 = vmatprep.subr.bf16.mxu1 %v5929_v3 }
  0x31   :  { %4986 = vmatpush1.bf16.msra.mxu0 %v6316_v30 }
  0x32   :  { %4988 = vmatprep.subr.bf16.mxu0 %v6325_v37  ;;  %5011 = vmatpush3.bf16.msra.mxu1 %v6352_v48 }
  0x33   :  { %5012 = vmatprep.subr.bf16.mxu1 %v5929_v3 }
  0x35   :  { %4990 = vmatpush1.bf16.msra.mxu0 %v6346_v46 }
  0x36   :  { %4992 = vmatprep.subr.bf16.mxu0 %v6355_v51  ;;  %5014 = vmatpush3.bf16.msra.mxu1 %v6380_v7 }
  0x37   :  { %5015 = vmatprep.subr.bf16.mxu1 %v5929_v3 }
  0x39   :  { %4994 = vmatpush1.bf16.msra.mxu0 %v6374_v61 }
  0x3a   :  { %4996 = vmatprep.subr.bf16.mxu0 %v6383_v8  ;;  %5017 = vmatpush3.bf16.msra.mxu1 %v6408_v28 }
  0x3b   :  { %5018 = vmatprep.subr.bf16.mxu1 %v5929_v3 }
  0x3d   :  { %4998 = vmatpush1.bf16.msra.mxu0 %v6402_v26 }
  0x3e   :  { %5000 = vmatprep.subr.bf16.mxu0 %v6411_v31  ;;  %5020 = vmatpush3.bf16.msra.mxu1 %v6427_v44 }
  0x3f   :  { %5021 = vmatprep.subr.bf16.mxu1 %v5929_v3 }
  0x41   :  { %5002 = vmatpush1.bf16.msra.mxu0 %v6424_v43 }
  0x42   :  { %5028 = vmatprep.subr.bf16.mxu0 %v5979_v5  ;;  %5023 = vmatpush3.bf16.msra.mxu1 %v6444_v56  ;;  %v558_v5 = vld [vmem:[%s8657_s0 + $0x9] sm:$0x1] }
  0x43   :  { %5024 = vmatprep.subr.bf16.mxu1 %v5929_v3 }
  0x44   :  { %394 = vmatmul.mubr.f32.vlgmr.msra.gmra.mrb[0].mxu0 %v6441_v55 }
  0x45   :  { %5030 = vmatpush1.bf16.msra.mxu0 %v5990_v9  ;;  %700 = vmatprep.mubr.f32.mxu0 %v5930_v4  ;;  %v559_v9 = vld [vmem:[%s8657_s0 + $0x11] sm:$0x1] }
  0x46   :  { %5032 = vmatprep.subr.bf16.mxu0 %v5992_v10  ;;  %5026 = vmatpush3.bf16.msra.mxu1 %v6456_v6  ;;  %v621_v10 = vrot.slane %v558_v5, 7 }
  0x47   :  { %5059 = vmatprep.subr.bf16.mxu1 %v5929_v3 }
  0x49   :  { %5034 = vmatpush1.bf16.msra.mxu0 %v6010_v15  ;;  %4423 = vmatmul.mubr.f32.vlgmr.msra.gmra.mrb[2].mxu1 %v6441_v55  ;;  %v557_v15 = vld [vmem:[%s8657_s0 + $0x1] sm:$0x1] }
  0x4a   :  { %5036 = vmatprep.subr.bf16.mxu0 %v6013_v16  ;;  %5061 = vmatpush3.bf16.msra.mxu1 %v6051_v29  ;;  %v560_v16 = vld [vmem:[%s8657_s0 + $0x19] sm:$0x1] }
  0x4b   :  { %5062 = vmatprep.subr.bf16.mxu1 %v5929_v3  ;;  %4457 = vmatprep.mubr.msk.f32.mxu1 %vm5931_vm0, %v5930_v4 }
  0x4d   :  { %5038 = vmatpush1.bf16.msra.mxu0 %v6028_v21  ;;  %v623_v21 = vrot.slane %v559_v9, 6  ;;  %v5932_v9 = vmov 1966171168  }
  0x4e   :  { %5040 = vmatprep.subr.bf16.mxu0 %v6034_v23  ;;  %5064 = vmatpush3.bf16.msra.mxu1 %v6069_v35  ;;  %v561_v23 = vld [vmem:[%s8657_s0 + $0x21] sm:$0x1] }
  0x4f   :  { %5065 = vmatprep.subr.bf16.mxu1 %v5929_v3 }
  0x51   :  { %5042 = vmatpush1.bf16.msra.mxu0 %v6060_v32  ;;  %v622_v32 = vsel %vm119_vm1, %v621_v10, %v557_v15  ;;  %v494_v10 = vunpack.c.l.s4 %v5932_v9  ;;  %v1098_v9 = vld [vmem:[%s8656_s2 + $0x128] sm:$0xff] }
  0x52   :  { %5044 = vmatprep.subr.bf16.mxu0 %v6072_v36  ;;  %5067 = vmatpush3.bf16.msra.mxu1 %v6124_v57  ;;  %v625_v36 = vrot.slane %v560_v16, 5 }
  0x53   :  { %5068 = vmatprep.subr.bf16.mxu1 %v5929_v3  ;;  %v495_v15 = vunpack.c.0.s8 %v494_v10  ;;  %v1101_v10 = vld [vmem:[%s8656_s2 + $0x140] sm:$0xff] }
  0x55   :  { %5046 = vmatpush1.bf16.msra.mxu0 %v6094_v45  ;;  %v562_v45 = vld [vmem:[%s8657_s0 + $0x29] sm:$0x1] }
  0x56   :  { %5048 = vmatprep.subr.bf16.mxu0 %v6104_v49  ;;  %5070 = vmatpush3.bf16.msra.mxu1 %v6143_v1  ;;  %v624_v49 = vsel %vm122_vm2, %v623_v21, %v622_v32  ;;  %v1064_v32 = vld [vmem:[%s8656_s2 + $0x18] sm:$0xff] }
  0x57   :  { %5071 = vmatprep.subr.bf16.mxu1 %v5929_v3 }
  0x59   :  { %5050 = vmatpush1.bf16.msra.mxu0 %v6136_v62  ;;  %v627_v62 = vrot.slane %v561_v23, 4  ;;  %v1061_v23 = vld [vmem:[%s8656_s2] sm:$0xff] }
  0x5a   :  { %5052 = vmatprep.subr.bf16.mxu0 %v6146_v2  ;;  %5073 = vmatpush3.bf16.msra.mxu1 %v6178_v22  ;;  %v563_v2 = vld [vmem:[%s8657_s0 + $0x31] sm:$0x1] }
  0x5b   :  { %5074 = vmatprep.subr.bf16.mxu1 %v5929_v3  ;;  %v631_v11 = vrot.slane %v563_v2, 2  ;;  %v6604_v2 = vpack.c.bf16 %v1064_v32, %v1061_v23  ;;  %v1054_v32 = vld [vmem:[%s8657_s0 + $0xa] sm:$0x1] }
  0x5d   :  { %5054 = vmatpush1.bf16.msra.mxu0 %v6169_v18  ;;  %v626_v18 = vsel %vm125_vm3, %v625_v36, %v624_v49  ;;  %v1071_v49 = vld [vmem:[%s8656_s2 + $0x50] sm:$0xff] }
  0x5e   :  { %5056 = vmatprep.subr.bf16.mxu0 %v6181_v24  ;;  %5076 = vmatpush3.bf16.msra.mxu1 %v6207_v39  ;;  %v629_v24 = vrot.slane %v562_v45, 3  ;;  %v1068_v45 = vld [vmem:[%s8656_s2 + $0x38] sm:$0xff] }
  0x5f   :  { %5077 = vmatprep.subr.bf16.mxu1 %v5929_v3 }
  0x61   :  { %5058 = vmatpush1.bf16.msra.mxu0 %v6201_v34  ;;  %v564_v34 = vld [vmem:[%s8657_s0 + $0x39] sm:$0x1] }
  0x62   :  { %5084 = vmatprep.subr.bf16.mxu0 %v6210_v40  ;;  %5079 = vmatpush3.bf16.msra.mxu1 %v6237_v52  ;;  %v628_v40 = vsel %vm128_vm4, %v627_v62, %v626_v18  ;;  %v633_v14 = vrot.slane %v564_v34, 1  ;;  %v1067_v18 = vld [vmem:[%s8656_s2 + $0x30] sm:$0xff]  ;;  %v6611_v34 = vpack.c.bf16 %v1071_v49, %v1068_v45  ;;  %v1117_v45 = vrot.slane %v1054_v32, 7  ;;  %v1104_v49 = vld [vmem:[%s8656_s2 + $0x158] sm:$0xff]  ;;  %v1282_v32 = vld [vmem:[%s8658_s3 + $0x48] sm:$0xff] }
  0x63   :  { %5080 = vmatprep.subr.bf16.mxu1 %v5929_v3  ;;  %v630_v12 = vsel %vm131_vm5, %v629_v24, %v628_v40  ;;  %v1070_v40 = vld [vmem:[%s8656_s2 + $0x48] sm:$0xff] }
  0x64   :  { %v632_v20 = vsel %vm134_vm6, %v631_v11, %v630_v12  ;;  %v1074_v11 = vld [vmem:[%s8656_s2 + $0x68] sm:$0xff]  ;;  %v1077_v12 = vld [vmem:[%s8656_s2 + $0x80] sm:$0xff] }
  0x65   :  { %v634_v25 = vsel %vm137_vm7, %v633_v14, %v632_v20 }
  0x66   :  { %5082 = vmatpush3.bf16.msra.mxu1 %v6265_v63  ;;  %701 = vmatmul.mubr.f32.vlgmr.msra.gmra.mrb[2].mxu0 %v634_v25 }
  0x67   :  { %5115 = vmatprep.subr.bf16.mxu1 %v5929_v3  ;;  %5086 = vmatpush1.bf16.msra.mxu0 %v6231_v50  ;;  %v1062_v50 = vld [vmem:[%s8656_s2 + $0x8] sm:$0xff] }
  0x68   :  { %5088 = vmatprep.subr.bf16.mxu0 %v6240_v53  ;;  %889 = vmatprep.mubr.f32.mxu0 %v5930_v4  ;;  %v1065_v53 = vld [vmem:[%s8656_s2 + $0x20] sm:$0xff] }
  0x69   :  { %4458 = vmatmul.mubr.f32.vlgmr.msra.gmra.mrb[4].mxu1 %v634_v25  ;;  %v6630_v25 = vpack.c.bf16 %v1070_v40, %v1067_v18  ;;  %v1053_v18 = vld [vmem:[%s8657_s0 + $0x2] sm:$0x1] }
  0x6a   :  { %5117 = vmatpush3.bf16.msra.mxu1 %v6294_v17  ;;  %4492 = vmatprep.mubr.msk.f32.mxu1 %vm5931_vm0, %v5930_v4  ;;  %v31_v17 = vlaneseq }
  0x6b   :  { %5118 = vmatprep.subr.bf16.mxu1 %v5929_v3  ;;  %5090 = vmatpush1.bf16.msra.mxu0 %v6259_v60  ;;  %v6568_v60 = vpack.c.bf16 %v1065_v53, %v1062_v50  ;;  %v6632_v50 = vpack.c.bf16 %v1077_v12, %v1074_v11  ;;  %v1073_v53 = vld [vmem:[%s8656_s2 + $0x60] sm:$0xff]  ;;  %v1103_v12 = vld [vmem:[%s8656_s2 + $0x150] sm:$0xff] }
  0x6c   :  { %5092 = vmatprep.subr.bf16.mxu0 %v6268_v0 }
  0x6e   :  { %5120 = vmatpush3.bf16.msra.mxu1 %v6322_v33  ;;  %v29_v33 = vld [vmem:[%s8660_s4] sm:$0x7] }
  0x6f   :  { %5121 = vmatprep.subr.bf16.mxu1 %v5929_v3  ;;  %5094 = vmatpush1.bf16.msra.mxu0 %v6288_v13 }
  0x70   :  { %5096 = vmatprep.subr.bf16.mxu0 %v6297_v19  ;;  %v32_v19 = vshrl.u32 %v31_v17, 7 }
  0x72   :  { %5123 = vmatpush3.bf16.msra.mxu1 %v6352_v48  ;;  %v41_v42 = vsub.s32 2, %v32_v19  ;;  %v6602_v62 = vsub.s32 %v495_v15, %v32_v19  ;;  %v6755_v15 = vpack.c.bf16 %v1101_v10, %v1098_v9  ;;  %v1280_v9 = vld [vmem:[%s8658_s3 + $0x38] sm:$0xff]  ;;  %v1283_v10 = vld [vmem:[%s8658_s3 + $0x50] sm:$0xff] }
  0x73   :  { %5124 = vmatprep.subr.bf16.mxu1 %v5929_v3  ;;  %5098 = vmatpush1.bf16.msra.mxu0 %v6316_v30  ;;  %v33_v30 = vsub.s32 0, %v32_v19 }
  0x74   :  { %5100 = vmatprep.subr.bf16.mxu0 %v6325_v37 }
  0x75   :  { %v6574_v37 = vrot.slane %v29_v33, %v33_v30  ;;  %v1083_v30 = vld [vmem:[%s8656_s2 + $0xb0] sm:$0xff] }
  0x76   :  { %5126 = vmatpush3.bf16.msra.mxu1 %v6380_v7 }
  0x77   :  { %5127 = vmatprep.subr.bf16.mxu1 %v5929_v3  ;;  %5102 = vmatpush1.bf16.msra.mxu0 %v6346_v46 }
  0x78   :  { %5104 = vmatprep.subr.bf16.mxu0 %v6355_v51  ;;  %v37_v51 = vsub.s32 1, %v32_v19  ;;  %v1080_v19 = vld [vmem:[%s8656_s2 + $0x98] sm:$0xff] }
  0x7a   :  { %5129 = vmatpush3.bf16.msra.mxu1 %v6408_v28 }
  0x7b   :  { %5130 = vmatprep.subr.bf16.mxu1 %v5929_v3  ;;  %5106 = vmatpush1.bf16.msra.mxu0 %v6374_v61 }
  0x7c   :  { %5108 = vmatprep.subr.bf16.mxu0 %v6383_v8  ;;  %v6577_v8 = vrot.slane %v29_v33, %v37_v51 }
  0x7e   :  { %5132 = vmatpush3.bf16.msra.mxu1 %v6427_v44  ;;  %v6585_v44 = vrot.slane %v29_v33, %v41_v42 }
  0x7f   :  { %5133 = vmatprep.subr.bf16.mxu1 %v5929_v3  ;;  %5110 = vmatpush1.bf16.msra.mxu0 %v6402_v26 }
  0x80   :  { %5112 = vmatprep.subr.bf16.mxu0 %v6411_v31 }
  0x82   :  { %5135 = vmatpush3.bf16.msra.mxu1 %v6444_v56 }
  0x83   :  { %5136 = vmatprep.subr.bf16.mxu1 %v5929_v3  ;;  %5114 = vmatpush1.bf16.msra.mxu0 %v6424_v43  ;;  %v6583_v43 = vld [vmem:[%s8661_s5] ss:$0 sm:$0xff] }
  0x84   :  { %5140 = vmatprep.subr.bf16.mxu0 %v6568_v60 }
  0x86   :  { %5138 = vmatpush3.bf16.msra.mxu1 %v6456_v6 }
  0x87   :  { %5171 = vmatprep.subr.bf16.mxu1 %v5929_v3 }
  0xfc   :  { %v277_v0 = vpop.f32.mrb[0].mxu1 }
  0xfd   :  { %v4389_v13 = vpop.f32.mrb[1].mxu1  ;;  %v278_v58 = vadd.f32 %v277_v0, %v6585_v44 }
 0x117   :  { %v395_v46 = vpop.f32.mrb[0].mxu0 }
 0x118   :  { %v5811_v48 = vadd.f32 %v395_v46, %v6574_v37  ;;  %v397_v61 = vpop.f32.mrb[1].mxu0 }
 0x119   :  { %v5812_v27 = vadd.f32 %v397_v61, %v6577_v8 }
 0x11a   :  { %v4035_v7 = vmul.f32 -1.442695, %v5811_v48 }
 0x11b   :  { %v4036_v31 = vmul.f32 -1.442695, %v5812_v27 }
 0x11c   :  { %5847 = vpow2.f32 %v4035_v7  ;;  %v466_v26 = vpop.f32.mrb[2].mxu1  ;;  %v6668_v7 = vpack.c.bf16 %v1083_v30, %v1080_v19  ;;  %v1059_v30 = vld [vmem:[%s8657_s0 + $0x32] sm:$0x1] }
 0x11d   :  { %v4424_v28 = vpop.f32.mrb[3].mxu1  ;;  %5849 = vpow2.f32 %v4036_v31  ;;  %v484_v47 = vadd.f32 %v6583_v43, %v466_v26  ;;  %v1082_v31 = vld [vmem:[%s8656_s2 + $0xa8] sm:$0xff] }
 0x126   :  { %v5848_v38 = vpop.eup %5847 }
 0x127   :  { %v474_v41 = vadd.f32 1.0, %v5848_v38  ;;  %v5850_v54 = vpop.eup %5849 }
 0x128   :  { %v481_v6 = vadd.f32 1.0, %v5850_v54  ;;  %v1092_v54 = vld [vmem:[%s8656_s2 + $0xf8] sm:$0xff] }
 0x129   :  { %5851 = vrcp.f32 %v474_v41 }
 0x133   :  { %v5852_v56 = vpop.eup %5851 }
 0x134   :  { %v485_v59 = vmul.f32 %v5852_v56, %v484_v47  ;;  %v1095_v56 = vld [vmem:[%s8656_s2 + $0x110] sm:$0xff] }
 0x136   :  { %v486_v5 = vadd.f32 %v485_v59, %v278_v58  ;;  %v6737_v58 = vpack.c.bf16 %v1095_v56, %v1092_v54  ;;  %v1091_v59 = vld [vmem:[%s8656_s2 + $0xf0] sm:$0xff]  ;;  %v1278_v54 = vld [vmem:[%s8658_s3 + $0x28] sm:$0xff] }
 0x138   :  { %5853 = vtanh.f32 %v486_v5 }
 0x139   :  { %5855 = vrcp.f32 %v481_v6  ;;  %v1094_v6 = vld [vmem:[%s8656_s2 + $0x108] sm:$0xff] }
 0x13a   :  { %v6745_v5 = vpack.c.bf16 %v1094_v6, %v1091_v59 }
 0x142   :  { %v5854_v16 = vpop.eup %5853 }
 0x143   :  { %v488_v21 = vsub.f32 %v6441_v55, %v5854_v16  ;;  %v5856_v36 = vpop.eup %5855 }
 0x145   :  { %v489_v55 = vmul.f32 %v5856_v36, %v488_v21  ;;  %v1100_v21 = vld [vmem:[%s8656_s2 + $0x138] sm:$0xff]  ;;  %v1055_v36 = vld [vmem:[%s8657_s0 + $0x12] sm:$0x1] }
 0x146   :  { %v1119_v40 = vrot.slane %v1055_v36, 6  ;;  %v1281_v36 = vld [vmem:[%s8658_s3 + $0x40] sm:$0xff] }
 0x147   :  { %v6609_v24 = vadd.f32 %v5854_v16, %v489_v55  ;;  %v1097_v16 = vld [vmem:[%s8656_s2 + $0x120] sm:$0xff]  ;;  %v1107_v55 = vld [vmem:[%s8656_s2 + $0x170] sm:$0xff] }
 0x148   :  { %v6763_v23 = vpack.c.bf16 %v1100_v21, %v1097_v16  ;;  %v6782_v11 = vpack.c.bf16 %v1107_v55, %v1104_v49  ;;  %v6847_v16 = vpack.c.bf16 %v1283_v10, %v1280_v9  ;;  %v1279_v21 = vld [vmem:[%s8658_s3 + $0x30] sm:$0xff]  ;;  %v1284_v49 = vld [vmem:[%s8658_s3 + $0x58] sm:$0xff] }
 0x149   :  { %v492_v14 = vcombine.high %v6609_v24, %v6609_v24  ;;  %v499_v20 = vrot.slane %v6609_v24, %v6602_v62  ;;  %890 = vmatmul.mubr.f32.vlgmr.msra.gmra.mrb[2].mxu0 %v6609_v24  ;;  %4493 = vmatmul.mubr.f32.vlgmr.msra.gmra.mrb[6].mxu1 %v6609_v24  ;;  %v6867_v55 = vpack.c.bf16 %v1284_v49, %v1281_v36  ;;  %v1307_v9 = vld [vmem:[%s8658_s3 + $0x110] sm:$0xff]  ;;  %v1306_v36 = vld [vmem:[%s8658_s3 + $0x108] sm:$0xff]  ;;  %v1305_v49 = vld [vmem:[%s8658_s3 + $0x100] sm:$0xff] }
 0x14a   :  { %5142 = vmatpush1.bf16.msra.mxu0 %v6604_v2  ;;  %5173 = vmatpush3.bf16.msra.mxu1 %v6051_v29  ;;  %v1076_v29 = vld [vmem:[%s8656_s2 + $0x78] sm:$0xff] }
 0x14b   :  { %v506_v0 = vrot.slane %v492_v14, %v6602_v62  ;;  %v507_v13 = vcombine.high %v499_v20, %v499_v20  ;;  %v515_v17 = vrot.slane %v499_v20, %v6602_v62  ;;  %4037 = vst.sshfl [vmem:[%s8662_s6] sm:$0x1 pattern:$0x73625140] %v499_v20  ;;  %5144 = vmatprep.subr.bf16.mxu0 %v6611_v34  ;;  %v1106_v14 = vld [vmem:[%s8656_s2 + $0x168] sm:$0xff]  ;;  %v1056_v20 = vld [vmem:[%s8657_s0 + $0x1a] sm:$0x1] }
 0x14c   :  { %5174 = vmatprep.subr.bf16.mxu1 %v5929_v3  ;;  %1196 = vmatprep.mubr.f32.mxu0 %v5930_v4  ;;  %v6666_v61 = vpack.c.bf16 %v1076_v29, %v1073_v53  ;;  %v1118_v53 = vsel %vm119_vm1, %v1117_v45, %v1053_v18  ;;  %v1121_v19 = vrot.slane %v1056_v20, 5  ;;  %v6860_v45 = vpack.c.bf16 %v1282_v32, %v1279_v21  ;;  %v1286_v18 = vld [vmem:[%s8658_s3 + $0x68] sm:$0xff]  ;;  %v1288_v20 = vld [vmem:[%s8658_s3 + $0x78] sm:$0xff]  ;;  %v1303_v32 = vld [vmem:[%s8658_s3 + $0xf0] sm:$0xff] }
 0x14d   :  { %4527 = vmatprep.mubr.msk.f32.mxu1 %vm5931_vm0, %v5930_v4  ;;  %v508_v33 = vcombine.high %v506_v0, %v506_v0  ;;  %v522_v46 = vrot.slane %v506_v0, %v6602_v62  ;;  %v529_v48 = vrot.slane %v507_v13, %v6602_v62  ;;  %v537_v51 = vcombine.high %v515_v17, %v515_v17  ;;  %v1058_v17 = vld [vmem:[%s8657_s0 + $0x2a] sm:$0x1] }
 0x14e   :  { %4038 = vst.sshfl [vmem:[%s8662_s6 + $0x8] sm:$0x1 pattern:$0x73625140] %v507_v13  ;;  %5146 = vmatpush1.bf16.msra.mxu0 %v6630_v25  ;;  %5176 = vmatpush3.bf16.msra.mxu1 %v6069_v35  ;;  %v1079_v35 = vld [vmem:[%s8656_s2 + $0x90] sm:$0xff]  ;;  %v1120_v29 = vsel %vm122_vm2, %v1119_v40, %v1118_v53  ;;  %v1289_v40 = vld [vmem:[%s8658_s3 + $0x80] sm:$0xff] }
 0x14f   :  { %4039 = vst.sshfl [vmem:[%s8662_s6 + $0x20] sm:$0x1 pattern:$0x73625140] %v506_v0  ;;  %v536_v26 = vrot.slane %v508_v33, %v6602_v62  ;;  %v538_v27 = vcombine.high %v522_v46, %v522_v46  ;;  %v539_v28 = vcombine.high %v529_v48, %v529_v48  ;;  %551 = vst [vmem:[%s8662_s6 + $0x10] sm:$0x1] %v537_v51  ;;  %5148 = vmatprep.subr.bf16.mxu0 %v6632_v50 }
 0x150   :  { %4040 = vst.sshfl [vmem:[%s8662_s6 + $0x28] sm:$0x1 pattern:$0x73625140] %v508_v33  ;;  %5177 = vmatprep.subr.bf16.mxu1 %v5929_v3  ;;  %v6693_v41 = vpack.c.bf16 %v1082_v31, %v1079_v35  ;;  %v6794_v0 = vpack.c.bf16 %v1106_v14, %v1103_v12  ;;  %v1057_v13 = vld [vmem:[%s8657_s0 + $0x22] sm:$0x1]  ;;  %v6878_v12 = vpack.c.bf16 %v1289_v40, %v1286_v18 }
 0x151   :  { %v540_v38 = vcombine.high %v536_v26, %v536_v26  ;;  %552 = vst [vmem:[%s8662_s6 + $0x18] sm:$0x1] %v539_v28  ;;  %555 = vst [vmem:[%s8662_s6 + $0x30] sm:$0x1] %v538_v27  ;;  %v1123_v33 = vrot.slane %v1057_v13, 4  ;;  %v1125_v46 = vrot.slane %v1058_v17, 3  ;;  %v1122_v27 = vsel %vm125_vm3, %v1121_v19, %v1120_v29 }
 0x152   :  { %5150 = vmatpush1.bf16.msra.mxu0 %v6666_v61  ;;  %5179 = vmatpush3.bf16.msra.mxu1 %v6124_v57  ;;  %v6711_v57 = vpop.f32.mrb[4].mxu1  ;;  %v1274_v48 = vld [vmem:[%s8658_s3 + $0x8] sm:$0xff]  ;;  %v1277_v51 = vld [vmem:[%s8658_s3 + $0x20] sm:$0xff]  ;;  %v1060_v26 = vld [vmem:[%s8657_s0 + $0x3a] sm:$0x1]  ;;  %v1127_v28 = vrot.slane %v1059_v30, 2 }
 0x153   :  { %556 = vst [vmem:[%s8662_s6 + $0x38] sm:$0x1] %v540_v38  ;;  %5152 = vmatprep.subr.bf16.mxu0 %v6668_v7  ;;  %5180 = vmatprep.subr.bf16.mxu1 %v5929_v3  ;;  %v6818_v35 = vpack.c.bf16 %v1277_v51, %v1274_v48  ;;  %v1124_v31 = vsel %vm128_vm4, %v1123_v33, %v1122_v27  ;;  %v1129_v38 = vrot.slane %v1060_v26, 1  ;;  %v1285_v14 = vld [vmem:[%s8658_s3 + $0x60] sm:$0xff]  ;;  %v1287_v53 = vld [vmem:[%s8658_s3 + $0x70] sm:$0xff]  ;;  %v1290_v17 = vld [vmem:[%s8658_s3 + $0x88] sm:$0xff] }
 0x154   :  { %v6891_v13 = vpack.c.bf16 %v1288_v20, %v1285_v14  ;;  %v6898_v29 = vpack.c.bf16 %v1290_v17, %v1287_v53  ;;  %v1292_v19 = vld [vmem:[%s8658_s3 + $0x98] sm:$0xff]  ;;  %v1295_v30 = vld [vmem:[%s8658_s3 + $0xb0] sm:$0xff]  ;;  %v1294_v48 = vld [vmem:[%s8658_s3 + $0xa8] sm:$0xff]  ;;  %v6984_v20 = vpack.c.bf16 %v1306_v36, %v1303_v32 }
 0x155   :  { %v6906_v33 = vpack.c.bf16 %v1295_v30, %v1292_v19  ;;  %v1293_v51 = vld [vmem:[%s8658_s3 + $0xa0] sm:$0xff]  ;;  %v1296_v27 = vld [vmem:[%s8658_s3 + $0xb8] sm:$0xff]  ;;  %v1310_v40 = vld [vmem:[%s8658_s3 + $0x128] sm:$0xff] }
 0x156   :  { %5154 = vmatpush1.bf16.msra.mxu0 %v6693_v41  ;;  %5182 = vmatpush3.bf16.msra.mxu1 %v6143_v1  ;;  %v4459_v1 = vpop.f32.mrb[5].mxu1  ;;  %v1308_v18 = vld [vmem:[%s8658_s3 + $0x118] sm:$0xff]  ;;  %v1313_v14 = vld [vmem:[%s8658_s3 + $0x140] sm:$0xff] }
 0x157   :  { %5183 = vmatprep.subr.bf16.mxu1 %v5929_v3  ;;  %v1273_v1 = vld [vmem:[%s8658_s3] sm:$0xff]  ;;  %v6986_v53 = vpack.c.bf16 %v1308_v18, %v1305_v49  ;;  %v6993_v19 = vpack.c.bf16 %v1313_v14, %v1310_v40  ;;  %v1312_v30 = vld [vmem:[%s8658_s3 + $0x138] sm:$0xff] }
 0x158   :  { %v1309_v17 = vld [vmem:[%s8658_s3 + $0x120] sm:$0xff] }
 0x15a   :  { %5185 = vmatpush3.bf16.msra.mxu1 %v6178_v22  ;;  %v1086_v22 = vld [vmem:[%s8656_s2 + $0xc8] sm:$0xff] }
 0x15b   :  { %5186 = vmatprep.subr.bf16.mxu1 %v5929_v3 }
 0x15e   :  { %5188 = vmatpush3.bf16.msra.mxu1 %v6207_v39  ;;  %v1089_v39 = vld [vmem:[%s8656_s2 + $0xe0] sm:$0xff] }
 0x15f   :  { %5189 = vmatprep.subr.bf16.mxu1 %v5929_v3  ;;  %v6719_v42 = vpack.c.bf16 %v1089_v39, %v1086_v22  ;;  %v1276_v22 = vld [vmem:[%s8658_s3 + $0x18] sm:$0xff]  ;;  %v1275_v39 = vld [vmem:[%s8658_s3 + $0x10] sm:$0xff] }
 0x160   :  { %v6838_v59 = vpack.c.bf16 %v1278_v54, %v1275_v39  ;;  %v1300_v39 = vld [vmem:[%s8658_s3 + $0xd8] sm:$0xff] }
 0x161   :  { %5156 = vmatprep.subr.bf16.mxu0 %v6719_v42 }
 0x162   :  { %5191 = vmatpush3.bf16.msra.mxu1 %v6237_v52  ;;  %v1085_v52 = vld [vmem:[%s8656_s2 + $0xc0] sm:$0xff] }
 0x163   :  { %5192 = vmatprep.subr.bf16.mxu1 %v5929_v3 }
 0x166   :  { %5194 = vmatpush3.bf16.msra.mxu1 %v6265_v63  ;;  %v1088_v63 = vld [vmem:[%s8656_s2 + $0xd8] sm:$0xff] }
 0x167   :  { %5227 = vmatprep.subr.bf16.mxu1 %v5929_v3  ;;  %v6727_v47 = vpack.c.bf16 %v1088_v63, %v1085_v52  ;;  %v1126_v52 = vsel %vm131_vm5, %v1125_v46, %v1124_v31  ;;  %v6831_v63 = vpack.c.bf16 %v1276_v22, %v1273_v1  ;;  %v1291_v46 = vld [vmem:[%s8658_s3 + $0x90] sm:$0xff]  ;;  %v1298_v31 = vld [vmem:[%s8658_s3 + $0xc8] sm:$0xff]  ;;  %v1297_v22 = vld [vmem:[%s8658_s3 + $0xc0] sm:$0xff] }
 0x168   :  { %v1128_v56 = vsel %vm134_vm6, %v1127_v28, %v1126_v52  ;;  %v6919_v26 = vpack.c.bf16 %v1294_v48, %v1291_v46  ;;  %v6926_v28 = vpack.c.bf16 %v1296_v27, %v1293_v51  ;;  %v1299_v52 = vld [vmem:[%s8658_s3 + $0xd0] sm:$0xff]  ;;  %v6947_v54 = vpack.c.bf16 %v1300_v39, %v1297_v22  ;;  %v1314_v48 = vld [vmem:[%s8658_s3 + $0x148] sm:$0xff]  ;;  %v1316_v51 = vld [vmem:[%s8658_s3 + $0x158] sm:$0xff] }
 0x169   :  { %5158 = vmatpush1.bf16.msra.mxu0 %v6727_v47  ;;  %v1130_v6 = vsel %vm137_vm7, %v1129_v38, %v1128_v56  ;;  %v1301_v38 = vld [vmem:[%s8658_s3 + $0xe0] sm:$0xff]  ;;  %v1302_v56 = vld [vmem:[%s8658_s3 + $0xe8] sm:$0xff]  ;;  %v1311_v46 = vld [vmem:[%s8658_s3 + $0x130] sm:$0xff] }
 0x16a   :  { %5160 = vmatprep.subr.bf16.mxu0 %v6737_v58  ;;  %4528 = vmatmul.mubr.f32.vlgmr.msra.gmra.mrb[8].mxu1 %v1130_v6  ;;  %v6934_v1 = vpack.c.bf16 %v1301_v38, %v1298_v31  ;;  %v6960_v10 = vpack.c.bf16 %v1302_v56, %v1299_v52  ;;  %v1319_v27 = vld [vmem:[%s8658_s3 + $0x170] sm:$0xff]  ;;  %v7012_v31 = vpack.c.bf16 %v1312_v30, %v1309_v17  ;;  %v1318_v52 = vld [vmem:[%s8658_s3 + $0x168] sm:$0xff]  ;;  %v1317_v56 = vld [vmem:[%s8658_s3 + $0x160] sm:$0xff] }
 0x16b   :  { %5229 = vmatpush3.bf16.msra.mxu1 %v6838_v59  ;;  %4562 = vmatprep.mubr.msk.f32.mxu1 %vm5931_vm0, %v5930_v4  ;;  %v7014_v38 = vpack.c.bf16 %v1314_v48, %v1311_v46  ;;  %v1315_v22 = vld [vmem:[%s8658_s3 + $0x150] sm:$0xff]  ;;  %v7021_v39 = vpack.c.bf16 %v1319_v27, %v1316_v51 }
 0x16c   :  { %5230 = vmatprep.subr.bf16.mxu1 %v5929_v3 }
 0x16d   :  { %5162 = vmatpush1.bf16.msra.mxu0 %v6745_v5 }
 0x16e   :  { %5164 = vmatprep.subr.bf16.mxu0 %v6755_v15 }
 0x16f   :  { %5232 = vmatpush3.bf16.msra.mxu1 %v6867_v55 }
 0x170   :  { %5233 = vmatprep.subr.bf16.mxu1 %v5929_v3 }
 0x171   :  { %5166 = vmatpush1.bf16.msra.mxu0 %v6763_v23 }
 0x172   :  { %5168 = vmatprep.subr.bf16.mxu0 %v6782_v11 }
 0x173   :  { %5235 = vmatpush3.bf16.msra.mxu1 %v6898_v29 }
 0x174   :  { %5236 = vmatprep.subr.bf16.mxu1 %v5929_v3 }
 0x175   :  { %5170 = vmatpush1.bf16.msra.mxu0 %v6794_v0 }
 0x176   :  { %5196 = vmatprep.subr.bf16.mxu0 %v6818_v35 }
 0x177   :  { %5238 = vmatpush3.bf16.msra.mxu1 %v6926_v28 }
 0x178   :  { %1197 = vmatmul.mubr.f32.vlgmr.msra.gmra.mrb[4].mxu0 %v1130_v6  ;;  %v1304_v6 = vld [vmem:[%s8658_s3 + $0xf8] sm:$0xff]  ;;  %5239 = vmatprep.subr.bf16.mxu1 %v5929_v3 }
 0x179   :  { %5198 = vmatpush1.bf16.msra.mxu0 %v6831_v63  ;;  %1385 = vmatprep.mubr.f32.mxu0 %v5930_v4  ;;  %v6962_v21 = vpack.c.bf16 %v1307_v9, %v1304_v6  ;;  %v1320_v6 = vld [vmem:[%s8658_s3 + $0x178] sm:$0xff]  ;;  %v7034_v9 = vpack.c.bf16 %v1318_v52, %v1315_v22  ;;  %v774_v52 = vadd.f32 %v6711_v57, %v6585_v44 }
 0x17a   :  { %5200 = vmatprep.subr.bf16.mxu0 %v6847_v16  ;;  %v7036_v32 = vpack.c.bf16 %v1320_v6, %v1317_v56 }
 0x17b   :  { %5241 = vmatpush3.bf16.msra.mxu1 %v6960_v10 }
 0x17c   :  { %5242 = vmatprep.subr.bf16.mxu1 %v5929_v3 }
 0x17d   :  { %5202 = vmatpush1.bf16.msra.mxu0 %v6860_v45 }
 0x17e   :  { %5204 = vmatprep.subr.bf16.mxu0 %v6878_v12 }
 0x17f   :  { %5244 = vmatpush3.bf16.msra.mxu1 %v6986_v53 }
 0x180   :  { %5245 = vmatprep.subr.bf16.mxu1 %v5929_v3 }
 0x181   :  { %5206 = vmatpush1.bf16.msra.mxu0 %v6891_v13 }
 0x182   :  { %5208 = vmatprep.subr.bf16.mxu0 %v6906_v33 }
 0x183   :  { %5247 = vmatpush3.bf16.msra.mxu1 %v7014_v38 }
 0x184   :  { %5248 = vmatprep.subr.bf16.mxu1 %v5929_v3 }
 0x185   :  { %5210 = vmatpush1.bf16.msra.mxu0 %v6919_v26 }
 0x186   :  { %5212 = vmatprep.subr.bf16.mxu0 %v6934_v1 }
 0x187   :  { %5250 = vmatpush3.bf16.msra.mxu1 %v7036_v32 }
 0x188   :  { %5283 = vmatprep.subr.bf16.mxu1 %v5929_v3 }
 0x189   :  { %5214 = vmatpush1.bf16.msra.mxu0 %v6947_v54 }
 0x18a   :  { %5216 = vmatprep.subr.bf16.mxu0 %v6962_v21 }
 0x18d   :  { %5218 = vmatpush1.bf16.msra.mxu0 %v6984_v20 }
 0x18e   :  { %5220 = vmatprep.subr.bf16.mxu0 %v6993_v19 }
 0x191   :  { %5222 = vmatpush1.bf16.msra.mxu0 %v7012_v31 }
 0x192   :  { %5224 = vmatprep.subr.bf16.mxu0 %v7021_v39 }
 0x195   :  { %5226 = vmatpush1.bf16.msra.mxu0 %v7034_v9 }
 0x196   :  { %5252 = vmatprep.subr.bf16.mxu0 %v6568_v60 }
 0x21c   :  { %v891_v36 = vpop.f32.mrb[2].mxu0  ;;  %v962_v49 = vpop.f32.mrb[6].mxu1 }
 0x21d   :  { %v5813_v18 = vadd.f32 %v891_v36, %v6574_v37  ;;  %v893_v40 = vpop.f32.mrb[3].mxu0  ;;  %v4494_v14 = vpop.f32.mrb[7].mxu1  ;;  %v980_v60 = vadd.f32 %v6583_v43, %v962_v49  ;;  %v1562_v49 = vld [vmem:[%s8656_s2 + $0x28] sm:$0xff] }
 0x21e   :  { %v5814_v30 = vadd.f32 %v893_v40, %v6577_v8  ;;  %v1559_v14 = vld [vmem:[%s8656_s2 + $0x10] sm:$0xff] }
 0x21f   :  { %v4041_v17 = vmul.f32 -1.442695, %v5813_v18 }
 0x220   :  { %v4042_v46 = vmul.f32 -1.442695, %v5814_v30 }
 0x221   :  { %5857 = vpow2.f32 %v4041_v17 }
 0x222   :  { %5859 = vpow2.f32 %v4042_v46  ;;  %v7056_v46 = vpack.c.bf16 %v1562_v49, %v1559_v14 }
 0x22b   :  { %v5858_v48 = vpop.eup %5857 }
 0x22c   :  { %v970_v51 = vadd.f32 1.0, %v5858_v48  ;;  %v5860_v27 = vpop.eup %5859  ;;  %v1565_v48 = vld [vmem:[%s8656_s2 + $0x40] sm:$0xff] }
 0x22d   :  { %v977_v36 = vadd.f32 1.0, %v5860_v27 }
 0x22e   :  { %5861 = vrcp.f32 %v970_v51 }
 0x238   :  { %v5862_v22 = vpop.eup %5861 }
 0x239   :  { %v981_v56 = vmul.f32 %v5862_v22, %v980_v60 }
 0x23b   :  { %v982_v6 = vadd.f32 %v981_v56, %v774_v52 }
 0x23d   :  { %5863 = vtanh.f32 %v982_v6  ;;  %v1574_v6 = vld [vmem:[%s8656_s2 + $0x88] sm:$0xff] }
 0x23e   :  { %5865 = vrcp.f32 %v977_v36 }
 0x247   :  { %v5864_v18 = vpop.eup %5863 }
 0x248   :  { %v984_v40 = vsub.f32 %v6609_v24, %v5864_v18  ;;  %v5866_v17 = vpop.eup %5865  ;;  %v1568_v24 = vld [vmem:[%s8656_s2 + $0x58] sm:$0xff] }
 0x249   :  { %v7074_v60 = vpack.c.bf16 %v1568_v24, %v1565_v48  ;;  %v1580_v48 = vld [vmem:[%s8656_s2 + $0xb8] sm:$0xff] }
 0x24a   :  { %v985_v30 = vmul.f32 %v5866_v17, %v984_v40 }
 0x24c   :  { %v7058_v57 = vadd.f32 %v5864_v18, %v985_v30 }
 0x24e   :  { %v988_v51 = vcombine.high %v7058_v57, %v7058_v57  ;;  %v995_v27 = vrot.slane %v7058_v57, %v6602_v62  ;;  %1386 = vmatmul.mubr.f32.vlgmr.msra.gmra.mrb[4].mxu0 %v7058_v57  ;;  %4563 = vmatmul.mubr.f32.vlgmr.msra.gmra.mrb[10].mxu1 %v7058_v57 }
 0x24f   :  { %5254 = vmatpush1.bf16.msra.mxu0 %v6604_v2  ;;  %5285 = vmatpush3.bf16.msra.mxu1 %v7056_v46  ;;  %v1571_v2 = vld [vmem:[%s8656_s2 + $0x70] sm:$0xff] }
 0x250   :  { %v1002_v22 = vrot.slane %v988_v51, %v6602_v62  ;;  %v1003_v52 = vcombine.high %v995_v27, %v995_v27  ;;  %v1011_v56 = vrot.slane %v995_v27, %v6602_v62  ;;  %4043 = vst.sshfl [vmem:[%s8662_s6 + $0x1] sm:$0x1 pattern:$0x73625140] %v995_v27  ;;  %5256 = vmatprep.subr.bf16.mxu0 %v6611_v34  ;;  %v1551_v51 = vld [vmem:[%s8657_s0 + $0x13] sm:$0x1] }
 0x251   :  { %5286 = vmatprep.subr.bf16.mxu1 %v5929_v3  ;;  %1692 = vmatprep.mubr.f32.mxu0 %v5930_v4  ;;  %v7102_v14 = vpack.c.bf16 %v1574_v6, %v1571_v2  ;;  %v1601_v2 = vld [vmem:[%s8656_s2 + $0x160] sm:$0xff]  ;;  %v1604_v6 = vld [vmem:[%s8656_s2 + $0x178] sm:$0xff] }
 0x252   :  { %4597 = vmatprep.mubr.msk.f32.mxu1 %vm5931_vm0, %v5930_v4  ;;  %v1004_v36 = vcombine.high %v1002_v22, %v1002_v22  ;;  %v1018_v18 = vrot.slane %v1002_v22, %v6602_v62  ;;  %v1025_v34 = vrot.slane %v1003_v52, %v6602_v62  ;;  %v1033_v40 = vcombine.high %v1011_v56, %v1011_v56 }
 0x253   :  { %4044 = vst.sshfl [vmem:[%s8662_s6 + $0x9] sm:$0x1 pattern:$0x73625140] %v1003_v52  ;;  %5258 = vmatpush1.bf16.msra.mxu0 %v6630_v25  ;;  %5288 = vmatpush3.bf16.msra.mxu1 %v7074_v60  ;;  %v1577_v25 = vld [vmem:[%s8656_s2 + $0xa0] sm:$0xff]  ;;  %v1615_v56 = vrot.slane %v1551_v51, 6 }
 0x254   :  { %4045 = vst.sshfl [vmem:[%s8662_s6 + $0x21] sm:$0x1 pattern:$0x73625140] %v1002_v22  ;;  %v1032_v49 = vrot.slane %v1004_v36, %v6602_v62  ;;  %v1034_v17 = vcombine.high %v1018_v18, %v1018_v18  ;;  %v1035_v30 = vcombine.high %v1025_v34, %v1025_v34  ;;  %1047 = vst [vmem:[%s8662_s6 + $0x11] sm:$0x1] %v1033_v40  ;;  %5260 = vmatprep.subr.bf16.mxu0 %v6632_v50 }
 0x255   :  { %4046 = vst.sshfl [vmem:[%s8662_s6 + $0x29] sm:$0x1 pattern:$0x73625140] %v1004_v36  ;;  %5289 = vmatprep.subr.bf16.mxu1 %v5929_v3  ;;  %v7127_v50 = vpack.c.bf16 %v1580_v48, %v1577_v25  ;;  %v1549_v22 = vld [vmem:[%s8657_s0 + $0x3] sm:$0x1]  ;;  %v7200_v40 = vpack.c.bf16 %v1604_v6, %v1601_v2 }
 0x256   :  { %v1036_v24 = vcombine.high %v1032_v49, %v1032_v49  ;;  %1048 = vst [vmem:[%s8662_s6 + $0x19] sm:$0x1] %v1035_v30  ;;  %1051 = vst [vmem:[%s8662_s6 + $0x31] sm:$0x1] %v1034_v17  ;;  %v1552_v52 = vld [vmem:[%s8657_s0 + $0x1b] sm:$0x1] }
 0x257   :  { %5262 = vmatpush1.bf16.msra.mxu0 %v6666_v61  ;;  %5291 = vmatpush3.bf16.msra.mxu1 %v7102_v14  ;;  %v7146_v61 = vpop.f32.mrb[8].mxu1  ;;  %v1553_v36 = vld [vmem:[%s8657_s0 + $0x23] sm:$0x1]  ;;  %v1617_v34 = vrot.slane %v1552_v52, 5  ;;  %v1554_v49 = vld [vmem:[%s8657_s0 + $0x2b] sm:$0x1] }
 0x258   :  { %1052 = vst [vmem:[%s8662_s6 + $0x39] sm:$0x1] %v1036_v24  ;;  %5264 = vmatprep.subr.bf16.mxu0 %v6668_v7  ;;  %5292 = vmatprep.subr.bf16.mxu1 %v5929_v3  ;;  %v4529_v7 = vpop.f32.mrb[9].mxu1  ;;  %v1619_v30 = vrot.slane %v1553_v36, 4  ;;  %v1555_v25 = vld [vmem:[%s8657_s0 + $0x33] sm:$0x1] }
 0x259   :  { %v1621_v24 = vrot.slane %v1554_v49, 3  ;;  %v1556_v7 = vld [vmem:[%s8657_s0 + $0x3b] sm:$0x1]  ;;  %v2063_v51 = vld [vmem:[%s8656_s2 + $0x50] sm:$0xff]  ;;  %v2062_v2 = vld [vmem:[%s8656_s2 + $0x48] sm:$0xff] }
 0x25a   :  { %v2066_v6 = vld [vmem:[%s8656_s2 + $0x68] sm:$0xff]  ;;  %v2069_v36 = vld [vmem:[%s8656_s2 + $0x80] sm:$0xff] }
 0x25b   :  { %5266 = vmatpush1.bf16.msra.mxu0 %v6693_v41  ;;  %5294 = vmatpush3.bf16.msra.mxu1 %v7127_v50  ;;  %v1583_v41 = vld [vmem:[%s8656_s2 + $0xd0] sm:$0xff] }
 0x25c   :  { %5268 = vmatprep.subr.bf16.mxu0 %v6719_v42  ;;  %5295 = vmatprep.subr.bf16.mxu1 %v5929_v3  ;;  %v1586_v42 = vld [vmem:[%s8656_s2 + $0xe8] sm:$0xff] }
 0x25f   :  { %5270 = vmatpush1.bf16.msra.mxu0 %v6727_v47  ;;  %v7154_v47 = vpack.c.bf16 %v1586_v42, %v1583_v41  ;;  %v1623_v42 = vrot.slane %v1555_v25, 2 }
 0x260   :  { %5272 = vmatprep.subr.bf16.mxu0 %v6737_v58  ;;  %v1589_v58 = vld [vmem:[%s8656_s2 + $0x100] sm:$0xff] }
 0x261   :  { %5297 = vmatpush3.bf16.msra.mxu1 %v7154_v47 }
 0x262   :  { %5298 = vmatprep.subr.bf16.mxu1 %v5929_v3 }
 0x263   :  { %5274 = vmatpush1.bf16.msra.mxu0 %v6745_v5  ;;  %v1592_v5 = vld [vmem:[%s8656_s2 + $0x118] sm:$0xff] }
 0x264   :  { %5276 = vmatprep.subr.bf16.mxu0 %v6755_v15  ;;  %v7164_v15 = vpack.c.bf16 %v1592_v5, %v1589_v58  ;;  %v1625_v5 = vrot.slane %v1556_v7, 1  ;;  %v2072_v7 = vld [vmem:[%s8656_s2 + $0x98] sm:$0xff] }
 0x266   :  { %5300 = vmatpush3.bf16.msra.mxu1 %v7164_v15 }
 0x267   :  { %5278 = vmatpush1.bf16.msra.mxu0 %v6763_v23  ;;  %5301 = vmatprep.subr.bf16.mxu1 %v5929_v3  ;;  %v1595_v23 = vld [vmem:[%s8656_s2 + $0x130] sm:$0xff] }
 0x268   :  { %5280 = vmatprep.subr.bf16.mxu0 %v6782_v11  ;;  %v1598_v11 = vld [vmem:[%s8656_s2 + $0x148] sm:$0xff] }
 0x26b   :  { %5282 = vmatpush1.bf16.msra.mxu0 %v6794_v0  ;;  %v7174_v0 = vpack.c.bf16 %v1598_v11, %v1595_v23 }
 0x26c   :  { %5308 = vmatprep.subr.bf16.mxu0 %v6818_v35  ;;  %v1550_v35 = vld [vmem:[%s8657_s0 + $0xb] sm:$0x1] }
 0x26d   :  { %v1613_v27 = vrot.slane %v1550_v35, 7  ;;  %5303 = vmatpush3.bf16.msra.mxu1 %v7174_v0 }
 0x26e   :  { %5304 = vmatprep.subr.bf16.mxu1 %v5929_v3 }
 0x26f   :  { %v1614_v18 = vsel %vm119_vm1, %v1613_v27, %v1549_v22 }
 0x270   :  { %v1616_v17 = vsel %vm122_vm2, %v1615_v56, %v1614_v18 }
 0x271   :  { %v1618_v48 = vsel %vm125_vm3, %v1617_v34, %v1616_v17  ;;  %5306 = vmatpush3.bf16.msra.mxu1 %v7200_v40  ;;  %v7308_v17 = vpack.c.bf16 %v2069_v36, %v2066_v6  ;;  %v2095_v6 = vld [vmem:[%s8656_s2 + $0x150] sm:$0xff]  ;;  %v2098_v36 = vld [vmem:[%s8656_s2 + $0x168] sm:$0xff] }
 0x272   :  { %v1620_v41 = vsel %vm128_vm4, %v1619_v30, %v1618_v48  ;;  %5339 = vmatprep.subr.bf16.mxu1 %v5929_v3  ;;  %v2065_v30 = vld [vmem:[%s8656_s2 + $0x60] sm:$0xff] }
 0x273   :  { %v1622_v58 = vsel %vm131_vm5, %v1621_v24, %v1620_v41  ;;  %v2075_v41 = vld [vmem:[%s8656_s2 + $0xb0] sm:$0xff] }
 0x274   :  { %v1624_v23 = vsel %vm134_vm6, %v1623_v42, %v1622_v58 }
 0x275   :  { %v1626_v11 = vsel %vm137_vm7, %v1625_v5, %v1624_v23 }
 0x276   :  { %1693 = vmatmul.mubr.f32.vlgmr.msra.gmra.mrb[6].mxu0 %v1626_v11  ;;  %4598 = vmatmul.mubr.f32.vlgmr.msra.gmra.mrb[12].mxu1 %v1626_v11 }
 0x277   :  { %5310 = vmatpush1.bf16.msra.mxu0 %v6831_v63  ;;  %5341 = vmatpush3.bf16.msra.mxu1 %v6838_v59  ;;  %v2054_v63 = vld [vmem:[%s8656_s2 + $0x8] sm:$0xff]  ;;  %v2057_v59 = vld [vmem:[%s8656_s2 + $0x20] sm:$0xff] }
 0x278   :  { %5312 = vmatprep.subr.bf16.mxu0 %v6847_v16  ;;  %5342 = vmatprep.subr.bf16.mxu1 %v5929_v3  ;;  %v7259_v16 = vpack.c.bf16 %v2057_v59, %v2054_v63  ;;  %v7344_v63 = vpack.c.bf16 %v2075_v41, %v2072_v7  ;;  %v2051_v7 = vld [vmem:[%s8657_s0 + $0x34] sm:$0x1] }
 0x279   :  { %1881 = vmatprep.mubr.f32.mxu0 %v5930_v4  ;;  %4632 = vmatprep.mubr.msk.f32.mxu1 %vm5931_vm0, %v5930_v4 }
 0x27b   :  { %5314 = vmatpush1.bf16.msra.mxu0 %v6860_v45  ;;  %5344 = vmatpush3.bf16.msra.mxu1 %v6867_v55 }
 0x27c   :  { %5316 = vmatprep.subr.bf16.mxu0 %v6878_v12  ;;  %5345 = vmatprep.subr.bf16.mxu1 %v5929_v3 }
 0x27f   :  { %5318 = vmatpush1.bf16.msra.mxu0 %v6891_v13  ;;  %5347 = vmatpush3.bf16.msra.mxu1 %v6898_v29 }
 0x280   :  { %5320 = vmatprep.subr.bf16.mxu0 %v6906_v33  ;;  %5348 = vmatprep.subr.bf16.mxu1 %v5929_v3 }
 0x283   :  { %5322 = vmatpush1.bf16.msra.mxu0 %v6919_v26  ;;  %5350 = vmatpush3.bf16.msra.mxu1 %v6926_v28 }
 0x284   :  { %5324 = vmatprep.subr.bf16.mxu0 %v6934_v1  ;;  %5351 = vmatprep.subr.bf16.mxu1 %v5929_v3 }
 0x287   :  { %5326 = vmatpush1.bf16.msra.mxu0 %v6947_v54  ;;  %5353 = vmatpush3.bf16.msra.mxu1 %v6960_v10 }
 0x288   :  { %5328 = vmatprep.subr.bf16.mxu0 %v6962_v21  ;;  %5354 = vmatprep.subr.bf16.mxu1 %v5929_v3 }
 0x28b   :  { %5330 = vmatpush1.bf16.msra.mxu0 %v6984_v20  ;;  %5356 = vmatpush3.bf16.msra.mxu1 %v6986_v53  ;;  %v1270_v53 = vadd.f32 %v7146_v61, %v6585_v44  ;;  %v2060_v61 = vld [vmem:[%s8656_s2 + $0x38] sm:$0xff] }
 0x28c   :  { %5332 = vmatprep.subr.bf16.mxu0 %v6993_v19  ;;  %5357 = vmatprep.subr.bf16.mxu1 %v5929_v3  ;;  %v7287_v56 = vpack.c.bf16 %v2063_v51, %v2060_v61  ;;  %v2096_v61 = vld [vmem:[%s8656_s2 + $0x158] sm:$0xff]  ;;  %v2099_v51 = vld [vmem:[%s8656_s2 + $0x170] sm:$0xff] }
 0x28f   :  { %5334 = vmatpush1.bf16.msra.mxu0 %v7012_v31  ;;  %5359 = vmatpush3.bf16.msra.mxu1 %v7014_v38 }
 0x290   :  { %5336 = vmatprep.subr.bf16.mxu0 %v7021_v39  ;;  %5360 = vmatprep.subr.bf16.mxu1 %v5929_v3 }
 0x293   :  { %5338 = vmatpush1.bf16.msra.mxu0 %v7034_v9  ;;  %5362 = vmatpush3.bf16.msra.mxu1 %v7036_v32  ;;  %v2053_v32 = vld [vmem:[%s8656_s2] sm:$0xff] }
 0x294   :  { %5395 = vmatprep.subr.bf16.mxu1 %v5929_v3  ;;  %5364 = vmatprep.subr.bf16.mxu0 %v7259_v16 }
 0x321   :  { %v1387_v45 = vpop.f32.mrb[4].mxu0  ;;  %v1458_v55 = vpop.f32.mrb[10].mxu1 }
 0x322   :  { %v5815_v12 = vadd.f32 %v1387_v45, %v6574_v37  ;;  %v1389_v13 = vpop.f32.mrb[5].mxu0  ;;  %v4564_v29 = vpop.f32.mrb[11].mxu1  ;;  %v1476_v21 = vadd.f32 %v6583_v43, %v1458_v55  ;;  %v2056_v43 = vld [vmem:[%s8656_s2 + $0x18] sm:$0xff] }
 0x323   :  { %v5816_v26 = vadd.f32 %v1389_v13, %v6577_v8  ;;  %v7280_v22 = vpack.c.bf16 %v2056_v43, %v2053_v32  ;;  %v2046_v32 = vld [vmem:[%s8657_s0 + $0xc] sm:$0x1]  ;;  %v2047_v43 = vld [vmem:[%s8657_s0 + $0x14] sm:$0x1] }
 0x324   :  { %v4047_v33 = vmul.f32 -1.442695, %v5815_v12  ;;  %v2074_v12 = vld [vmem:[%s8656_s2 + $0xa8] sm:$0xff] }
 0x325   :  { %v4048_v28 = vmul.f32 -1.442695, %v5816_v26 }
 0x326   :  { %5867 = vpow2.f32 %v4047_v33 }
 0x327   :  { %5869 = vpow2.f32 %v4048_v28  ;;  %v2084_v28 = vld [vmem:[%s8656_s2 + $0xf8] sm:$0xff] }
 0x330   :  { %v5868_v1 = vpop.eup %5867 }
 0x331   :  { %v1466_v54 = vadd.f32 1.0, %v5868_v1  ;;  %v5870_v10 = vpop.eup %5869  ;;  %v2087_v1 = vld [vmem:[%s8656_s2 + $0x110] sm:$0xff] }
 0x332   :  { %v1473_v38 = vadd.f32 1.0, %v5870_v10  ;;  %v2083_v10 = vld [vmem:[%s8656_s2 + $0xf0] sm:$0xff] }
 0x333   :  { %5871 = vrcp.f32 %v1466_v54  ;;  %v7413_v54 = vpack.c.bf16 %v2087_v1, %v2084_v28 }
 0x33d   :  { %v5872_v20 = vpop.eup %5871 }
 0x33e   :  { %v1477_v19 = vmul.f32 %v5872_v20, %v1476_v21  ;;  %v2086_v21 = vld [vmem:[%s8656_s2 + $0x108] sm:$0xff] }
 0x33f   :  { %v7421_v20 = vpack.c.bf16 %v2086_v21, %v2083_v10  ;;  %v2272_v21 = vld [vmem:[%s8658_s3 + $0x38] sm:$0xff] }
 0x340   :  { %v1478_v31 = vadd.f32 %v1477_v19, %v1270_v53  ;;  %v2090_v53 = vld [vmem:[%s8656_s2 + $0x128] sm:$0xff]  ;;  %v2093_v19 = vld [vmem:[%s8656_s2 + $0x140] sm:$0xff] }
 0x342   :  { %5873 = vtanh.f32 %v1478_v31  ;;  %v7431_v31 = vpack.c.bf16 %v2093_v19, %v2090_v53  ;;  %v2275_v53 = vld [vmem:[%s8658_s3 + $0x50] sm:$0xff] }
 0x343   :  { %5875 = vrcp.f32 %v1473_v38  ;;  %v2089_v38 = vld [vmem:[%s8656_s2 + $0x120] sm:$0xff]  ;;  %v7523_v19 = vpack.c.bf16 %v2275_v53, %v2272_v21 }
 0x34c   :  { %v5874_v39 = vpop.eup %5873 }
 0x34d   :  { %v1480_v9 = vsub.f32 %v7058_v57, %v5874_v39  ;;  %v5876_v35 = vpop.eup %5875  ;;  %v2059_v57 = vld [vmem:[%s8656_s2 + $0x30] sm:$0xff] }
 0x34e   :  { %v7306_v49 = vpack.c.bf16 %v2062_v2, %v2059_v57  ;;  %v2111_v57 = vrot.slane %v2047_v43, 6  ;;  %v7458_v2 = vpack.c.bf16 %v2099_v51, %v2096_v61  ;;  %v2278_v51 = vld [vmem:[%s8658_s3 + $0x68] sm:$0xff] }
 0x34f   :  { %v1481_v27 = vmul.f32 %v5876_v35, %v1480_v9  ;;  %v2109_v35 = vrot.slane %v2046_v32, 7  ;;  %v2273_v32 = vld [vmem:[%s8658_s3 + $0x40] sm:$0xff] }
 0x351   :  { %v7285_v52 = vadd.f32 %v5874_v39, %v1481_v27  ;;  %v2092_v39 = vld [vmem:[%s8656_s2 + $0x138] sm:$0xff]  ;;  %v2045_v27 = vld [vmem:[%s8657_s0 + $0x4] sm:$0x1] }
 0x352   :  { %v7439_v9 = vpack.c.bf16 %v2092_v39, %v2089_v38  ;;  %v2271_v38 = vld [vmem:[%s8658_s3 + $0x30] sm:$0xff]  ;;  %v2274_v39 = vld [vmem:[%s8658_s3 + $0x48] sm:$0xff] }
 0x353   :  { %v1484_v18 = vcombine.high %v7285_v52, %v7285_v52  ;;  %v1491_v34 = vrot.slane %v7285_v52, %v6602_v62  ;;  %1882 = vmatmul.mubr.f32.vlgmr.msra.gmra.mrb[6].mxu0 %v7285_v52  ;;  %4633 = vmatmul.mubr.f32.vlgmr.msra.gmra.mrb[14].mxu1 %v7285_v52  ;;  %v7536_v43 = vpack.c.bf16 %v2274_v39, %v2271_v38  ;;  %v2295_v38 = vld [vmem:[%s8658_s3 + $0xf0] sm:$0xff]  ;;  %v2298_v39 = vld [vmem:[%s8658_s3 + $0x108] sm:$0xff] }
 0x354   :  { %5366 = vmatpush1.bf16.msra.mxu0 %v7280_v22  ;;  %5397 = vmatpush3.bf16.msra.mxu1 %v7056_v46  ;;  %v2068_v46 = vld [vmem:[%s8656_s2 + $0x78] sm:$0xff] }
 0x355   :  { %v1498_v25 = vrot.slane %v1484_v18, %v6602_v62  ;;  %v1499_v48 = vcombine.high %v1491_v34, %v1491_v34  ;;  %v1507_v24 = vrot.slane %v1491_v34, %v6602_v62  ;;  %4049 = vst.sshfl [vmem:[%s8662_s6 + $0x2] sm:$0x1 pattern:$0x73625140] %v1491_v34  ;;  %5368 = vmatprep.subr.bf16.mxu0 %v7287_v56  ;;  %v2048_v18 = vld [vmem:[%s8657_s0 + $0x1c] sm:$0x1] }
 0x356   :  { %5398 = vmatprep.subr.bf16.mxu1 %v5929_v3  ;;  %2188 = vmatprep.mubr.f32.mxu0 %v5930_v4  ;;  %v7342_v11 = vpack.c.bf16 %v2068_v46, %v2065_v30  ;;  %v2110_v34 = vsel %vm119_vm1, %v2109_v35, %v2045_v27  ;;  %v7470_v30 = vpack.c.bf16 %v2098_v36, %v2095_v6  ;;  %v2113_v46 = vrot.slane %v2048_v18, 5  ;;  %v2276_v35 = vld [vmem:[%s8658_s3 + $0x58] sm:$0xff]  ;;  %v2281_v27 = vld [vmem:[%s8658_s3 + $0x80] sm:$0xff]  ;;  %v2279_v18 = vld [vmem:[%s8658_s3 + $0x70] sm:$0xff] }
 0x357   :  { %4667 = vmatprep.mubr.msk.f32.mxu1 %vm5931_vm0, %v5930_v4  ;;  %v1500_v42 = vcombine.high %v1498_v25, %v1498_v25  ;;  %v1514_v58 = vrot.slane %v1498_v25, %v6602_v62  ;;  %v1521_v5 = vrot.slane %v1499_v48, %v6602_v62  ;;  %v1529_v23 = vcombine.high %v1507_v24, %v1507_v24  ;;  %v2277_v6 = vld [vmem:[%s8658_s3 + $0x60] sm:$0xff]  ;;  %v2280_v36 = vld [vmem:[%s8658_s3 + $0x78] sm:$0xff] }
 0x358   :  { %4050 = vst.sshfl [vmem:[%s8662_s6 + $0xa] sm:$0x1 pattern:$0x73625140] %v1499_v48  ;;  %5370 = vmatpush1.bf16.msra.mxu0 %v7306_v49  ;;  %5400 = vmatpush3.bf16.msra.mxu1 %v7074_v60  ;;  %v2071_v60 = vld [vmem:[%s8656_s2 + $0x90] sm:$0xff]  ;;  %v2112_v24 = vsel %vm122_vm2, %v2111_v57, %v2110_v34  ;;  %v7543_v61 = vpack.c.bf16 %v2276_v35, %v2273_v32  ;;  %v2297_v32 = vld [vmem:[%s8658_s3 + $0x100] sm:$0xff] }
 0x359   :  { %4051 = vst.sshfl [vmem:[%s8662_s6 + $0x22] sm:$0x1 pattern:$0x73625140] %v1498_v25  ;;  %v1528_v59 = vrot.slane %v1500_v42, %v6602_v62  ;;  %v1530_v45 = vcombine.high %v1514_v58, %v1514_v58  ;;  %v1531_v55 = vcombine.high %v1521_v5, %v1521_v5  ;;  %1543 = vst [vmem:[%s8662_s6 + $0x12] sm:$0x1] %v1529_v23  ;;  %5372 = vmatprep.subr.bf16.mxu0 %v7308_v17 }
 0x35a   :  { %4052 = vst.sshfl [vmem:[%s8662_s6 + $0x2a] sm:$0x1 pattern:$0x73625140] %v1500_v42  ;;  %5401 = vmatprep.subr.bf16.mxu1 %v5929_v3  ;;  %v7369_v29 = vpack.c.bf16 %v2074_v12, %v2071_v60  ;;  %v2049_v25 = vld [vmem:[%s8657_s0 + $0x24] sm:$0x1]  ;;  %v7554_v57 = vpack.c.bf16 %v2281_v27, %v2278_v51  ;;  %v7567_v34 = vpack.c.bf16 %v2280_v36, %v2277_v6 }
 0x35b   :  { %v1532_v13 = vcombine.high %v1528_v59, %v1528_v59  ;;  %1544 = vst [vmem:[%s8662_s6 + $0x1a] sm:$0x1] %v1531_v55  ;;  %1547 = vst [vmem:[%s8662_s6 + $0x32] sm:$0x1] %v1530_v45  ;;  %v2050_v48 = vld [vmem:[%s8657_s0 + $0x2c] sm:$0x1]  ;;  %v2114_v59 = vsel %vm125_vm3, %v2113_v46, %v2112_v24  ;;  %v7660_v6 = vpack.c.bf16 %v2298_v39, %v2295_v38 }
 0x35c   :  { %5374 = vmatpush1.bf16.msra.mxu0 %v7342_v11  ;;  %5403 = vmatpush3.bf16.msra.mxu1 %v7102_v14  ;;  %v7387_v14 = vpop.f32.mrb[12].mxu1  ;;  %v2115_v41 = vrot.slane %v2049_v25, 4  ;;  %v2117_v42 = vrot.slane %v2050_v48, 3  ;;  %v2266_v58 = vld [vmem:[%s8658_s3 + $0x8] sm:$0xff]  ;;  %v2269_v5 = vld [vmem:[%s8658_s3 + $0x20] sm:$0xff]  ;;  %v2119_v45 = vrot.slane %v2051_v7, 2 }
 0x35d   :  { %1548 = vst [vmem:[%s8662_s6 + $0x3a] sm:$0x1] %v1532_v13  ;;  %5376 = vmatprep.subr.bf16.mxu0 %v7344_v63  ;;  %5404 = vmatprep.subr.bf16.mxu1 %v5929_v3  ;;  %v2052_v23 = vld [vmem:[%s8657_s0 + $0x3c] sm:$0x1]  ;;  %v7494_v55 = vpack.c.bf16 %v2269_v5, %v2266_v58  ;;  %v2265_v13 = vld [vmem:[%s8658_s3] sm:$0xff]  ;;  %v2282_v25 = vld [vmem:[%s8658_s3 + $0x88] sm:$0xff] }
 0x35e   :  { %v2116_v60 = vsel %vm128_vm4, %v2115_v41, %v2114_v59  ;;  %v2121_v12 = vrot.slane %v2052_v23, 1  ;;  %v7574_v48 = vpack.c.bf16 %v2282_v25, %v2279_v18  ;;  %v2284_v24 = vld [vmem:[%s8658_s3 + $0x98] sm:$0xff]  ;;  %v2287_v46 = vld [vmem:[%s8658_s3 + $0xb0] sm:$0xff]  ;;  %v2285_v58 = vld [vmem:[%s8658_s3 + $0xa0] sm:$0xff] }
 0x35f   :  { %v7582_v7 = vpack.c.bf16 %v2287_v46, %v2284_v24  ;;  %v2283_v41 = vld [vmem:[%s8658_s3 + $0x90] sm:$0xff]  ;;  %v2288_v23 = vld [vmem:[%s8658_s3 + $0xb8] sm:$0xff]  ;;  %v2302_v51 = vld [vmem:[%s8658_s3 + $0x128] sm:$0xff] }
 0x360   :  { %5378 = vmatpush1.bf16.msra.mxu0 %v7369_v29  ;;  %5406 = vmatpush3.bf16.msra.mxu1 %v7127_v50  ;;  %v4599_v50 = vpop.f32.mrb[13].mxu1  ;;  %v7602_v59 = vpack.c.bf16 %v2288_v23, %v2285_v58  ;;  %v2300_v35 = vld [vmem:[%s8658_s3 + $0x118] sm:$0xff]  ;;  %v2305_v27 = vld [vmem:[%s8658_s3 + $0x140] sm:$0xff]  ;;  %v2303_v46 = vld [vmem:[%s8658_s3 + $0x130] sm:$0xff] }
 0x361   :  { %5407 = vmatprep.subr.bf16.mxu1 %v5929_v3  ;;  %v2268_v50 = vld [vmem:[%s8658_s3 + $0x18] sm:$0xff]  ;;  %v7662_v36 = vpack.c.bf16 %v2300_v35, %v2297_v32  ;;  %v2301_v18 = vld [vmem:[%s8658_s3 + $0x120] sm:$0xff]  ;;  %v7669_v25 = vpack.c.bf16 %v2305_v27, %v2302_v51  ;;  %v2311_v58 = vld [vmem:[%s8658_s3 + $0x170] sm:$0xff] }
 0x362   :  { %v2304_v24 = vld [vmem:[%s8658_s3 + $0x138] sm:$0xff] }
 0x363   :  { %v7688_v23 = vpack.c.bf16 %v2304_v24, %v2301_v18 }
 0x364   :  { %5409 = vmatpush3.bf16.msra.mxu1 %v7154_v47  ;;  %v2078_v47 = vld [vmem:[%s8656_s2 + $0xc8] sm:$0xff] }
 0x365   :  { %5410 = vmatprep.subr.bf16.mxu1 %v5929_v3 }
 0x368   :  { %5412 = vmatpush3.bf16.msra.mxu1 %v7164_v15  ;;  %v2081_v15 = vld [vmem:[%s8656_s2 + $0xe0] sm:$0xff] }
 0x369   :  { %5413 = vmatprep.subr.bf16.mxu1 %v5929_v3  ;;  %v7395_v33 = vpack.c.bf16 %v2081_v15, %v2078_v47  ;;  %v2267_v47 = vld [vmem:[%s8658_s3 + $0x10] sm:$0xff]  ;;  %v2118_v15 = vsel %vm131_vm5, %v2117_v42, %v2116_v60  ;;  %v2286_v42 = vld [vmem:[%s8658_s3 + $0xa8] sm:$0xff]  ;;  %v2293_v60 = vld [vmem:[%s8658_s3 + $0xe0] sm:$0xff] }
 0x36a   :  { %v2120_v28 = vsel %vm134_vm6, %v2119_v45, %v2118_v15  ;;  %v7595_v5 = vpack.c.bf16 %v2286_v42, %v2283_v41  ;;  %v2290_v45 = vld [vmem:[%s8658_s3 + $0xc8] sm:$0xff]  ;;  %v2308_v42 = vld [vmem:[%s8658_s3 + $0x158] sm:$0xff] }
 0x36b   :  { %5380 = vmatprep.subr.bf16.mxu0 %v7395_v33  ;;  %v2122_v10 = vsel %vm137_vm7, %v2121_v12, %v2120_v28  ;;  %v7610_v12 = vpack.c.bf16 %v2293_v60, %v2290_v45  ;;  %v2296_v28 = vld [vmem:[%s8658_s3 + $0xf8] sm:$0xff]  ;;  %v2306_v41 = vld [vmem:[%s8658_s3 + $0x148] sm:$0xff]  ;;  %v2307_v60 = vld [vmem:[%s8658_s3 + $0x150] sm:$0xff] }
 0x36c   :  { %5415 = vmatpush3.bf16.msra.mxu1 %v7174_v0  ;;  %v2077_v0 = vld [vmem:[%s8656_s2 + $0xc0] sm:$0xff]  ;;  %v7690_v45 = vpack.c.bf16 %v2306_v41, %v2303_v46 }
 0x36d   :  { %5416 = vmatprep.subr.bf16.mxu1 %v5929_v3 }
 0x370   :  { %5418 = vmatpush3.bf16.msra.mxu1 %v7200_v40  ;;  %v2080_v40 = vld [vmem:[%s8656_s2 + $0xd8] sm:$0xff] }
 0x371   :  { %5451 = vmatprep.subr.bf16.mxu1 %v5929_v3  ;;  %v7403_v26 = vpack.c.bf16 %v2080_v40, %v2077_v0  ;;  %v7507_v0 = vpack.c.bf16 %v2268_v50, %v2265_v13  ;;  %v2270_v40 = vld [vmem:[%s8658_s3 + $0x28] sm:$0xff]  ;;  %v2289_v13 = vld [vmem:[%s8658_s3 + $0xc0] sm:$0xff]  ;;  %v2292_v50 = vld [vmem:[%s8658_s3 + $0xd8] sm:$0xff] }
 0x372   :  { %v7514_v1 = vpack.c.bf16 %v2270_v40, %v2267_v47  ;;  %v2291_v47 = vld [vmem:[%s8658_s3 + $0xd0] sm:$0xff]  ;;  %v7623_v15 = vpack.c.bf16 %v2292_v50, %v2289_v13  ;;  %v2294_v40 = vld [vmem:[%s8658_s3 + $0xe8] sm:$0xff]  ;;  %v7697_v13 = vpack.c.bf16 %v2311_v58, %v2308_v42 }
 0x373   :  { %5382 = vmatpush1.bf16.msra.mxu0 %v7403_v26  ;;  %4668 = vmatmul.mubr.f32.vlgmr.msra.gmra.mrb[16].mxu1 %v2122_v10  ;;  %v7636_v21 = vpack.c.bf16 %v2294_v40, %v2291_v47  ;;  %v2310_v50 = vld [vmem:[%s8658_s3 + $0x168] sm:$0xff]  ;;  %v2309_v47 = vld [vmem:[%s8658_s3 + $0x160] sm:$0xff]  ;;  %v2312_v40 = vld [vmem:[%s8658_s3 + $0x178] sm:$0xff] }
 0x374   :  { %5384 = vmatprep.subr.bf16.mxu0 %v7413_v54  ;;  %5453 = vmatpush3.bf16.msra.mxu1 %v7514_v1 }
 0x375   :  { %5454 = vmatprep.subr.bf16.mxu1 %v5929_v3  ;;  %4702 = vmatprep.mubr.msk.f32.mxu1 %vm5931_vm0, %v5930_v4 }
 0x377   :  { %5386 = vmatpush1.bf16.msra.mxu0 %v7421_v20 }
 0x378   :  { %5388 = vmatprep.subr.bf16.mxu0 %v7431_v31  ;;  %5456 = vmatpush3.bf16.msra.mxu1 %v7543_v61 }
 0x379   :  { %5457 = vmatprep.subr.bf16.mxu1 %v5929_v3 }
 0x37b   :  { %5390 = vmatpush1.bf16.msra.mxu0 %v7439_v9 }
 0x37c   :  { %5392 = vmatprep.subr.bf16.mxu0 %v7458_v2  ;;  %5459 = vmatpush3.bf16.msra.mxu1 %v7574_v48 }
 0x37d   :  { %5460 = vmatprep.subr.bf16.mxu1 %v5929_v3 }
 0x37f   :  { %5394 = vmatpush1.bf16.msra.mxu0 %v7470_v30 }
 0x380   :  { %5420 = vmatprep.subr.bf16.mxu0 %v7494_v55  ;;  %5462 = vmatpush3.bf16.msra.mxu1 %v7602_v59 }
 0x381   :  { %5463 = vmatprep.subr.bf16.mxu1 %v5929_v3 }
 0x382   :  { %2189 = vmatmul.mubr.f32.vlgmr.msra.gmra.mrb[8].mxu0 %v2122_v10  ;;  %v2299_v10 = vld [vmem:[%s8658_s3 + $0x110] sm:$0xff] }
 0x383   :  { %5422 = vmatpush1.bf16.msra.mxu0 %v7507_v0  ;;  %2377 = vmatprep.mubr.f32.mxu0 %v5930_v4  ;;  %v7638_v53 = vpack.c.bf16 %v2299_v10, %v2296_v28  ;;  %v7710_v28 = vpack.c.bf16 %v2310_v50, %v2307_v60  ;;  %v7712_v10 = vpack.c.bf16 %v2312_v40, %v2309_v47 }
 0x384   :  { %5424 = vmatprep.subr.bf16.mxu0 %v7523_v19  ;;  %5465 = vmatpush3.bf16.msra.mxu1 %v7636_v21  ;;  %v1766_v50 = vadd.f32 %v7387_v14, %v6585_v44 }
 0x385   :  { %5466 = vmatprep.subr.bf16.mxu1 %v5929_v3 }
 0x387   :  { %5426 = vmatpush1.bf16.msra.mxu0 %v7536_v43 }
 0x388   :  { %5428 = vmatprep.subr.bf16.mxu0 %v7554_v57  ;;  %5468 = vmatpush3.bf16.msra.mxu1 %v7662_v36 }
 0x389   :  { %5469 = vmatprep.subr.bf16.mxu1 %v5929_v3 }
 0x38b   :  { %5430 = vmatpush1.bf16.msra.mxu0 %v7567_v34 }
 0x38c   :  { %5432 = vmatprep.subr.bf16.mxu0 %v7582_v7  ;;  %5471 = vmatpush3.bf16.msra.mxu1 %v7690_v45 }
 0x38d   :  { %5472 = vmatprep.subr.bf16.mxu1 %v5929_v3 }
 0x38f   :  { %5434 = vmatpush1.bf16.msra.mxu0 %v7595_v5 }
 0x390   :  { %5436 = vmatprep.subr.bf16.mxu0 %v7610_v12  ;;  %5474 = vmatpush3.bf16.msra.mxu1 %v7712_v10 }
 0x391   :  { %5507 = vmatprep.subr.bf16.mxu1 %v5929_v3 }
 0x393   :  { %5438 = vmatpush1.bf16.msra.mxu0 %v7623_v15 }
 0x394   :  { %5440 = vmatprep.subr.bf16.mxu0 %v7638_v53 }
 0x397   :  { %5442 = vmatpush1.bf16.msra.mxu0 %v7660_v6 }
 0x398   :  { %5444 = vmatprep.subr.bf16.mxu0 %v7669_v25 }
 0x39b   :  { %5446 = vmatpush1.bf16.msra.mxu0 %v7688_v23 }
 0x39c   :  { %5448 = vmatprep.subr.bf16.mxu0 %v7697_v13 }
 0x39f   :  { %5450 = vmatpush1.bf16.msra.mxu0 %v7710_v28 }
 0x3a0   :  { %5476 = vmatprep.subr.bf16.mxu0 %v7259_v16  ;;  %v7725_v16 = vld [vmem:[%s8661_s5] ss:$0 sm:$0xff] }
 0x426   :  { %v1883_v38 = vpop.f32.mrb[6].mxu0  ;;  %v1954_v39 = vpop.f32.mrb[14].mxu1 }
 0x427   :  { %v5817_v32 = vadd.f32 %v1883_v38, %v6574_v37  ;;  %v1885_v35 = vpop.f32.mrb[7].mxu0  ;;  %v4634_v51 = vpop.f32.mrb[15].mxu1  ;;  %v1972_v58 = vadd.f32 %v7725_v16, %v1954_v39  ;;  %v2554_v39 = vld [vmem:[%s8656_s2 + $0x28] sm:$0xff] }
 0x428   :  { %v5818_v18 = vadd.f32 %v1885_v35, %v6577_v8  ;;  %v2551_v51 = vld [vmem:[%s8656_s2 + $0x10] sm:$0xff] }
 0x429   :  { %v4053_v27 = vmul.f32 -1.442695, %v5817_v32 }
 0x42a   :  { %v4054_v24 = vmul.f32 -1.442695, %v5818_v18 }
 0x42b   :  { %5877 = vpow2.f32 %v4053_v27 }
 0x42c   :  { %5879 = vpow2.f32 %v4054_v24  ;;  %v7737_v24 = vpack.c.bf16 %v2554_v39, %v2551_v51 }
 0x435   :  { %v5878_v46 = vpop.eup %5877 }
 0x436   :  { %v1962_v41 = vadd.f32 1.0, %v5878_v46  ;;  %v5880_v42 = vpop.eup %5879  ;;  %v2557_v46 = vld [vmem:[%s8656_s2 + $0x40] sm:$0xff] }
 0x437   :  { %v1969_v38 = vadd.f32 1.0, %v5880_v42 }
 0x438   :  { %5881 = vrcp.f32 %v1962_v41 }
 0x442   :  { %v5882_v60 = vpop.eup %5881 }
 0x443   :  { %v1973_v47 = vmul.f32 %v5882_v60, %v1972_v58 }
 0x445   :  { %v1974_v40 = vadd.f32 %v1973_v47, %v1766_v50 }
 0x447   :  { %5883 = vtanh.f32 %v1974_v40  ;;  %v2566_v40 = vld [vmem:[%s8656_s2 + $0x88] sm:$0xff] }
 0x448   :  { %5885 = vrcp.f32 %v1969_v38 }
 0x451   :  { %v5884_v32 = vpop.eup %5883 }
 0x452   :  { %v1976_v35 = vsub.f32 %v7285_v52, %v5884_v32  ;;  %v5886_v27 = vpop.eup %5885  ;;  %v2560_v52 = vld [vmem:[%s8656_s2 + $0x58] sm:$0xff] }
 0x453   :  { %v7755_v58 = vpack.c.bf16 %v2560_v52, %v2557_v46  ;;  %v2572_v46 = vld [vmem:[%s8656_s2 + $0xb8] sm:$0xff] }
 0x454   :  { %v1977_v18 = vmul.f32 %v5886_v27, %v1976_v35 }
 0x456   :  { %v7739_v14 = vadd.f32 %v5884_v32, %v1977_v18 }
 0x458   :  { %v1980_v41 = vcombine.high %v7739_v14, %v7739_v14  ;;  %v1987_v42 = vrot.slane %v7739_v14, %v6602_v62  ;;  %2378 = vmatmul.mubr.f32.vlgmr.msra.gmra.mrb[8].mxu0 %v7739_v14  ;;  %4703 = vmatmul.mubr.f32.vlgmr.msra.gmra.mrb[18].mxu1 %v7739_v14 }
 0x459   :  { %5478 = vmatpush1.bf16.msra.mxu0 %v7280_v22  ;;  %5509 = vmatpush3.bf16.msra.mxu1 %v7737_v24  ;;  %v2563_v22 = vld [vmem:[%s8656_s2 + $0x70] sm:$0xff] }
 0x45a   :  { %v1994_v60 = vrot.slane %v1980_v41, %v6602_v62  ;;  %v1995_v50 = vcombine.high %v1987_v42, %v1987_v42  ;;  %v2003_v47 = vrot.slane %v1987_v42, %v6602_v62  ;;  %4055 = vst.sshfl [vmem:[%s8662_s6 + $0x3] sm:$0x1 pattern:$0x73625140] %v1987_v42  ;;  %5480 = vmatprep.subr.bf16.mxu0 %v7287_v56  ;;  %v2543_v41 = vld [vmem:[%s8657_s0 + $0x15] sm:$0x1] }
 0x45b   :  { %5510 = vmatprep.subr.bf16.mxu1 %v5929_v3  ;;  %2684 = vmatprep.mubr.f32.mxu0 %v5930_v4  ;;  %v7783_v51 = vpack.c.bf16 %v2566_v40, %v2563_v22  ;;  %v2593_v22 = vld [vmem:[%s8656_s2 + $0x160] sm:$0xff]  ;;  %v2596_v40 = vld [vmem:[%s8656_s2 + $0x178] sm:$0xff] }
 0x45c   :  { %4737 = vmatprep.mubr.msk.f32.mxu1 %vm5931_vm0, %v5930_v4  ;;  %v1996_v38 = vcombine.high %v1994_v60, %v1994_v60  ;;  %v2010_v32 = vrot.slane %v1994_v60, %v6602_v62  ;;  %v2017_v56 = vrot.slane %v1995_v50, %v6602_v62  ;;  %v2025_v35 = vcombine.high %v2003_v47, %v2003_v47 }
 0x45d   :  { %4056 = vst.sshfl [vmem:[%s8662_s6 + $0xb] sm:$0x1 pattern:$0x73625140] %v1995_v50  ;;  %5482 = vmatpush1.bf16.msra.mxu0 %v7306_v49  ;;  %5512 = vmatpush3.bf16.msra.mxu1 %v7755_v58  ;;  %v2569_v49 = vld [vmem:[%s8656_s2 + $0xa0] sm:$0xff]  ;;  %v2607_v47 = vrot.slane %v2543_v41, 6 }
 0x45e   :  { %4057 = vst.sshfl [vmem:[%s8662_s6 + $0x23] sm:$0x1 pattern:$0x73625140] %v1994_v60  ;;  %v2024_v39 = vrot.slane %v1996_v38, %v6602_v62  ;;  %v2026_v27 = vcombine.high %v2010_v32, %v2010_v32  ;;  %v2027_v18 = vcombine.high %v2017_v56, %v2017_v56  ;;  %2039 = vst [vmem:[%s8662_s6 + $0x13] sm:$0x1] %v2025_v35  ;;  %5484 = vmatprep.subr.bf16.mxu0 %v7308_v17 }
 0x45f   :  { %4058 = vst.sshfl [vmem:[%s8662_s6 + $0x2b] sm:$0x1 pattern:$0x73625140] %v1996_v38  ;;  %5513 = vmatprep.subr.bf16.mxu1 %v5929_v3  ;;  %v7808_v17 = vpack.c.bf16 %v2572_v46, %v2569_v49  ;;  %v2541_v60 = vld [vmem:[%s8657_s0 + $0x5] sm:$0x1]  ;;  %v7881_v35 = vpack.c.bf16 %v2596_v40, %v2593_v22 }
 0x460   :  { %v2028_v52 = vcombine.high %v2024_v39, %v2024_v39  ;;  %2040 = vst [vmem:[%s8662_s6 + $0x1b] sm:$0x1] %v2027_v18  ;;  %2043 = vst [vmem:[%s8662_s6 + $0x33] sm:$0x1] %v2026_v27  ;;  %v2544_v50 = vld [vmem:[%s8657_s0 + $0x1d] sm:$0x1] }
 0x461   :  { %5486 = vmatpush1.bf16.msra.mxu0 %v7342_v11  ;;  %5515 = vmatpush3.bf16.msra.mxu1 %v7783_v51  ;;  %v7827_v11 = vpop.f32.mrb[16].mxu1  ;;  %v2545_v38 = vld [vmem:[%s8657_s0 + $0x25] sm:$0x1]  ;;  %v2609_v56 = vrot.slane %v2544_v50, 5  ;;  %v2546_v39 = vld [vmem:[%s8657_s0 + $0x2d] sm:$0x1] }
 0x462   :  { %2044 = vst [vmem:[%s8662_s6 + $0x3b] sm:$0x1] %v2028_v52  ;;  %5488 = vmatprep.subr.bf16.mxu0 %v7344_v63  ;;  %5516 = vmatprep.subr.bf16.mxu1 %v5929_v3  ;;  %v4669_v63 = vpop.f32.mrb[17].mxu1  ;;  %v2611_v18 = vrot.slane %v2545_v38, 4  ;;  %v2547_v49 = vld [vmem:[%s8657_s0 + $0x35] sm:$0x1] }
 0x463   :  { %v2613_v52 = vrot.slane %v2546_v39, 3  ;;  %v2548_v63 = vld [vmem:[%s8657_s0 + $0x3d] sm:$0x1]  ;;  %v3054_v40 = vld [vmem:[%s8656_s2 + $0x48] sm:$0xff] }
 0x464   :  { %v3058_v38 = vld [vmem:[%s8656_s2 + $0x68] sm:$0xff] }
 0x465   :  { %5490 = vmatpush1.bf16.msra.mxu0 %v7369_v29  ;;  %5518 = vmatpush3.bf16.msra.mxu1 %v7808_v17  ;;  %v2575_v29 = vld [vmem:[%s8656_s2 + $0xd0] sm:$0xff] }
 0x466   :  { %5492 = vmatprep.subr.bf16.mxu0 %v7395_v33  ;;  %5519 = vmatprep.subr.bf16.mxu1 %v5929_v3  ;;  %v2578_v33 = vld [vmem:[%s8656_s2 + $0xe8] sm:$0xff] }
 0x469   :  { %5494 = vmatpush1.bf16.msra.mxu0 %v7403_v26  ;;  %v7835_v26 = vpack.c.bf16 %v2578_v33, %v2575_v29  ;;  %v2615_v33 = vrot.slane %v2547_v49, 2  ;;  %v3057_v49 = vld [vmem:[%s8656_s2 + $0x60] sm:$0xff] }
 0x46a   :  { %5496 = vmatprep.subr.bf16.mxu0 %v7413_v54  ;;  %v2581_v54 = vld [vmem:[%s8656_s2 + $0x100] sm:$0xff] }
 0x46b   :  { %5521 = vmatpush3.bf16.msra.mxu1 %v7835_v26 }
 0x46c   :  { %5522 = vmatprep.subr.bf16.mxu1 %v5929_v3 }
 0x46d   :  { %5498 = vmatpush1.bf16.msra.mxu0 %v7421_v20  ;;  %v2584_v20 = vld [vmem:[%s8656_s2 + $0x118] sm:$0xff] }
 0x46e   :  { %5500 = vmatprep.subr.bf16.mxu0 %v7431_v31  ;;  %v7845_v31 = vpack.c.bf16 %v2584_v20, %v2581_v54  ;;  %v2617_v20 = vrot.slane %v2548_v63, 1 }
 0x470   :  { %5524 = vmatpush3.bf16.msra.mxu1 %v7845_v31 }
 0x471   :  { %5502 = vmatpush1.bf16.msra.mxu0 %v7439_v9  ;;  %5525 = vmatprep.subr.bf16.mxu1 %v5929_v3  ;;  %v2587_v9 = vld [vmem:[%s8656_s2 + $0x130] sm:$0xff] }
 0x472   :  { %5504 = vmatprep.subr.bf16.mxu0 %v7458_v2  ;;  %v2590_v2 = vld [vmem:[%s8656_s2 + $0x148] sm:$0xff] }
 0x475   :  { %5506 = vmatpush1.bf16.msra.mxu0 %v7470_v30  ;;  %v7855_v30 = vpack.c.bf16 %v2590_v2, %v2587_v9 }
 0x476   :  { %5532 = vmatprep.subr.bf16.mxu0 %v7494_v55  ;;  %v2542_v55 = vld [vmem:[%s8657_s0 + $0xd] sm:$0x1] }
 0x477   :  { %v2605_v42 = vrot.slane %v2542_v55, 7  ;;  %5527 = vmatpush3.bf16.msra.mxu1 %v7855_v30  ;;  %v3048_v55 = vld [vmem:[%s8656_s2 + $0x18] sm:$0xff] }
 0x478   :  { %5528 = vmatprep.subr.bf16.mxu1 %v5929_v3 }
 0x479   :  { %v2606_v32 = vsel %vm119_vm1, %v2605_v42, %v2541_v60  ;;  %v3055_v42 = vld [vmem:[%s8656_s2 + $0x50] sm:$0xff] }
 0x47a   :  { %v2608_v27 = vsel %vm122_vm2, %v2607_v47, %v2606_v32  ;;  %v3061_v32 = vld [vmem:[%s8656_s2 + $0x80] sm:$0xff] }
 0x47b   :  { %v2610_v46 = vsel %vm125_vm3, %v2609_v56, %v2608_v27  ;;  %5530 = vmatpush3.bf16.msra.mxu1 %v7881_v35 }
 0x47c   :  { %v2612_v29 = vsel %vm128_vm4, %v2611_v18, %v2610_v46  ;;  %5563 = vmatprep.subr.bf16.mxu1 %v5929_v3  ;;  %v7989_v18 = vpack.c.bf16 %v3061_v32, %v3058_v38  ;;  %v3087_v32 = vld [vmem:[%s8656_s2 + $0x150] sm:$0xff] }
 0x47d   :  { %v2614_v54 = vsel %vm131_vm5, %v2613_v52, %v2612_v29  ;;  %v3064_v29 = vld [vmem:[%s8656_s2 + $0x98] sm:$0xff] }
 0x47e   :  { %v2616_v9 = vsel %vm134_vm6, %v2615_v33, %v2614_v54  ;;  %v3067_v33 = vld [vmem:[%s8656_s2 + $0xb0] sm:$0xff] }
 0x47f   :  { %v2618_v2 = vsel %vm137_vm7, %v2617_v20, %v2616_v9 }
 0x480   :  { %2685 = vmatmul.mubr.f32.vlgmr.msra.gmra.mrb[10].mxu0 %v2618_v2  ;;  %4738 = vmatmul.mubr.f32.vlgmr.msra.gmra.mrb[20].mxu1 %v2618_v2 }
 0x481   :  { %5534 = vmatpush1.bf16.msra.mxu0 %v7507_v0  ;;  %5565 = vmatpush3.bf16.msra.mxu1 %v7514_v1  ;;  %v3046_v0 = vld [vmem:[%s8656_s2 + $0x8] sm:$0xff]  ;;  %v3049_v1 = vld [vmem:[%s8656_s2 + $0x20] sm:$0xff] }
 0x482   :  { %5536 = vmatprep.subr.bf16.mxu0 %v7523_v19  ;;  %5566 = vmatprep.subr.bf16.mxu1 %v5929_v3  ;;  %v7940_v19 = vpack.c.bf16 %v3049_v1, %v3046_v0  ;;  %v8025_v1 = vpack.c.bf16 %v3067_v33, %v3064_v29  ;;  %v3043_v33 = vld [vmem:[%s8657_s0 + $0x36] sm:$0x1] }
 0x483   :  { %2873 = vmatprep.mubr.f32.mxu0 %v5930_v4  ;;  %4772 = vmatprep.mubr.msk.f32.mxu1 %vm5931_vm0, %v5930_v4 }
 0x485   :  { %5538 = vmatpush1.bf16.msra.mxu0 %v7536_v43  ;;  %5568 = vmatpush3.bf16.msra.mxu1 %v7543_v61 }
 0x486   :  { %5540 = vmatprep.subr.bf16.mxu0 %v7554_v57  ;;  %5569 = vmatprep.subr.bf16.mxu1 %v5929_v3 }
 0x489   :  { %5542 = vmatpush1.bf16.msra.mxu0 %v7567_v34  ;;  %5571 = vmatpush3.bf16.msra.mxu1 %v7574_v48 }
 0x48a   :  { %5544 = vmatprep.subr.bf16.mxu0 %v7582_v7  ;;  %5572 = vmatprep.subr.bf16.mxu1 %v5929_v3 }
 0x48d   :  { %5546 = vmatpush1.bf16.msra.mxu0 %v7595_v5  ;;  %5574 = vmatpush3.bf16.msra.mxu1 %v7602_v59 }
 0x48e   :  { %5548 = vmatprep.subr.bf16.mxu0 %v7610_v12  ;;  %5575 = vmatprep.subr.bf16.mxu1 %v5929_v3 }
 0x491   :  { %5550 = vmatpush1.bf16.msra.mxu0 %v7623_v15  ;;  %5577 = vmatpush3.bf16.msra.mxu1 %v7636_v21 }
 0x492   :  { %5552 = vmatprep.subr.bf16.mxu0 %v7638_v53  ;;  %5578 = vmatprep.subr.bf16.mxu1 %v5929_v3 }
 0x495   :  { %5554 = vmatpush1.bf16.msra.mxu0 %v7660_v6  ;;  %5580 = vmatpush3.bf16.msra.mxu1 %v7662_v36  ;;  %v2262_v36 = vadd.f32 %v7827_v11, %v6585_v44  ;;  %v3052_v11 = vld [vmem:[%s8656_s2 + $0x38] sm:$0xff] }
 0x496   :  { %5556 = vmatprep.subr.bf16.mxu0 %v7669_v25  ;;  %5581 = vmatprep.subr.bf16.mxu1 %v5929_v3  ;;  %v7968_v22 = vpack.c.bf16 %v3055_v42, %v3052_v11  ;;  %v3088_v42 = vld [vmem:[%s8656_s2 + $0x158] sm:$0xff] }
 0x499   :  { %5558 = vmatpush1.bf16.msra.mxu0 %v7688_v23  ;;  %5583 = vmatpush3.bf16.msra.mxu1 %v7690_v45 }
 0x49a   :  { %5560 = vmatprep.subr.bf16.mxu0 %v7697_v13  ;;  %5584 = vmatprep.subr.bf16.mxu1 %v5929_v3 }
 0x49d   :  { %5562 = vmatpush1.bf16.msra.mxu0 %v7710_v28  ;;  %5586 = vmatpush3.bf16.msra.mxu1 %v7712_v10  ;;  %v3045_v10 = vld [vmem:[%s8656_s2] sm:$0xff] }
 0x49e   :  { %5619 = vmatprep.subr.bf16.mxu1 %v5929_v3  ;;  %5588 = vmatprep.subr.bf16.mxu0 %v7940_v19  ;;  %v7961_v50 = vpack.c.bf16 %v3048_v55, %v3045_v10  ;;  %v3038_v55 = vld [vmem:[%s8657_s0 + $0xe] sm:$0x1] }
 0x49f   :  { %v3101_v11 = vrot.slane %v3038_v55, 7  ;;  %v3266_v55 = vld [vmem:[%s8658_s3 + $0x48] sm:$0xff] }
 0x52b   :  { %v2379_v43 = vpop.f32.mrb[8].mxu0  ;;  %v2450_v61 = vpop.f32.mrb[18].mxu1 }
 0x52c   :  { %v5819_v57 = vadd.f32 %v2379_v43, %v6574_v37  ;;  %v2381_v34 = vpop.f32.mrb[9].mxu0  ;;  %v4704_v48 = vpop.f32.mrb[19].mxu1  ;;  %v2468_v53 = vadd.f32 %v7725_v16, %v2450_v61 }
 0x52d   :  { %v5820_v5 = vadd.f32 %v2381_v34, %v6577_v8  ;;  %v3066_v34 = vld [vmem:[%s8656_s2 + $0xa8] sm:$0xff] }
 0x52e   :  { %v4059_v7 = vmul.f32 -1.442695, %v5819_v57 }
 0x52f   :  { %v4060_v59 = vmul.f32 -1.442695, %v5820_v5 }
 0x530   :  { %5887 = vpow2.f32 %v4059_v7 }
 0x531   :  { %5889 = vpow2.f32 %v4060_v59 }
 0x53a   :  { %v5888_v12 = vpop.eup %5887 }
 0x53b   :  { %v2458_v15 = vadd.f32 1.0, %v5888_v12  ;;  %v5890_v21 = vpop.eup %5889  ;;  %v3076_v12 = vld [vmem:[%s8656_s2 + $0xf8] sm:$0xff] }
 0x53c   :  { %v2465_v45 = vadd.f32 1.0, %v5890_v21 }
 0x53d   :  { %5891 = vrcp.f32 %v2458_v15  ;;  %v3079_v15 = vld [vmem:[%s8656_s2 + $0x110] sm:$0xff] }
 0x53e   :  { %v8094_v21 = vpack.c.bf16 %v3079_v15, %v3076_v12  ;;  %v3262_v12 = vld [vmem:[%s8658_s3 + $0x28] sm:$0xff] }
 0x547   :  { %v5892_v6 = vpop.eup %5891 }
 0x548   :  { %v2469_v25 = vmul.f32 %v5892_v6, %v2468_v53  ;;  %v3075_v53 = vld [vmem:[%s8656_s2 + $0xf0] sm:$0xff]  ;;  %v3078_v6 = vld [vmem:[%s8656_s2 + $0x108] sm:$0xff] }
 0x54a   :  { %v2470_v23 = vadd.f32 %v2469_v25, %v2262_v36  ;;  %v8102_v36 = vpack.c.bf16 %v3078_v6, %v3075_v53  ;;  %v3082_v25 = vld [vmem:[%s8656_s2 + $0x128] sm:$0xff] }
 0x54c   :  { %5893 = vtanh.f32 %v2470_v23  ;;  %v3085_v23 = vld [vmem:[%s8656_s2 + $0x140] sm:$0xff] }
 0x54d   :  { %5895 = vrcp.f32 %v2465_v45  ;;  %v8112_v45 = vpack.c.bf16 %v3085_v23, %v3082_v25  ;;  %v3264_v25 = vld [vmem:[%s8658_s3 + $0x38] sm:$0xff]  ;;  %v3267_v23 = vld [vmem:[%s8658_s3 + $0x50] sm:$0xff] }
 0x556   :  { %v5894_v13 = vpop.eup %5893 }
 0x557   :  { %v2472_v28 = vsub.f32 %v7739_v14, %v5894_v13  ;;  %v5896_v41 = vpop.eup %5895  ;;  %v3051_v14 = vld [vmem:[%s8656_s2 + $0x30] sm:$0xff] }
 0x558   :  { %v7987_v27 = vpack.c.bf16 %v3054_v40, %v3051_v14  ;;  %v3037_v14 = vld [vmem:[%s8657_s0 + $0x6] sm:$0x1] }
 0x559   :  { %v2473_v60 = vmul.f32 %v5896_v41, %v2472_v28  ;;  %v3084_v28 = vld [vmem:[%s8656_s2 + $0x138] sm:$0xff]  ;;  %v3039_v41 = vld [vmem:[%s8657_s0 + $0x16] sm:$0x1] }
 0x55a   :  { %v3103_v40 = vrot.slane %v3039_v41, 6  ;;  %v3265_v41 = vld [vmem:[%s8658_s3 + $0x40] sm:$0xff] }
 0x55b   :  { %v7966_v47 = vadd.f32 %v5894_v13, %v2473_v60  ;;  %v3081_v13 = vld [vmem:[%s8656_s2 + $0x120] sm:$0xff]  ;;  %v3091_v60 = vld [vmem:[%s8656_s2 + $0x170] sm:$0xff] }
 0x55c   :  { %v8120_v10 = vpack.c.bf16 %v3084_v28, %v3081_v13  ;;  %v8139_v38 = vpack.c.bf16 %v3091_v60, %v3088_v42  ;;  %v8204_v13 = vpack.c.bf16 %v3267_v23, %v3264_v25  ;;  %v3263_v28 = vld [vmem:[%s8658_s3 + $0x30] sm:$0xff]  ;;  %v3268_v42 = vld [vmem:[%s8658_s3 + $0x58] sm:$0xff] }
 0x55d   :  { %v2476_v56 = vcombine.high %v7966_v47, %v7966_v47  ;;  %v2483_v39 = vrot.slane %v7966_v47, %v6602_v62  ;;  %2874 = vmatmul.mubr.f32.vlgmr.msra.gmra.mrb[10].mxu0 %v7966_v47  ;;  %4773 = vmatmul.mubr.f32.vlgmr.msra.gmra.mrb[22].mxu1 %v7966_v47  ;;  %v8224_v60 = vpack.c.bf16 %v3268_v42, %v3265_v41  ;;  %v3291_v25 = vld [vmem:[%s8658_s3 + $0x110] sm:$0xff]  ;;  %v3290_v41 = vld [vmem:[%s8658_s3 + $0x108] sm:$0xff]  ;;  %v3289_v42 = vld [vmem:[%s8658_s3 + $0x100] sm:$0xff] }
 0x55e   :  { %5590 = vmatpush1.bf16.msra.mxu0 %v7961_v50  ;;  %5621 = vmatpush3.bf16.msra.mxu1 %v7737_v24  ;;  %v3060_v24 = vld [vmem:[%s8656_s2 + $0x78] sm:$0xff] }
 0x55f   :  { %v2490_v46 = vrot.slane %v2476_v56, %v6602_v62  ;;  %v2491_v52 = vcombine.high %v2483_v39, %v2483_v39  ;;  %v2499_v63 = vrot.slane %v2483_v39, %v6602_v62  ;;  %4061 = vst.sshfl [vmem:[%s8662_s6 + $0x4] sm:$0x1 pattern:$0x73625140] %v2483_v39  ;;  %5592 = vmatprep.subr.bf16.mxu0 %v7968_v22  ;;  %v3090_v56 = vld [vmem:[%s8656_s2 + $0x168] sm:$0xff] }
 0x560   :  { %5622 = vmatprep.subr.bf16.mxu1 %v5929_v3  ;;  %3180 = vmatprep.mubr.f32.mxu0 %v5930_v4  ;;  %v8023_v0 = vpack.c.bf16 %v3060_v24, %v3057_v49  ;;  %v3040_v39 = vld [vmem:[%s8657_s0 + $0x1e] sm:$0x1]  ;;  %v3102_v49 = vsel %vm119_vm1, %v3101_v11, %v3037_v14  ;;  %v8217_v11 = vpack.c.bf16 %v3266_v55, %v3263_v28  ;;  %v3270_v14 = vld [vmem:[%s8658_s3 + $0x68] sm:$0xff]  ;;  %v3287_v55 = vld [vmem:[%s8658_s3 + $0xf0] sm:$0xff] }
 0x561   :  { %4807 = vmatprep.mubr.msk.f32.mxu1 %vm5931_vm0, %v5930_v4  ;;  %v2492_v54 = vcombine.high %v2490_v46, %v2490_v46  ;;  %v2506_v20 = vrot.slane %v2490_v46, %v6602_v62  ;;  %v2513_v9 = vrot.slane %v2491_v52, %v6602_v62  ;;  %v2521_v2 = vcombine.high %v2499_v63, %v2499_v63  ;;  %v3042_v63 = vld [vmem:[%s8657_s0 + $0x2e] sm:$0x1] }
 0x562   :  { %4062 = vst.sshfl [vmem:[%s8662_s6 + $0xc] sm:$0x1 pattern:$0x73625140] %v2491_v52  ;;  %5594 = vmatpush1.bf16.msra.mxu0 %v7987_v27  ;;  %5624 = vmatpush3.bf16.msra.mxu1 %v7755_v58  ;;  %v3063_v58 = vld [vmem:[%s8656_s2 + $0x90] sm:$0xff]  ;;  %v3104_v24 = vsel %vm122_vm2, %v3103_v40, %v3102_v49  ;;  %v3105_v29 = vrot.slane %v3040_v39, 5 }
 0x563   :  { %4063 = vst.sshfl [vmem:[%s8662_s6 + $0x24] sm:$0x1 pattern:$0x73625140] %v2490_v46  ;;  %v2520_v43 = vrot.slane %v2492_v54, %v6602_v62  ;;  %v2522_v61 = vcombine.high %v2506_v20, %v2506_v20  ;;  %v2523_v57 = vcombine.high %v2513_v9, %v2513_v9  ;;  %2535 = vst [vmem:[%s8662_s6 + $0x14] sm:$0x1] %v2521_v2  ;;  %5596 = vmatprep.subr.bf16.mxu0 %v7989_v18 }
 0x564   :  { %4064 = vst.sshfl [vmem:[%s8662_s6 + $0x2c] sm:$0x1 pattern:$0x73625140] %v2492_v54  ;;  %5625 = vmatprep.subr.bf16.mxu1 %v5929_v3  ;;  %v8050_v7 = vpack.c.bf16 %v3066_v34, %v3063_v58  ;;  %v8151_v46 = vpack.c.bf16 %v3090_v56, %v3087_v32  ;;  %v3041_v52 = vld [vmem:[%s8657_s0 + $0x26] sm:$0x1] }
 0x565   :  { %v2524_v48 = vcombine.high %v2520_v43, %v2520_v43  ;;  %2536 = vst [vmem:[%s8662_s6 + $0x1c] sm:$0x1] %v2523_v57  ;;  %2539 = vst [vmem:[%s8662_s6 + $0x34] sm:$0x1] %v2522_v61  ;;  %v3107_v54 = vrot.slane %v3041_v52, 4  ;;  %v3109_v20 = vrot.slane %v3042_v63, 3  ;;  %v3106_v61 = vsel %vm125_vm3, %v3105_v29, %v3104_v24 }
 0x566   :  { %5598 = vmatpush1.bf16.msra.mxu0 %v8023_v0  ;;  %5627 = vmatpush3.bf16.msra.mxu1 %v7783_v51  ;;  %v8068_v51 = vpop.f32.mrb[20].mxu1  ;;  %v3258_v9 = vld [vmem:[%s8658_s3 + $0x8] sm:$0xff]  ;;  %v3261_v2 = vld [vmem:[%s8658_s3 + $0x20] sm:$0xff]  ;;  %v3044_v43 = vld [vmem:[%s8657_s0 + $0x3e] sm:$0x1]  ;;  %v3111_v57 = vrot.slane %v3043_v33, 2 }
 0x567   :  { %2540 = vst [vmem:[%s8662_s6 + $0x3c] sm:$0x1] %v2524_v48  ;;  %5600 = vmatprep.subr.bf16.mxu0 %v8025_v1  ;;  %5628 = vmatprep.subr.bf16.mxu1 %v5929_v3  ;;  %v8175_v58 = vpack.c.bf16 %v3261_v2, %v3258_v9  ;;  %v3108_v34 = vsel %vm128_vm4, %v3107_v54, %v3106_v61  ;;  %v3113_v48 = vrot.slane %v3044_v43, 1  ;;  %v3273_v40 = vld [vmem:[%s8658_s3 + $0x80] sm:$0xff]  ;;  %v3272_v39 = vld [vmem:[%s8658_s3 + $0x78] sm:$0xff]  ;;  %v3271_v49 = vld [vmem:[%s8658_s3 + $0x70] sm:$0xff] }
 0x568   :  { %v8235_v32 = vpack.c.bf16 %v3273_v40, %v3270_v14  ;;  %v3269_v56 = vld [vmem:[%s8658_s3 + $0x60] sm:$0xff]  ;;  %v3274_v63 = vld [vmem:[%s8658_s3 + $0x88] sm:$0xff]  ;;  %v3276_v29 = vld [vmem:[%s8658_s3 + $0x98] sm:$0xff] }
 0x569   :  { %v8248_v52 = vpack.c.bf16 %v3272_v39, %v3269_v56  ;;  %v8255_v24 = vpack.c.bf16 %v3274_v63, %v3271_v49  ;;  %v3279_v33 = vld [vmem:[%s8658_s3 + $0xb0] sm:$0xff]  ;;  %v3278_v9 = vld [vmem:[%s8658_s3 + $0xa8] sm:$0xff]  ;;  %v3277_v2 = vld [vmem:[%s8658_s3 + $0xa0] sm:$0xff]  ;;  %v8341_v39 = vpack.c.bf16 %v3290_v41, %v3287_v55 }
 0x56a   :  { %5602 = vmatpush1.bf16.msra.mxu0 %v8050_v7  ;;  %5630 = vmatpush3.bf16.msra.mxu1 %v7808_v17  ;;  %v4739_v17 = vpop.f32.mrb[21].mxu1  ;;  %v8263_v54 = vpack.c.bf16 %v3279_v33, %v3276_v29  ;;  %v3280_v61 = vld [vmem:[%s8658_s3 + $0xb8] sm:$0xff]  ;;  %v3294_v40 = vld [vmem:[%s8658_s3 + $0x128] sm:$0xff]  ;;  %v3297_v56 = vld [vmem:[%s8658_s3 + $0x140] sm:$0xff] }
 0x56b   :  { %5631 = vmatprep.subr.bf16.mxu1 %v5929_v3  ;;  %v3257_v17 = vld [vmem:[%s8658_s3] sm:$0xff]  ;;  %v3292_v14 = vld [vmem:[%s8658_s3 + $0x118] sm:$0xff]  ;;  %v8350_v29 = vpack.c.bf16 %v3297_v56, %v3294_v40 }
 0x56c   :  { %v8343_v49 = vpack.c.bf16 %v3292_v14, %v3289_v42  ;;  %v3293_v63 = vld [vmem:[%s8658_s3 + $0x120] sm:$0xff]  ;;  %v3296_v33 = vld [vmem:[%s8658_s3 + $0x138] sm:$0xff] }
 0x56e   :  { %5633 = vmatpush3.bf16.msra.mxu1 %v7835_v26  ;;  %v3070_v26 = vld [vmem:[%s8656_s2 + $0xc8] sm:$0xff] }
 0x56f   :  { %5634 = vmatprep.subr.bf16.mxu1 %v5929_v3 }
 0x572   :  { %5636 = vmatpush3.bf16.msra.mxu1 %v7845_v31  ;;  %v3073_v31 = vld [vmem:[%s8656_s2 + $0xe0] sm:$0xff] }
 0x573   :  { %5637 = vmatprep.subr.bf16.mxu1 %v5929_v3  ;;  %v8076_v5 = vpack.c.bf16 %v3073_v31, %v3070_v26  ;;  %v3260_v26 = vld [vmem:[%s8658_s3 + $0x18] sm:$0xff]  ;;  %v3259_v31 = vld [vmem:[%s8658_s3 + $0x10] sm:$0xff] }
 0x574   :  { %v8195_v53 = vpack.c.bf16 %v3262_v12, %v3259_v31  ;;  %v3284_v31 = vld [vmem:[%s8658_s3 + $0xd8] sm:$0xff] }
 0x575   :  { %5604 = vmatprep.subr.bf16.mxu0 %v8076_v5 }
 0x576   :  { %5639 = vmatpush3.bf16.msra.mxu1 %v7855_v30  ;;  %v3069_v30 = vld [vmem:[%s8656_s2 + $0xc0] sm:$0xff] }
 0x577   :  { %5640 = vmatprep.subr.bf16.mxu1 %v5929_v3 }
 0x57a   :  { %5642 = vmatpush3.bf16.msra.mxu1 %v7881_v35  ;;  %v3072_v35 = vld [vmem:[%s8656_s2 + $0xd8] sm:$0xff] }
 0x57b   :  { %5675 = vmatprep.subr.bf16.mxu1 %v5929_v3  ;;  %v8084_v59 = vpack.c.bf16 %v3072_v35, %v3069_v30  ;;  %v3110_v30 = vsel %vm131_vm5, %v3109_v20, %v3108_v34  ;;  %v8188_v35 = vpack.c.bf16 %v3260_v26, %v3257_v17  ;;  %v3275_v20 = vld [vmem:[%s8658_s3 + $0x90] sm:$0xff]  ;;  %v3282_v34 = vld [vmem:[%s8658_s3 + $0xc8] sm:$0xff]  ;;  %v3281_v26 = vld [vmem:[%s8658_s3 + $0xc0] sm:$0xff] }
 0x57c   :  { %v3112_v15 = vsel %vm134_vm6, %v3111_v57, %v3110_v30  ;;  %v8276_v43 = vpack.c.bf16 %v3278_v9, %v3275_v20  ;;  %v8283_v57 = vpack.c.bf16 %v3280_v61, %v3277_v2  ;;  %v3283_v30 = vld [vmem:[%s8658_s3 + $0xd0] sm:$0xff]  ;;  %v8304_v12 = vpack.c.bf16 %v3284_v31, %v3281_v26  ;;  %v3298_v9 = vld [vmem:[%s8658_s3 + $0x148] sm:$0xff]  ;;  %v3300_v2 = vld [vmem:[%s8658_s3 + $0x158] sm:$0xff] }
 0x57d   :  { %5606 = vmatpush1.bf16.msra.mxu0 %v8084_v59  ;;  %v3114_v6 = vsel %vm137_vm7, %v3113_v48, %v3112_v15  ;;  %v3285_v48 = vld [vmem:[%s8658_s3 + $0xe0] sm:$0xff]  ;;  %v3286_v15 = vld [vmem:[%s8658_s3 + $0xe8] sm:$0xff]  ;;  %v3295_v20 = vld [vmem:[%s8658_s3 + $0x130] sm:$0xff] }
 0x57e   :  { %5608 = vmatprep.subr.bf16.mxu0 %v8094_v21  ;;  %4808 = vmatmul.mubr.f32.vlgmr.msra.gmra.mrb[24].mxu1 %v3114_v6  ;;  %v8291_v17 = vpack.c.bf16 %v3285_v48, %v3282_v34  ;;  %v8317_v23 = vpack.c.bf16 %v3286_v15, %v3283_v30  ;;  %v3303_v61 = vld [vmem:[%s8658_s3 + $0x170] sm:$0xff]  ;;  %v8369_v34 = vpack.c.bf16 %v3296_v33, %v3293_v63  ;;  %v3302_v30 = vld [vmem:[%s8658_s3 + $0x168] sm:$0xff]  ;;  %v3301_v15 = vld [vmem:[%s8658_s3 + $0x160] sm:$0xff] }
 0x57f   :  { %5677 = vmatpush3.bf16.msra.mxu1 %v8195_v53  ;;  %4842 = vmatprep.mubr.msk.f32.mxu1 %vm5931_vm0, %v5930_v4  ;;  %v8371_v48 = vpack.c.bf16 %v3298_v9, %v3295_v20  ;;  %v3299_v26 = vld [vmem:[%s8658_s3 + $0x150] sm:$0xff]  ;;  %v8378_v31 = vpack.c.bf16 %v3303_v61, %v3300_v2 }
 0x580   :  { %5678 = vmatprep.subr.bf16.mxu1 %v5929_v3 }
 0x581   :  { %5610 = vmatpush1.bf16.msra.mxu0 %v8102_v36 }
 0x582   :  { %5612 = vmatprep.subr.bf16.mxu0 %v8112_v45 }
 0x583   :  { %5680 = vmatpush3.bf16.msra.mxu1 %v8224_v60 }
 0x584   :  { %5681 = vmatprep.subr.bf16.mxu1 %v5929_v3 }
 0x585   :  { %5614 = vmatpush1.bf16.msra.mxu0 %v8120_v10 }
 0x586   :  { %5616 = vmatprep.subr.bf16.mxu0 %v8139_v38 }
 0x587   :  { %5683 = vmatpush3.bf16.msra.mxu1 %v8255_v24 }
 0x588   :  { %5684 = vmatprep.subr.bf16.mxu1 %v5929_v3 }
 0x589   :  { %5618 = vmatpush1.bf16.msra.mxu0 %v8151_v46 }
 0x58a   :  { %5644 = vmatprep.subr.bf16.mxu0 %v8175_v58 }
 0x58b   :  { %5686 = vmatpush3.bf16.msra.mxu1 %v8283_v57 }
 0x58c   :  { %3181 = vmatmul.mubr.f32.vlgmr.msra.gmra.mrb[12].mxu0 %v3114_v6  ;;  %v3288_v6 = vld [vmem:[%s8658_s3 + $0xf8] sm:$0xff]  ;;  %5687 = vmatprep.subr.bf16.mxu1 %v5929_v3 }
 0x58d   :  { %5646 = vmatpush1.bf16.msra.mxu0 %v8188_v35  ;;  %3369 = vmatprep.mubr.f32.mxu0 %v5930_v4  ;;  %v8319_v28 = vpack.c.bf16 %v3291_v25, %v3288_v6  ;;  %v3304_v6 = vld [vmem:[%s8658_s3 + $0x178] sm:$0xff]  ;;  %v8391_v25 = vpack.c.bf16 %v3302_v30, %v3299_v26  ;;  %v2758_v30 = vadd.f32 %v8068_v51, %v6585_v44 }
 0x58e   :  { %5648 = vmatprep.subr.bf16.mxu0 %v8204_v13  ;;  %v8393_v55 = vpack.c.bf16 %v3304_v6, %v3301_v15 }
 0x58f   :  { %5689 = vmatpush3.bf16.msra.mxu1 %v8317_v23 }
 0x590   :  { %5690 = vmatprep.subr.bf16.mxu1 %v5929_v3 }
 0x591   :  { %5650 = vmatpush1.bf16.msra.mxu0 %v8217_v11 }
 0x592   :  { %5652 = vmatprep.subr.bf16.mxu0 %v8235_v32 }
 0x593   :  { %5692 = vmatpush3.bf16.msra.mxu1 %v8343_v49 }
 0x594   :  { %5693 = vmatprep.subr.bf16.mxu1 %v5929_v3 }
 0x595   :  { %5654 = vmatpush1.bf16.msra.mxu0 %v8248_v52 }
 0x596   :  { %5656 = vmatprep.subr.bf16.mxu0 %v8263_v54 }
 0x597   :  { %5695 = vmatpush3.bf16.msra.mxu1 %v8371_v48 }
 0x598   :  { %5696 = vmatprep.subr.bf16.mxu1 %v5929_v3 }
 0x599   :  { %5658 = vmatpush1.bf16.msra.mxu0 %v8276_v43 }
 0x59a   :  { %5660 = vmatprep.subr.bf16.mxu0 %v8291_v17 }
 0x59b   :  { %5698 = vmatpush3.bf16.msra.mxu1 %v8393_v55 }
 0x59c   :  { %5731 = vmatprep.subr.bf16.mxu1 %v5929_v3 }
 0x59d   :  { %5662 = vmatpush1.bf16.msra.mxu0 %v8304_v12 }
 0x59e   :  { %5664 = vmatprep.subr.bf16.mxu0 %v8319_v28 }
 0x5a1   :  { %5666 = vmatpush1.bf16.msra.mxu0 %v8341_v39 }
 0x5a2   :  { %5668 = vmatprep.subr.bf16.mxu0 %v8350_v29 }
 0x5a5   :  { %5670 = vmatpush1.bf16.msra.mxu0 %v8369_v34 }
 0x5a6   :  { %5672 = vmatprep.subr.bf16.mxu0 %v8378_v31 }
 0x5a9   :  { %5674 = vmatpush1.bf16.msra.mxu0 %v8391_v25 }
 0x5aa   :  { %5700 = vmatprep.subr.bf16.mxu0 %v7940_v19 }
 0x630   :  { %v2875_v41 = vpop.f32.mrb[10].mxu0  ;;  %v2946_v42 = vpop.f32.mrb[22].mxu1 }
 0x631   :  { %v5821_v14 = vadd.f32 %v2875_v41, %v6574_v37  ;;  %v2877_v40 = vpop.f32.mrb[11].mxu0  ;;  %v4774_v56 = vpop.f32.mrb[23].mxu1  ;;  %v2964_v19 = vadd.f32 %v7725_v16, %v2946_v42  ;;  %v3546_v16 = vld [vmem:[%s8656_s2 + $0x28] sm:$0xff] }
 0x632   :  { %v5822_v33 = vadd.f32 %v2877_v40, %v6577_v8  ;;  %v3543_v56 = vld [vmem:[%s8656_s2 + $0x10] sm:$0xff] }
 0x633   :  { %v4065_v63 = vmul.f32 -1.442695, %v5821_v14 }
 0x634   :  { %v4066_v20 = vmul.f32 -1.442695, %v5822_v33  ;;  %v5732_v33 = vpack.c.bf16 %v3546_v16, %v3543_v56 }
 0x635   :  { %5897 = vpow2.f32 %v4065_v63 }
 0x636   :  { %5899 = vpow2.f32 %v4066_v20  ;;  %v3549_v20 = vld [vmem:[%s8656_s2 + $0x40] sm:$0xff] }
 0x63f   :  { %v5898_v9 = vpop.eup %5897 }
 0x640   :  { %v2954_v2 = vadd.f32 1.0, %v5898_v9  ;;  %v5900_v61 = vpop.eup %5899 }
 0x641   :  { %v2961_v41 = vadd.f32 1.0, %v5900_v61 }
 0x642   :  { %5901 = vrcp.f32 %v2954_v2 }
 0x64c   :  { %v5902_v26 = vpop.eup %5901 }
 0x64d   :  { %v2965_v15 = vmul.f32 %v5902_v26, %v2964_v19 }
 0x64f   :  { %v2966_v6 = vadd.f32 %v2965_v15, %v2758_v30  ;;  %v3555_v15 = vld [vmem:[%s8656_s2 + $0x70] sm:$0xff] }
 0x651   :  { %5903 = vtanh.f32 %v2966_v6 }
 0x652   :  { %5905 = vrcp.f32 %v2961_v41 }
 0x65b   :  { %v5904_v14 = vpop.eup %5903 }
 0x65c   :  { %v2968_v40 = vsub.f32 %v7966_v47, %v5904_v14  ;;  %v5906_v42 = vpop.eup %5905  ;;  %v3552_v47 = vld [vmem:[%s8656_s2 + $0x58] sm:$0xff] }
 0x65d   :  { %v5735_v61 = vpack.c.bf16 %v3552_v47, %v3549_v20  ;;  %v3535_v20 = vld [vmem:[%s8657_s0 + $0x17] sm:$0x1] }
 0x65e   :  { %v2969_v63 = vmul.f32 %v5906_v42, %v2968_v40 }
 0x660   :  { %v8413_v51 = vadd.f32 %v5904_v14, %v2969_v63  ;;  %v3564_v63 = vld [vmem:[%s8656_s2 + $0xb8] sm:$0xff] }
 0x662   :  { %v2972_v9 = vcombine.high %v8413_v51, %v8413_v51  ;;  %v2979_v2 = vrot.slane %v8413_v51, %v6602_v62  ;;  %3370 = vmatmul.mubr.f32.vlgmr.msra.gmra.mrb[12].mxu0 %v8413_v51  ;;  %4843 = vmatmul.mubr.f32.vlgmr.msra.gmra.mrb[26].mxu1 %v8413_v51 }
 0x663   :  { %5702 = vmatpush1.bf16.msra.mxu0 %v7961_v50  ;;  %5733 = vmatpush3.bf16.msra.mxu1 %v5732_v33  ;;  %v3558_v50 = vld [vmem:[%s8656_s2 + $0x88] sm:$0xff] }
 0x664   :  { %v2986_v19 = vrot.slane %v2972_v9, %v6602_v62  ;;  %v2987_v26 = vcombine.high %v2979_v2, %v2979_v2  ;;  %v2995_v30 = vrot.slane %v2979_v2, %v6602_v62  ;;  %4067 = vst.sshfl [vmem:[%s8662_s6 + $0x5] sm:$0x1 pattern:$0x73625140] %v2979_v2  ;;  %5704 = vmatprep.subr.bf16.mxu0 %v7968_v22  ;;  %v3533_v9 = vld [vmem:[%s8657_s0 + $0x7] sm:$0x1] }
 0x665   :  { %5734 = vmatprep.subr.bf16.mxu1 %v5929_v3  ;;  %3676 = vmatprep.mubr.f32.mxu0 %v5930_v4  ;;  %v5738_v40 = vpack.c.bf16 %v3558_v50, %v3555_v15  ;;  %v3536_v2 = vld [vmem:[%s8657_s0 + $0x1f] sm:$0x1] }
 0x666   :  { %4877 = vmatprep.mubr.msk.f32.mxu1 %vm5931_vm0, %v5930_v4  ;;  %v2988_v6 = vcombine.high %v2986_v19, %v2986_v19  ;;  %v3002_v41 = vrot.slane %v2986_v19, %v6602_v62  ;;  %v3009_v22 = vrot.slane %v2987_v26, %v6602_v62  ;;  %v3017_v14 = vcombine.high %v2995_v30, %v2995_v30  ;;  %v3537_v30 = vld [vmem:[%s8657_s0 + $0x27] sm:$0x1] }
 0x667   :  { %4068 = vst.sshfl [vmem:[%s8662_s6 + $0xd] sm:$0x1 pattern:$0x73625140] %v2987_v26  ;;  %5706 = vmatpush1.bf16.msra.mxu0 %v7987_v27  ;;  %5736 = vmatpush3.bf16.msra.mxu1 %v5735_v61  ;;  %v3561_v27 = vld [vmem:[%s8656_s2 + $0xa0] sm:$0xff]  ;;  %v3599_v61 = vrot.slane %v3535_v20, 6 }
 0x668   :  { %4069 = vst.sshfl [vmem:[%s8662_s6 + $0x25] sm:$0x1 pattern:$0x73625140] %v2986_v19  ;;  %v3016_v56 = vrot.slane %v2988_v6, %v6602_v62  ;;  %v3018_v16 = vcombine.high %v3002_v41, %v3002_v41  ;;  %v3019_v42 = vcombine.high %v3009_v22, %v3009_v22  ;;  %3031 = vst [vmem:[%s8662_s6 + $0x15] sm:$0x1] %v3017_v14  ;;  %5708 = vmatprep.subr.bf16.mxu0 %v7989_v18 }
 0x669   :  { %4070 = vst.sshfl [vmem:[%s8662_s6 + $0x2d] sm:$0x1 pattern:$0x73625140] %v2988_v6  ;;  %5737 = vmatprep.subr.bf16.mxu1 %v5929_v3  ;;  %v5741_v18 = vpack.c.bf16 %v3564_v63, %v3561_v27  ;;  %v3585_v19 = vld [vmem:[%s8656_s2 + $0x160] sm:$0xff]  ;;  %v3588_v26 = vld [vmem:[%s8656_s2 + $0x178] sm:$0xff] }
 0x66a   :  { %v3020_v33 = vcombine.high %v3016_v56, %v3016_v56  ;;  %3032 = vst [vmem:[%s8662_s6 + $0x1d] sm:$0x1] %v3019_v42  ;;  %3035 = vst [vmem:[%s8662_s6 + $0x35] sm:$0x1] %v3018_v16  ;;  %v3601_v50 = vrot.slane %v3536_v2, 5  ;;  %v5753_v6 = vpack.c.bf16 %v3588_v26, %v3585_v19  ;;  %v3603_v14 = vrot.slane %v3537_v30, 4 }
 0x66b   :  { %5710 = vmatpush1.bf16.msra.mxu0 %v8023_v0  ;;  %5739 = vmatpush3.bf16.msra.mxu1 %v5738_v40  ;;  %v8491_v0 = vpop.f32.mrb[24].mxu1  ;;  %v3538_v41 = vld [vmem:[%s8657_s0 + $0x2f] sm:$0x1]  ;;  %v3539_v40 = vld [vmem:[%s8657_s0 + $0x37] sm:$0x1] }
 0x66c   :  { %3036 = vst [vmem:[%s8662_s6 + $0x3d] sm:$0x1] %v3020_v33  ;;  %5712 = vmatprep.subr.bf16.mxu0 %v8025_v1  ;;  %5740 = vmatprep.subr.bf16.mxu1 %v5929_v3  ;;  %v4809_v1 = vpop.f32.mrb[25].mxu1  ;;  %v3605_v16 = vrot.slane %v3538_v41, 3  ;;  %v3540_v42 = vld [vmem:[%s8657_s0 + $0x3f] sm:$0x1] }
 0x66d   :  { %v3607_v63 = vrot.slane %v3539_v40, 2 }
 0x66f   :  { %5714 = vmatpush1.bf16.msra.mxu0 %v8050_v7  ;;  %5742 = vmatpush3.bf16.msra.mxu1 %v5741_v18  ;;  %v3567_v7 = vld [vmem:[%s8656_s2 + $0xd0] sm:$0xff]  ;;  %v3609_v18 = vrot.slane %v3540_v42, 1 }
 0x670   :  { %5716 = vmatprep.subr.bf16.mxu0 %v8076_v5  ;;  %5743 = vmatprep.subr.bf16.mxu1 %v5929_v3  ;;  %v3570_v5 = vld [vmem:[%s8656_s2 + $0xe8] sm:$0xff] }
 0x673   :  { %5718 = vmatpush1.bf16.msra.mxu0 %v8084_v59  ;;  %v5744_v59 = vpack.c.bf16 %v3570_v5, %v3567_v7 }
 0x674   :  { %5720 = vmatprep.subr.bf16.mxu0 %v8094_v21  ;;  %v3573_v21 = vld [vmem:[%s8656_s2 + $0x100] sm:$0xff] }
 0x675   :  { %5745 = vmatpush3.bf16.msra.mxu1 %v5744_v59 }
 0x676   :  { %5746 = vmatprep.subr.bf16.mxu1 %v5929_v3 }
 0x677   :  { %5722 = vmatpush1.bf16.msra.mxu0 %v8102_v36  ;;  %v3576_v36 = vld [vmem:[%s8656_s2 + $0x118] sm:$0xff] }
 0x678   :  { %5724 = vmatprep.subr.bf16.mxu0 %v8112_v45  ;;  %v5747_v45 = vpack.c.bf16 %v3576_v36, %v3573_v21 }
 0x67a   :  { %5748 = vmatpush3.bf16.msra.mxu1 %v5747_v45 }
 0x67b   :  { %5726 = vmatpush1.bf16.msra.mxu0 %v8120_v10  ;;  %5749 = vmatprep.subr.bf16.mxu1 %v5929_v3  ;;  %v3579_v10 = vld [vmem:[%s8656_s2 + $0x130] sm:$0xff] }
 0x67c   :  { %5728 = vmatprep.subr.bf16.mxu0 %v8139_v38  ;;  %v3582_v38 = vld [vmem:[%s8656_s2 + $0x148] sm:$0xff] }
 0x67f   :  { %5730 = vmatpush1.bf16.msra.mxu0 %v8151_v46  ;;  %v5750_v46 = vpack.c.bf16 %v3582_v38, %v3579_v10 }
 0x680   :  { %5756 = vmatprep.subr.bf16.mxu0 %v8175_v58  ;;  %v3534_v58 = vld [vmem:[%s8657_s0 + $0xf] sm:$0x1] }
 0x681   :  { %v3597_v47 = vrot.slane %v3534_v58, 7  ;;  %5751 = vmatpush3.bf16.msra.mxu1 %v5750_v46 }
 0x682   :  { %5752 = vmatprep.subr.bf16.mxu1 %v5929_v3 }
 0x683   :  { %v3598_v15 = vsel %vm119_vm1, %v3597_v47, %v3533_v9 }
 0x684   :  { %v3600_v22 = vsel %vm122_vm2, %v3599_v61, %v3598_v15 }
 0x685   :  { %v3602_v56 = vsel %vm125_vm3, %v3601_v50, %v3600_v22  ;;  %5754 = vmatpush3.bf16.msra.mxu1 %v5753_v6 }
 0x686   :  { %v3604_v27 = vsel %vm128_vm4, %v3603_v14, %v3602_v56  ;;  %5787 = vmatprep.subr.bf16.mxu1 %v5929_v3 }
 0x687   :  { %v3606_v33 = vsel %vm131_vm5, %v3605_v16, %v3604_v27 }
 0x688   :  { %v3608_v1 = vsel %vm134_vm6, %v3607_v63, %v3606_v33 }
 0x689   :  { %v3610_v7 = vsel %vm137_vm7, %v3609_v18, %v3608_v1 }
 0x68a   :  { %3677 = vmatmul.mubr.f32.vlgmr.msra.gmra.mrb[14].mxu0 %v3610_v7  ;;  %4878 = vmatmul.mubr.f32.vlgmr.msra.gmra.mrb[28].mxu1 %v3610_v7 }
 0x68b   :  { %5758 = vmatpush1.bf16.msra.mxu0 %v8188_v35  ;;  %5789 = vmatpush3.bf16.msra.mxu1 %v8195_v53 }
 0x68c   :  { %5760 = vmatprep.subr.bf16.mxu0 %v8204_v13  ;;  %5790 = vmatprep.subr.bf16.mxu1 %v5929_v3 }
 0x68d   :  { %3865 = vmatprep.mubr.f32.mxu0 %v5930_v4  ;;  %4912 = vmatprep.mubr.msk.f32.mxu1 %vm5931_vm0, %v5930_v4 }
 0x68f   :  { %5762 = vmatpush1.bf16.msra.mxu0 %v8217_v11  ;;  %5792 = vmatpush3.bf16.msra.mxu1 %v8224_v60 }
 0x690   :  { %5764 = vmatprep.subr.bf16.mxu0 %v8235_v32  ;;  %5793 = vmatprep.subr.bf16.mxu1 %v5929_v3 }
 0x693   :  { %5766 = vmatpush1.bf16.msra.mxu0 %v8248_v52  ;;  %5795 = vmatpush3.bf16.msra.mxu1 %v8255_v24 }
 0x694   :  { %5768 = vmatprep.subr.bf16.mxu0 %v8263_v54  ;;  %5796 = vmatprep.subr.bf16.mxu1 %v5929_v3 }
 0x697   :  { %5770 = vmatpush1.bf16.msra.mxu0 %v8276_v43  ;;  %5798 = vmatpush3.bf16.msra.mxu1 %v8283_v57  ;;  %v5928_v43 = vld [vmem:[%s8661_s5] ss:$0 sm:$0xff] }
 0x698   :  { %5772 = vmatprep.subr.bf16.mxu0 %v8291_v17  ;;  %5799 = vmatprep.subr.bf16.mxu1 %v5929_v3 }
 0x69b   :  { %5774 = vmatpush1.bf16.msra.mxu0 %v8304_v12  ;;  %5801 = vmatpush3.bf16.msra.mxu1 %v8317_v23  ;;  %v3254_v12 = vadd.f32 %v8491_v0, %v6585_v44 }
 0x69c   :  { %5776 = vmatprep.subr.bf16.mxu0 %v8319_v28  ;;  %5802 = vmatprep.subr.bf16.mxu1 %v5929_v3 }
 0x69f   :  { %5778 = vmatpush1.bf16.msra.mxu0 %v8341_v39  ;;  %5804 = vmatpush3.bf16.msra.mxu1 %v8343_v49 }
 0x6a0   :  { %5780 = vmatprep.subr.bf16.mxu0 %v8350_v29  ;;  %5805 = vmatprep.subr.bf16.mxu1 %v5929_v3 }
 0x6a3   :  { %5782 = vmatpush1.bf16.msra.mxu0 %v8369_v34  ;;  %5807 = vmatpush3.bf16.msra.mxu1 %v8371_v48 }
 0x6a4   :  { %5784 = vmatprep.subr.bf16.mxu0 %v8378_v31  ;;  %5808 = vmatprep.subr.bf16.mxu1 %v5929_v3 }
 0x6a7   :  { %5786 = vmatpush1.bf16.msra.mxu0 %v8391_v25  ;;  %5810 = vmatpush3.bf16.msra.mxu1 %v8393_v55 }
 0x735   :  { %v3371_v4 = vpop.f32.mrb[12].mxu0  ;;  %v3442_v35 = vpop.f32.mrb[26].mxu1 }
 0x736   :  { %v5823_v53 = vadd.f32 %v3371_v4, %v6574_v37  ;;  %v3373_v13 = vpop.f32.mrb[13].mxu0  ;;  %v4844_v11 = vpop.f32.mrb[27].mxu1  ;;  %v3460_v57 = vadd.f32 %v5928_v43, %v3442_v35 }
 0x737   :  { %v5824_v32 = vadd.f32 %v3373_v13, %v6577_v8 }
 0x738   :  { %v4071_v60 = vmul.f32 -1.442695, %v5823_v53 }
 0x739   :  { %v4072_v52 = vmul.f32 -1.442695, %v5824_v32 }
 0x73a   :  { %5907 = vpow2.f32 %v4071_v60 }
 0x73b   :  { %5909 = vpow2.f32 %v4072_v52 }
 0x744   :  { %v5908_v24 = vpop.eup %5907 }
 0x745   :  { %v3450_v54 = vadd.f32 1.0, %v5908_v24  ;;  %v5910_v3 = vpop.eup %5909 }
 0x746   :  { %v3457_v39 = vadd.f32 1.0, %v5910_v3 }
 0x747   :  { %5911 = vrcp.f32 %v3450_v54 }
 0x751   :  { %v5912_v17 = vpop.eup %5911 }
 0x752   :  { %v3461_v23 = vmul.f32 %v5912_v17, %v3460_v57 }
 0x754   :  { %v3462_v28 = vadd.f32 %v3461_v23, %v3254_v12 }
 0x756   :  { %5913 = vtanh.f32 %v3462_v28 }
 0x757   :  { %5915 = vrcp.f32 %v3457_v39 }
 0x75d   :  { %v3749_v20 = vpop.f32.mrb[28].mxu1 }
 0x75e   :  { %v4879_v47 = vpop.f32.mrb[29].mxu1  ;;  %v3750_v56 = vadd.f32 %v3749_v20, %v6585_v44 }
 0x760   :  { %v5914_v49 = vpop.eup %5913 }
 0x761   :  { %v3464_v29 = vsub.f32 %v8413_v51, %v5914_v49  ;;  %v5916_v34 = vpop.eup %5915 }
 0x763   :  { %v3465_v48 = vmul.f32 %v5916_v34, %v3464_v29 }
 0x765   :  { %v3466_v31 = vadd.f32 %v5914_v49, %v3465_v48 }
 0x767   :  { %v3468_v25 = vcombine.high %v3466_v31, %v3466_v31  ;;  %v3475_v55 = vrot.slane %v3466_v31, %v6602_v62  ;;  %3866 = vmatmul.mubr.f32.vlgmr.msra.gmra.mrb[14].mxu0 %v3466_v31  ;;  %4913 = vmatmul.mubr.f32.vlgmr.msra.gmra.mrb[30].mxu1 %v3466_v31 }
 0x769   :  { %v3482_v5 = vrot.slane %v3468_v25, %v6602_v62  ;;  %v3483_v59 = vcombine.high %v3475_v55, %v3475_v55  ;;  %v3491_v0 = vrot.slane %v3475_v55, %v6602_v62  ;;  %4073 = vst.sshfl [vmem:[%s8662_s6 + $0x6] sm:$0x1 pattern:$0x73625140] %v3475_v55 }
 0x76b   :  { %v3484_v21 = vcombine.high %v3482_v5, %v3482_v5  ;;  %v3498_v51 = vrot.slane %v3482_v5, %v6602_v62  ;;  %v3505_v36 = vrot.slane %v3483_v59, %v6602_v62  ;;  %v3513_v45 = vcombine.high %v3491_v0, %v3491_v0  ;;  %4074 = vst.sshfl [vmem:[%s8662_s6 + $0xe] sm:$0x1 pattern:$0x73625140] %v3483_v59 }
 0x76c   :  { %4075 = vst.sshfl [vmem:[%s8662_s6 + $0x26] sm:$0x1 pattern:$0x73625140] %v3482_v5 }
 0x76d   :  { %v3512_v10 = vrot.slane %v3484_v21, %v6602_v62  ;;  %v3514_v38 = vcombine.high %v3498_v51, %v3498_v51  ;;  %v3515_v46 = vcombine.high %v3505_v36, %v3505_v36  ;;  %3527 = vst [vmem:[%s8662_s6 + $0x16] sm:$0x1] %v3513_v45  ;;  %4076 = vst.sshfl [vmem:[%s8662_s6 + $0x2e] sm:$0x1 pattern:$0x73625140] %v3484_v21 }
 0x76f   :  { %v3516_v58 = vcombine.high %v3512_v10, %v3512_v10  ;;  %3528 = vst [vmem:[%s8662_s6 + $0x1e] sm:$0x1] %v3515_v46  ;;  %3531 = vst [vmem:[%s8662_s6 + $0x36] sm:$0x1] %v3514_v38 }
 0x771   :  { %3532 = vst [vmem:[%s8662_s6 + $0x3e] sm:$0x1] %v3516_v58 }
 0x83a   :  { %v3867_v9 = vpop.f32.mrb[14].mxu0  ;;  %v3938_v2 = vpop.f32.mrb[30].mxu1 }
 0x83b   :  { %v5825_v61 = vadd.f32 %v3867_v9, %v6574_v37  ;;  %v3869_v19 = vpop.f32.mrb[15].mxu0  ;;  %v4914_v26 = vpop.f32.mrb[31].mxu1  ;;  %v3956_v14 = vadd.f32 %v5928_v43, %v3938_v2 }
 0x83c   :  { %v5826_v15 = vadd.f32 %v3869_v19, %v6577_v8 }
 0x83d   :  { %v4077_v30 = vmul.f32 -1.442695, %v5825_v61 }
 0x83e   :  { %v4078_v50 = vmul.f32 -1.442695, %v5826_v15 }
 0x83f   :  { %5917 = vpow2.f32 %v4077_v30 }
 0x840   :  { %5919 = vpow2.f32 %v4078_v50 }
 0x849   :  { %v5918_v6 = vpop.eup %5917 }
 0x84a   :  { %v3946_v41 = vadd.f32 1.0, %v5918_v6  ;;  %v5920_v22 = vpop.eup %5919 }
 0x84b   :  { %v3953_v27 = vadd.f32 1.0, %v5920_v22 }
 0x84c   :  { %5921 = vrcp.f32 %v3946_v41 }
 0x856   :  { %v5922_v40 = vpop.eup %5921 }
 0x857   :  { %v3957_v16 = vmul.f32 %v5922_v40, %v3956_v14 }
 0x859   :  { %v3958_v42 = vadd.f32 %v3957_v16, %v3750_v56 }
 0x85b   :  { %5923 = vtanh.f32 %v3958_v42 }
 0x85c   :  { %5925 = vrcp.f32 %v3953_v27 }
 0x865   :  { %v5924_v37 = vpop.eup %5923 }
 0x866   :  { %v3960_v63 = vsub.f32 %v3466_v31, %v5924_v37  ;;  %v5926_v33 = vpop.eup %5925 }
 0x868   :  { %v3961_v18 = vmul.f32 %v5926_v33, %v3960_v63 }
 0x86a   :  { %v3962_v8 = vadd.f32 %v5924_v37, %v3961_v18 }
 0x86c   :  { %v3964_v1 = vcombine.high %v3962_v8, %v3962_v8  ;;  %v3971_v7 = vrot.slane %v3962_v8, %v6602_v62 }
 0x86e   :  { %v3978_v4 = vrot.slane %v3964_v1, %v6602_v62  ;;  %v3979_v35 = vcombine.high %v3971_v7, %v3971_v7  ;;  %v3987_v53 = vrot.slane %v3971_v7, %v6602_v62  ;;  %4079 = vst.sshfl [vmem:[%s8662_s6 + $0x7] sm:$0x1 pattern:$0x73625140] %v3971_v7 }
 0x870   :  { %v3980_v44 = vcombine.high %v3978_v4, %v3978_v4  ;;  %v3994_v13 = vrot.slane %v3978_v4, %v6602_v62  ;;  %v4001_v11 = vrot.slane %v3979_v35, %v6602_v62  ;;  %v4009_v60 = vcombine.high %v3987_v53, %v3987_v53  ;;  %4080 = vst.sshfl [vmem:[%s8662_s6 + $0xf] sm:$0x1 pattern:$0x73625140] %v3979_v35 }
 0x871   :  { %4081 = vst.sshfl [vmem:[%s8662_s6 + $0x27] sm:$0x1 pattern:$0x73625140] %v3978_v4 }
 0x872   :  { %v4008_v32 = vrot.slane %v3980_v44, %v6602_v62  ;;  %v4010_v52 = vcombine.high %v3994_v13, %v3994_v13  ;;  %v4011_v24 = vcombine.high %v4001_v11, %v4001_v11  ;;  %4023 = vst [vmem:[%s8662_s6 + $0x17] sm:$0x1] %v4009_v60  ;;  %4082 = vst.sshfl [vmem:[%s8662_s6 + $0x2f] sm:$0x1 pattern:$0x73625140] %v3980_v44 }
 0x874   :  { %v4012_v54 = vcombine.high %v4008_v32, %v4008_v32  ;;  %4024 = vst [vmem:[%s8662_s6 + $0x1f] sm:$0x1] %v4011_v24  ;;  %4027 = vst [vmem:[%s8662_s6 + $0x37] sm:$0x1] %v4010_v52 }
 0x876   :  { %4028 = vst [vmem:[%s8662_s6 + $0x3f] sm:$0x1] %v4012_v54 }

</bundles_post_ra>
